<compile_context>
chip_gen: v5e
topology: v5e:2x2
jax: 0.10.0
libtpu: 0.0.40
codegen_flags: <defaults>
</compile_context>

<pallas_src>
import functools

import jax
import jax.numpy as jnp
import numpy as np
from jax import lax
from jax.experimental import pallas as pl
from jax.experimental.pallas import tpu as pltpu

GA_SIZE = 16
IP_IDX = (0, 2, 3, 4, 8, 9, 10, 14)   # invariant inner-product blades (no e0)
NIP = len(IP_IDX)


def _geom_attn_kernel(q_ref, k_ref, v_ref, w_ref, o_ref,
                      q_ip_sc, acc_sc, m_sc, l_sc,
                      *, num_heads, head_dim, mm_dtype):
    f32 = jnp.float32
    hdg = head_dim * GA_SIZE          # lanes per head (= 128 when head_dim == 8)
    D = num_heads * hdg               # flattened E * GA lane width

    ki = pl.program_id(2)
    nk = pl.num_programs(2)

    # GA-periodic 0/1 mask selecting the invariant-inner-product blades.
    # Built from iota -> no extra kernel input, one VPU select + multiply.
    g = lax.broadcasted_iota(jnp.int32, (1, D), 1) % GA_SIZE
    ip_mask = functools.reduce(jnp.logical_or,
                               [g == i for i in IP_IDX]).astype(f32)

    scale = 1.0 / float(np.sqrt(head_dim * NIP))

    @pl.when(ki == 0)
    def _init():
        # Project this q tile once per (batch, q-tile); cache masked mm_dtype copy.
        qp = jnp.dot(q_ref[0].astype(mm_dtype), w_ref[0],
                     preferred_element_type=f32)                  # (Tq, D)
        q_ip_sc[...] = (qp * ip_mask).astype(mm_dtype)
        m_sc[...] = jnp.full(m_sc.shape, -jnp.inf, dtype=f32)
        l_sc[...] = jnp.zeros(l_sc.shape, dtype=f32)
        acc_sc[...] = jnp.zeros(acc_sc.shape, dtype=f32)

    # Project the current kv tile: single lane-dense (Tk, D) @ (D, D) matmuls.
    kp = jnp.dot(k_ref[0].astype(mm_dtype), w_ref[1], preferred_element_type=f32)
    vp = jnp.dot(v_ref[0].astype(mm_dtype), w_ref[2], preferred_element_type=f32)
    k_ip = (kp * ip_mask).astype(mm_dtype)          # (Tk, D)
    v_mm = vp.astype(mm_dtype)                      # (Tk, D)

    # Per-head online-softmax update; head slices are static and 128-lane
    # aligned (no relayout).  num_heads is small so a static Python loop is fine.
    for h in range(num_heads):
        lo = h * hdg
        q_h = q_ip_sc[:, lo:lo + hdg]               # (Tq, hdg)  mm_dtype
        k_h = k_ip[:, lo:lo + hdg]                  # (Tk, hdg)
        v_h = v_mm[:, lo:lo + hdg]                  # (Tk, hdg)

        # scores_h = q_h @ k_h^T  (contraction over head_dim*16 lanes)
        s = lax.dot_general(q_h, k_h, (((1,), (1,)), ((), ())),
                            preferred_element_type=f32) * scale   # (Tq, Tk)

        m_prev = m_sc[h]                                          # (Tq, 1)
        m_new = jnp.maximum(m_prev, jnp.max(s, axis=-1, keepdims=True))
        alpha = jnp.exp(m_prev - m_new)                           # (Tq, 1)
        p = jnp.exp(s - m_new)                                    # (Tq, Tk) f32
        l_sc[h] = alpha * l_sc[h] + jnp.sum(p, axis=-1, keepdims=True)
        acc_sc[h] = alpha * acc_sc[h] + jnp.dot(
            p.astype(mm_dtype), v_h, preferred_element_type=f32)
        m_sc[h] = m_new

    @pl.when(ki == nk - 1)
    def _finalize():
        ctx = jnp.concatenate(
            [acc_sc[h] * pl.reciprocal(l_sc[h], approx=True)
             for h in range(num_heads)],
            axis=-1)                                              # (Tq, D) f32
        out = jnp.dot(ctx.astype(mm_dtype), w_ref[3],
                      preferred_element_type=f32)                 # (Tq, D)
        o_ref[0] = out.astype(o_ref.dtype)                        # lane-dense store


def _expand_equilinear(w):
    """(E, E) channel-mix weight -> (E*GA, E*GA) block-diagonal weight so that
    the EquiLinear layer becomes  y_flat = x_flat @ W_big  on the lane-dense
    (..., E*GA) layout (blade index innermost)."""
    eye = jnp.eye(GA_SIZE, dtype=jnp.float32)
    return jnp.kron(w.astype(jnp.float32).T, eye)


def geometric_attention(q, k, v, wq, wk, wv, wo, *, num_heads,
                        q_tile=None, kv_tile=None, mm_dtype=jnp.bfloat16):
    """q, k, v: (B, S, E, 16) float32.  Returns (B, S, E, 16)."""
    B, S, E, G = q.shape
    assert G == GA_SIZE and E % num_heads == 0
    head_dim = E // num_heads
    D = E * GA_SIZE
    hdg = head_dim * GA_SIZE
    assert D % 128 == 0, "E must be a multiple of 8 for the lane-dense layout"

    Tq = q_tile or min(S, 128)
    Tk = kv_tile or min(S, 128)
    assert S % Tq == 0 and S % Tk == 0 and Tq % 8 == 0 and Tk % 8 == 0

    # Free row-major flatten: (B, S, E, 16) -> (B, S, E*16), blade innermost.
    qf = q.reshape(B, S, D)
    kf = k.reshape(B, S, D)
    vf = v.reshape(B, S, D)

    # All four EquiLinear weights as one stacked, block-diagonal input.
    w_all = jnp.stack([_expand_equilinear(w) for w in (wq, wk, wv, wo)]
                      ).astype(mm_dtype)                          # (4, D, D)

    kernel = functools.partial(_geom_attn_kernel, num_heads=num_heads,
                               head_dim=head_dim, mm_dtype=mm_dtype)

    grid = (B, S // Tq, S // Tk)

    out = pl.pallas_call(
        kernel,
        out_shape=jax.ShapeDtypeStruct((B, S, D), q.dtype),
        grid_spec=pltpu.PrefetchScalarGridSpec(
            num_scalar_prefetch=0,
            grid=grid,
            in_specs=[
                pl.BlockSpec((1, Tq, D), lambda b, qi, ki: (b, qi, 0)),   # q
                pl.BlockSpec((1, Tk, D), lambda b, qi, ki: (b, ki, 0)),   # k
                pl.BlockSpec((1, Tk, D), lambda b, qi, ki: (b, ki, 0)),   # v
                pl.BlockSpec((4, D, D), lambda b, qi, ki: (0, 0, 0)),     # weights
            ],
            out_specs=pl.BlockSpec((1, Tq, D), lambda b, qi, ki: (b, qi, 0)),
            scratch_shapes=[
                pltpu.VMEM((Tq, D), mm_dtype),                  # cached masked q-proj
                pltpu.VMEM((num_heads, Tq, hdg), jnp.float32),  # ctx accumulator
                pltpu.VMEM((num_heads, Tq, 1), jnp.float32),    # running max
                pltpu.VMEM((num_heads, Tq, 1), jnp.float32),    # running denom
            ]),
        compiler_params=pltpu.CompilerParams(
            dimension_semantics=("parallel", "parallel", "arbitrary"),
            vmem_limit_bytes=32 * 1024 * 1024),
    )(qf, kf, vf, w_all)

    return out.reshape(B, S, E, GA_SIZE)


def reference(q, k, v, wq, wk, wv, wo, *, num_heads, mm_dtype=jnp.float32):
    """Plain-JAX transcription of the PyTorch forward.

    With mm_dtype=bfloat16 the matmul operands are rounded at the same points
    as the kernel's default config (f32 accumulation, f32 softmax), giving a
    precision-matched reference."""
    B, S, E, G = q.shape
    head_dim = E // num_heads
    f32 = jnp.float32
    prec = lax.Precision.HIGHEST if mm_dtype == f32 else lax.Precision.DEFAULT

    def equi(w, x):
        return jnp.einsum('oe,bseg->bsog', w.astype(mm_dtype), x.astype(mm_dtype),
                          preferred_element_type=f32, precision=prec)

    qp, kp, vp = equi(wq, q), equi(wk, k), equi(wv, v)
    idx = jnp.array(IP_IDX)
    qh = qp[..., idx].reshape(B, S, num_heads, head_dim * NIP).transpose(0, 2, 1, 3)
    kh = kp[..., idx].reshape(B, S, num_heads, head_dim * NIP).transpose(0, 2, 1, 3)
    vh = vp.reshape(B, S, num_heads, head_dim * G).transpose(0, 2, 1, 3)
    scores = jnp.einsum('bhqd,bhkd->bhqk', qh.astype(mm_dtype), kh.astype(mm_dtype),
                        preferred_element_type=f32, precision=prec)
    scores = scores / np.sqrt(head_dim * NIP)
    attn = jax.nn.softmax(scores, axis=-1)
    ctx = jnp.einsum('bhqk,bhkd->bhqd', attn.astype(mm_dtype), vh.astype(mm_dtype),
                     preferred_element_type=f32, precision=prec)
    ctx = ctx.transpose(0, 2, 1, 3).reshape(B, S, E, G)
    return jnp.einsum('oe,bseg->bsog', wo.astype(mm_dtype), ctx.astype(mm_dtype),
                      preferred_element_type=f32, precision=prec)


if __name__ == "__main__":
    B, S, E, H = 2, 8, 32, 4   # batch, seq, embed_dim, num_heads (head_dim = 8)

    key = jax.random.PRNGKey(0)
    kq, kk, kv, k1, k2, k3, k4 = jax.random.split(key, 7)

    q = jax.random.normal(kq, (B, S, E, GA_SIZE), dtype=jnp.float32)
    k = jax.random.normal(kk, (B, S, E, GA_SIZE), dtype=jnp.float32)
    v = jax.random.normal(kv, (B, S, E, GA_SIZE), dtype=jnp.float32)

    wscale = 1.0 / np.sqrt(E)
    wq = jax.random.normal(k1, (E, E), dtype=jnp.float32) * wscale
    wk = jax.random.normal(k2, (E, E), dtype=jnp.float32) * wscale
    wv = jax.random.normal(k3, (E, E), dtype=jnp.float32) * wscale
    wo = jax.random.normal(k4, (E, E), dtype=jnp.float32) * wscale

    # f32-matmul variant vs. exact reference (looser bound: MXU f32 pass count
    # and XLA matmul precision defaults may differ across generations).
    out_f32 = geometric_attention(q, k, v, wq, wk, wv, wo, num_heads=H,
                                  mm_dtype=jnp.float32)
    out_f32 = jax.block_until_ready(out_f32)
    ref_f32 = reference(q, k, v, wq, wk, wv, wo, num_heads=H)
    np.testing.assert_allclose(np.asarray(out_f32), np.asarray(ref_f32),
                               rtol=5e-2, atol=5e-2)

    # Default config (bf16 matmul operands, f32 accumulation/softmax) vs. a
    # precision-matched reference that rounds operands at the same points.
    out_bf16 = geometric_attention(q, k, v, wq, wk, wv, wo, num_heads=H)
    out_bf16 = jax.block_until_ready(out_bf16)
    ref_bf16 = reference(q, k, v, wq, wk, wv, wo, num_heads=H,
                         mm_dtype=jnp.bfloat16)
    np.testing.assert_allclose(np.asarray(out_bf16), np.asarray(ref_bf16),
                               rtol=2e-2, atol=2e-2)

    print("KERNEL_OK")
</pallas_src>

<mosaic_0001>
module attributes {stable_mosaic.version = 11 : i64} {
  func.func @_geom_attn_kernel(%arg0: i32, %arg1: i32, %arg2: i32, %arg3: memref<1x8x512xf32, #tpu.memory_space<vmem>>, %arg4: memref<1x8x512xf32, #tpu.memory_space<vmem>>, %arg5: memref<1x8x512xf32, #tpu.memory_space<vmem>>, %arg6: memref<4x512x512xf32, #tpu.memory_space<vmem>>, %arg7: memref<1x8x512xf32, #tpu.memory_space<vmem>>, %arg8: memref<8x512xf32, #tpu.memory_space<vmem>>, %arg9: memref<4x8x128xf32, #tpu.memory_space<vmem>>, %arg10: memref<4x8x1xf32, #tpu.memory_space<vmem>>, %arg11: memref<4x8x1xf32, #tpu.memory_space<vmem>>) attributes {dimension_semantics = [#tpu.dimension_semantics<parallel>, #tpu.dimension_semantics<parallel>, #tpu.dimension_semantics<arbitrary>], iteration_bounds = array<i64: 2, 1, 1>, scalar_prefetch = 0 : i64, scratch_operands = 4 : i64, tpu.core_type = #tpu.core_type<tc>, window_params = [{transform_indices = @transform_0, window_bounds = array<i64: 1, 8, 512>}, {transform_indices = @transform_1, window_bounds = array<i64: 1, 8, 512>}, {transform_indices = @transform_2, window_bounds = array<i64: 1, 8, 512>}, {pipeline_mode = #tpu.pipeline_mode<synchronous>, transform_indices = @transform_3, window_bounds = array<i64: 4, 512, 512>}, {transform_indices = @transform_4, window_bounds = array<i64: 1, 8, 512>}]} {
    %0 = tpu.iota {dimensions = array<i32: 1>} : vector<1x512xi32>
    %c16_i32 = arith.constant 16 : i32
    %c0_i32 = arith.constant 0 : i32
    %1 = arith.cmpi eq, %c16_i32, %c0_i32 : i32
    %c1_i32 = arith.constant 1 : i32
    %2 = arith.select %1, %c1_i32, %c16_i32 : i32
    %3 = vector.broadcast %2 : i32 to vector<1x512xi32>
    %4 = arith.remsi %0, %3 : vector<1x512xi32>
    %c0_i32_0 = arith.constant 0 : i32
    %5 = vector.broadcast %c0_i32_0 : i32 to vector<1x512xi32>
    %6 = arith.cmpi ne, %4, %5 : vector<1x512xi32>
    %c0_i32_1 = arith.constant 0 : i32
    %7 = vector.broadcast %c0_i32_1 : i32 to vector<1x512xi32>
    %8 = arith.cmpi slt, %4, %7 : vector<1x512xi32>
    %c0_i32_2 = arith.constant 0 : i32
    %9 = arith.cmpi slt, %2, %c0_i32_2 : i32
    %10 = vector.broadcast %9 : i1 to vector<1x512xi1>
    %11 = vector.broadcast %10 : vector<1x512xi1> to vector<1x512xi1>
    %12 = arith.xori %8, %11 : vector<1x512xi1>
    %13 = arith.andi %12, %6 : vector<1x512xi1>
    %14 = vector.broadcast %2 : i32 to vector<1x512xi32>
    %15 = arith.addi %4, %14 : vector<1x512xi32>
    %16 = arith.select %13, %15, %4 : vector<1x512xi1>, vector<1x512xi32>
    %c0_i32_3 = arith.constant 0 : i32
    %17 = vector.broadcast %c0_i32_3 : i32 to vector<1x512xi32>
    %18 = arith.cmpi eq, %16, %17 : vector<1x512xi32>
    %c2_i32 = arith.constant 2 : i32
    %19 = vector.broadcast %c2_i32 : i32 to vector<1x512xi32>
    %20 = arith.cmpi eq, %16, %19 : vector<1x512xi32>
    %c3_i32 = arith.constant 3 : i32
    %21 = vector.broadcast %c3_i32 : i32 to vector<1x512xi32>
    %22 = arith.cmpi eq, %16, %21 : vector<1x512xi32>
    %c4_i32 = arith.constant 4 : i32
    %23 = vector.broadcast %c4_i32 : i32 to vector<1x512xi32>
    %24 = arith.cmpi eq, %16, %23 : vector<1x512xi32>
    %c8_i32 = arith.constant 8 : i32
    %25 = vector.broadcast %c8_i32 : i32 to vector<1x512xi32>
    %26 = arith.cmpi eq, %16, %25 : vector<1x512xi32>
    %c9_i32 = arith.constant 9 : i32
    %27 = vector.broadcast %c9_i32 : i32 to vector<1x512xi32>
    %28 = arith.cmpi eq, %16, %27 : vector<1x512xi32>
    %c10_i32 = arith.constant 10 : i32
    %29 = vector.broadcast %c10_i32 : i32 to vector<1x512xi32>
    %30 = arith.cmpi eq, %16, %29 : vector<1x512xi32>
    %c14_i32 = arith.constant 14 : i32
    %31 = vector.broadcast %c14_i32 : i32 to vector<1x512xi32>
    %32 = arith.cmpi eq, %16, %31 : vector<1x512xi32>
    %33 = arith.ori %18, %20 : vector<1x512xi1>
    %34 = arith.ori %33, %22 : vector<1x512xi1>
    %35 = arith.ori %34, %24 : vector<1x512xi1>
    %36 = arith.ori %35, %26 : vector<1x512xi1>
    %37 = arith.ori %36, %28 : vector<1x512xi1>
    %38 = arith.ori %37, %30 : vector<1x512xi1>
    %39 = arith.ori %38, %32 : vector<1x512xi1>
    %40 = arith.extui %39 : vector<1x512xi1> to vector<1x512xi32>
    %41 = arith.sitofp %40 : vector<1x512xi32> to vector<1x512xf32>
    %c0_i32_4 = arith.constant 0 : i32
    %42 = arith.cmpi eq, %arg2, %c0_i32_4 : i32
    %43 = arith.extui %42 : i1 to i32
    %c0_i32_5 = arith.constant 0 : i32
    %44 = arith.cmpi ne, %43, %c0_i32_5 : i32
    scf.if %44 {
      %c0_114 = arith.constant 0 : index
      %c0_115 = arith.constant 0 : index
      %c0_116 = arith.constant 0 : index
      %208 = vector.load %arg3[%c0_114, %c0_115, %c0_116] : memref<1x8x512xf32, #tpu.memory_space<vmem>>, vector<1x8x512xf32>
      %209 = vector.shape_cast %208 : vector<1x8x512xf32> to vector<8x512xf32>
      %c0_117 = arith.constant 0 : index
      %c0_118 = arith.constant 0 : index
      %c0_119 = arith.constant 0 : index
      %210 = vector.load %arg6[%c0_117, %c0_118, %c0_119] : memref<4x512x512xf32, #tpu.memory_space<vmem>>, vector<1x512x512xf32>
      %211 = vector.shape_cast %210 : vector<1x512x512xf32> to vector<512x512xf32>
      %cst_120 = arith.constant dense<0.000000e+00> : vector<8x512xf32>
      %212 = tpu.matmul %209, %211, %cst_120 {dimension_numbers = #tpu.dot_dimension_numbers<[1], [0], [0], [1], [0, 0, 1, 1], [], []>} : vector<8x512xf32>, vector<512x512xf32>, vector<8x512xf32> -> vector<8x512xf32>
      %213 = vector.broadcast %41 : vector<1x512xf32> to vector<8x512xf32>
      %214 = arith.mulf %212, %213 : vector<8x512xf32>
      %c0_121 = arith.constant 0 : index
      %c0_122 = arith.constant 0 : index
      %215 = vector.load %arg8[%c0_121, %c0_122] : memref<8x512xf32, #tpu.memory_space<vmem>>, vector<8x512xf32>
      tpu.vector_store %arg8[%c0_121, %c0_122], %214 {strides = array<i32>} : memref<8x512xf32, #tpu.memory_space<vmem>>, vector<8x512xf32>,
      %cst_123 = arith.constant 0xFF800000 : f32
      %216 = vector.broadcast %cst_123 : f32 to vector<4x8x1xf32>
      %c0_124 = arith.constant 0 : index
      %c0_125 = arith.constant 0 : index
      %c0_126 = arith.constant 0 : index
      %217 = vector.load %arg10[%c0_124, %c0_125, %c0_126] : memref<4x8x1xf32, #tpu.memory_space<vmem>>, vector<4x8x1xf32>
      tpu.vector_store %arg10[%c0_124, %c0_125, %c0_126], %216 {strides = array<i32>} : memref<4x8x1xf32, #tpu.memory_space<vmem>>, vector<4x8x1xf32>,
      %cst_127 = arith.constant 0.000000e+00 : f32
      %218 = vector.broadcast %cst_127 : f32 to vector<4x8x1xf32>
      %c0_128 = arith.constant 0 : index
      %c0_129 = arith.constant 0 : index
      %c0_130 = arith.constant 0 : index
      %219 = vector.load %arg11[%c0_128, %c0_129, %c0_130] : memref<4x8x1xf32, #tpu.memory_space<vmem>>, vector<4x8x1xf32>
      tpu.vector_store %arg11[%c0_128, %c0_129, %c0_130], %218 {strides = array<i32>} : memref<4x8x1xf32, #tpu.memory_space<vmem>>, vector<4x8x1xf32>,
      %cst_131 = arith.constant 0.000000e+00 : f32
      %220 = vector.broadcast %cst_131 : f32 to vector<4x8x128xf32>
      %c0_132 = arith.constant 0 : index
      %c0_133 = arith.constant 0 : index
      %c0_134 = arith.constant 0 : index
      %221 = vector.load %arg9[%c0_132, %c0_133, %c0_134] : memref<4x8x128xf32, #tpu.memory_space<vmem>>, vector<4x8x128xf32>
      tpu.vector_store %arg9[%c0_132, %c0_133, %c0_134], %220 {strides = array<i32>} : memref<4x8x128xf32, #tpu.memory_space<vmem>>, vector<4x8x128xf32>,
    } else {
    }
    %c0 = arith.constant 0 : index
    %c0_6 = arith.constant 0 : index
    %c0_7 = arith.constant 0 : index
    %45 = vector.load %arg4[%c0, %c0_6, %c0_7] : memref<1x8x512xf32, #tpu.memory_space<vmem>>, vector<1x8x512xf32>
    %46 = vector.shape_cast %45 : vector<1x8x512xf32> to vector<8x512xf32>
    %c1 = arith.constant 1 : index
    %c0_8 = arith.constant 0 : index
    %c0_9 = arith.constant 0 : index
    %47 = vector.load %arg6[%c1, %c0_8, %c0_9] : memref<4x512x512xf32, #tpu.memory_space<vmem>>, vector<1x512x512xf32>
    %48 = vector.shape_cast %47 : vector<1x512x512xf32> to vector<512x512xf32>
    %cst = arith.constant dense<0.000000e+00> : vector<8x512xf32>
    %49 = tpu.matmul %46, %48, %cst {dimension_numbers = #tpu.dot_dimension_numbers<[1], [0], [0], [1], [0, 0, 1, 1], [], []>} : vector<8x512xf32>, vector<512x512xf32>, vector<8x512xf32> -> vector<8x512xf32>
    %c0_10 = arith.constant 0 : index
    %c0_11 = arith.constant 0 : index
    %c0_12 = arith.constant 0 : index
    %50 = vector.load %arg5[%c0_10, %c0_11, %c0_12] : memref<1x8x512xf32, #tpu.memory_space<vmem>>, vector<1x8x512xf32>
    %51 = vector.shape_cast %50 : vector<1x8x512xf32> to vector<8x512xf32>
    %c2 = arith.constant 2 : index
    %c0_13 = arith.constant 0 : index
    %c0_14 = arith.constant 0 : index
    %52 = vector.load %arg6[%c2, %c0_13, %c0_14] : memref<4x512x512xf32, #tpu.memory_space<vmem>>, vector<1x512x512xf32>
    %53 = vector.shape_cast %52 : vector<1x512x512xf32> to vector<512x512xf32>
    %cst_15 = arith.constant dense<0.000000e+00> : vector<8x512xf32>
    %54 = tpu.matmul %51, %53, %cst_15 {dimension_numbers = #tpu.dot_dimension_numbers<[1], [0], [0], [1], [0, 0, 1, 1], [], []>} : vector<8x512xf32>, vector<512x512xf32>, vector<8x512xf32> -> vector<8x512xf32>
    %55 = vector.broadcast %41 : vector<1x512xf32> to vector<8x512xf32>
    %56 = arith.mulf %49, %55 : vector<8x512xf32>
    %c0_16 = arith.constant 0 : index
    %c0_17 = arith.constant 0 : index
    %57 = vector.load %arg8[%c0_16, %c0_17] : memref<8x512xf32, #tpu.memory_space<vmem>>, vector<8x128xf32>
    %58 = vector.extract_strided_slice %56 {offsets = [0, 0], sizes = [8, 128], strides = [1, 1]} : vector<8x512xf32> to vector<8x128xf32>
    %59 = vector.extract_strided_slice %54 {offsets = [0, 0], sizes = [8, 128], strides = [1, 1]} : vector<8x512xf32> to vector<8x128xf32>
    %cst_18 = arith.constant dense<0.000000e+00> : vector<8x8xf32>
    %60 = tpu.matmul %57, %58, %cst_18 {dimension_numbers = #tpu.dot_dimension_numbers<[1], [1], [0], [0], [0, 0, 1, 0], [], []>} : vector<8x128xf32>, vector<8x128xf32>, vector<8x8xf32> -> vector<8x8xf32>
    %cst_19 = arith.constant 1.250000e-01 : f32
    %61 = vector.broadcast %cst_19 : f32 to vector<8x8xf32>
    %62 = arith.mulf %60, %61 : vector<8x8xf32>
    %c0_20 = arith.constant 0 : index
    %c0_21 = arith.constant 0 : index
    %c0_22 = arith.constant 0 : index
    %63 = vector.load %arg10[%c0_20, %c0_21, %c0_22] : memref<4x8x1xf32, #tpu.memory_space<vmem>>, vector<1x8x1xf32>
    %64 = vector.shape_cast %63 : vector<1x8x1xf32> to vector<8x1xf32>
    %cst_23 = arith.constant dense<0xFF800000> : vector<8xf32>
    %65 = vector.multi_reduction <maximumf>, %62, %cst_23 [1] : vector<8x8xf32> to vector<8xf32>
    %66 = vector.shape_cast %65 : vector<8xf32> to vector<8x1xf32>
    %67 = arith.maximumf %64, %66 : vector<8x1xf32>
    %68 = arith.subf %64, %67 : vector<8x1xf32>
    %69 = math.exp %68 : vector<8x1xf32>
    %70 = vector.broadcast %67 : vector<8x1xf32> to vector<8x8xf32>
    %71 = arith.subf %62, %70 : vector<8x8xf32>
    %72 = math.exp %71 : vector<8x8xf32>
    %c0_24 = arith.constant 0 : index
    %c0_25 = arith.constant 0 : index
    %c0_26 = arith.constant 0 : index
    %73 = vector.load %arg11[%c0_24, %c0_25, %c0_26] : memref<4x8x1xf32, #tpu.memory_space<vmem>>, vector<1x8x1xf32>
    %74 = vector.shape_cast %73 : vector<1x8x1xf32> to vector<8x1xf32>
    %75 = arith.mulf %69, %74 : vector<8x1xf32>
    %cst_27 = arith.constant dense<0.000000e+00> : vector<8xf32>
    %76 = vector.multi_reduction <add>, %72, %cst_27 [1] : vector<8x8xf32> to vector<8xf32>
    %77 = vector.shape_cast %76 : vector<8xf32> to vector<8x1xf32>
    %78 = arith.addf %75, %77 : vector<8x1xf32>
    %c0_28 = arith.constant 0 : index
    %c0_29 = arith.constant 0 : index
    %c0_30 = arith.constant 0 : index
    %79 = vector.load %arg11[%c0_28, %c0_29, %c0_30] : memref<4x8x1xf32, #tpu.memory_space<vmem>>, vector<1x8x1xf32>
    %80 = vector.shape_cast %79 : vector<1x8x1xf32> to vector<8x1xf32>
    %81 = vector.shape_cast %78 : vector<8x1xf32> to vector<1x8x1xf32>
    tpu.vector_store %arg11[%c0_28, %c0_29, %c0_30], %81 {strides = array<i32>} : memref<4x8x1xf32, #tpu.memory_space<vmem>>, vector<1x8x1xf32>,
    %c0_31 = arith.constant 0 : index
    %c0_32 = arith.constant 0 : index
    %c0_33 = arith.constant 0 : index
    %82 = vector.load %arg9[%c0_31, %c0_32, %c0_33] : memref<4x8x128xf32, #tpu.memory_space<vmem>>, vector<1x8x128xf32>
    %83 = vector.shape_cast %82 : vector<1x8x128xf32> to vector<8x128xf32>
    %84 = vector.broadcast %69 : vector<8x1xf32> to vector<8x128xf32>
    %85 = arith.mulf %84, %83 : vector<8x128xf32>
    %cst_34 = arith.constant dense<0.000000e+00> : vector<8x128xf32>
    %86 = tpu.matmul %72, %59, %cst_34 {dimension_numbers = #tpu.dot_dimension_numbers<[1], [0], [0], [1], [0, 0, 1, 1], [], []>} : vector<8x8xf32>, vector<8x128xf32>, vector<8x128xf32> -> vector<8x128xf32>
    %87 = arith.addf %85, %86 : vector<8x128xf32>
    %c0_35 = arith.constant 0 : index
    %c0_36 = arith.constant 0 : index
    %c0_37 = arith.constant 0 : index
    %88 = vector.load %arg9[%c0_35, %c0_36, %c0_37] : memref<4x8x128xf32, #tpu.memory_space<vmem>>, vector<1x8x128xf32>
    %89 = vector.shape_cast %88 : vector<1x8x128xf32> to vector<8x128xf32>
    %90 = vector.shape_cast %87 : vector<8x128xf32> to vector<1x8x128xf32>
    tpu.vector_store %arg9[%c0_35, %c0_36, %c0_37], %90 {strides = array<i32>} : memref<4x8x128xf32, #tpu.memory_space<vmem>>, vector<1x8x128xf32>,
    %c0_38 = arith.constant 0 : index
    %c0_39 = arith.constant 0 : index
    %c0_40 = arith.constant 0 : index
    %91 = vector.load %arg10[%c0_38, %c0_39, %c0_40] : memref<4x8x1xf32, #tpu.memory_space<vmem>>, vector<1x8x1xf32>
    %92 = vector.shape_cast %91 : vector<1x8x1xf32> to vector<8x1xf32>
    %93 = vector.shape_cast %67 : vector<8x1xf32> to vector<1x8x1xf32>
    tpu.vector_store %arg10[%c0_38, %c0_39, %c0_40], %93 {strides = array<i32>} : memref<4x8x1xf32, #tpu.memory_space<vmem>>, vector<1x8x1xf32>,
    %c0_41 = arith.constant 0 : index
    %c128 = arith.constant 128 : index
    %94 = vector.load %arg8[%c0_41, %c128] : memref<8x512xf32, #tpu.memory_space<vmem>>, vector<8x128xf32>
    %95 = vector.extract_strided_slice %56 {offsets = [0, 128], sizes = [8, 128], strides = [1, 1]} : vector<8x512xf32> to vector<8x128xf32>
    %96 = vector.extract_strided_slice %54 {offsets = [0, 128], sizes = [8, 128], strides = [1, 1]} : vector<8x512xf32> to vector<8x128xf32>
    %cst_42 = arith.constant dense<0.000000e+00> : vector<8x8xf32>
    %97 = tpu.matmul %94, %95, %cst_42 {dimension_numbers = #tpu.dot_dimension_numbers<[1], [1], [0], [0], [0, 0, 1, 0], [], []>} : vector<8x128xf32>, vector<8x128xf32>, vector<8x8xf32> -> vector<8x8xf32>
    %cst_43 = arith.constant 1.250000e-01 : f32
    %98 = vector.broadcast %cst_43 : f32 to vector<8x8xf32>
    %99 = arith.mulf %97, %98 : vector<8x8xf32>
    %c1_44 = arith.constant 1 : index
    %c0_45 = arith.constant 0 : index
    %c0_46 = arith.constant 0 : index
    %100 = vector.load %arg10[%c1_44, %c0_45, %c0_46] : memref<4x8x1xf32, #tpu.memory_space<vmem>>, vector<1x8x1xf32>
    %101 = vector.shape_cast %100 : vector<1x8x1xf32> to vector<8x1xf32>
    %cst_47 = arith.constant dense<0xFF800000> : vector<8xf32>
    %102 = vector.multi_reduction <maximumf>, %99, %cst_47 [1] : vector<8x8xf32> to vector<8xf32>
    %103 = vector.shape_cast %102 : vector<8xf32> to vector<8x1xf32>
    %104 = arith.maximumf %101, %103 : vector<8x1xf32>
    %105 = arith.subf %101, %104 : vector<8x1xf32>
    %106 = math.exp %105 : vector<8x1xf32>
    %107 = vector.broadcast %104 : vector<8x1xf32> to vector<8x8xf32>
    %108 = arith.subf %99, %107 : vector<8x8xf32>
    %109 = math.exp %108 : vector<8x8xf32>
    %c1_48 = arith.constant 1 : index
    %c0_49 = arith.constant 0 : index
    %c0_50 = arith.constant 0 : index
    %110 = vector.load %arg11[%c1_48, %c0_49, %c0_50] : memref<4x8x1xf32, #tpu.memory_space<vmem>>, vector<1x8x1xf32>
    %111 = vector.shape_cast %110 : vector<1x8x1xf32> to vector<8x1xf32>
    %112 = arith.mulf %106, %111 : vector<8x1xf32>
    %cst_51 = arith.constant dense<0.000000e+00> : vector<8xf32>
    %113 = vector.multi_reduction <add>, %109, %cst_51 [1] : vector<8x8xf32> to vector<8xf32>
    %114 = vector.shape_cast %113 : vector<8xf32> to vector<8x1xf32>
    %115 = arith.addf %112, %114 : vector<8x1xf32>
    %c1_52 = arith.constant 1 : index
    %c0_53 = arith.constant 0 : index
    %c0_54 = arith.constant 0 : index
    %116 = vector.load %arg11[%c1_52, %c0_53, %c0_54] : memref<4x8x1xf32, #tpu.memory_space<vmem>>, vector<1x8x1xf32>
    %117 = vector.shape_cast %116 : vector<1x8x1xf32> to vector<8x1xf32>
    %118 = vector.shape_cast %115 : vector<8x1xf32> to vector<1x8x1xf32>
    tpu.vector_store %arg11[%c1_52, %c0_53, %c0_54], %118 {strides = array<i32>} : memref<4x8x1xf32, #tpu.memory_space<vmem>>, vector<1x8x1xf32>,
    %c1_55 = arith.constant 1 : index
    %c0_56 = arith.constant 0 : index
    %c0_57 = arith.constant 0 : index
    %119 = vector.load %arg9[%c1_55, %c0_56, %c0_57] : memref<4x8x128xf32, #tpu.memory_space<vmem>>, vector<1x8x128xf32>
    %120 = vector.shape_cast %119 : vector<1x8x128xf32> to vector<8x128xf32>
    %121 = vector.broadcast %106 : vector<8x1xf32> to vector<8x128xf32>
    %122 = arith.mulf %121, %120 : vector<8x128xf32>
    %cst_58 = arith.constant dense<0.000000e+00> : vector<8x128xf32>
    %123 = tpu.matmul %109, %96, %cst_58 {dimension_numbers = #tpu.dot_dimension_numbers<[1], [0], [0], [1], [0, 0, 1, 1], [], []>} : vector<8x8xf32>, vector<8x128xf32>, vector<8x128xf32> -> vector<8x128xf32>
    %124 = arith.addf %122, %123 : vector<8x128xf32>
    %c1_59 = arith.constant 1 : index
    %c0_60 = arith.constant 0 : index
    %c0_61 = arith.constant 0 : index
    %125 = vector.load %arg9[%c1_59, %c0_60, %c0_61] : memref<4x8x128xf32, #tpu.memory_space<vmem>>, vector<1x8x128xf32>
    %126 = vector.shape_cast %125 : vector<1x8x128xf32> to vector<8x128xf32>
    %127 = vector.shape_cast %124 : vector<8x128xf32> to vector<1x8x128xf32>
    tpu.vector_store %arg9[%c1_59, %c0_60, %c0_61], %127 {strides = array<i32>} : memref<4x8x128xf32, #tpu.memory_space<vmem>>, vector<1x8x128xf32>,
    %c1_62 = arith.constant 1 : index
    %c0_63 = arith.constant 0 : index
    %c0_64 = arith.constant 0 : index
    %128 = vector.load %arg10[%c1_62, %c0_63, %c0_64] : memref<4x8x1xf32, #tpu.memory_space<vmem>>, vector<1x8x1xf32>
    %129 = vector.shape_cast %128 : vector<1x8x1xf32> to vector<8x1xf32>
    %130 = vector.shape_cast %104 : vector<8x1xf32> to vector<1x8x1xf32>
    tpu.vector_store %arg10[%c1_62, %c0_63, %c0_64], %130 {strides = array<i32>} : memref<4x8x1xf32, #tpu.memory_space<vmem>>, vector<1x8x1xf32>,
    %c0_65 = arith.constant 0 : index
    %c256 = arith.constant 256 : index
    %131 = vector.load %arg8[%c0_65, %c256] : memref<8x512xf32, #tpu.memory_space<vmem>>, vector<8x128xf32>
    %132 = vector.extract_strided_slice %56 {offsets = [0, 256], sizes = [8, 128], strides = [1, 1]} : vector<8x512xf32> to vector<8x128xf32>
    %133 = vector.extract_strided_slice %54 {offsets = [0, 256], sizes = [8, 128], strides = [1, 1]} : vector<8x512xf32> to vector<8x128xf32>
    %cst_66 = arith.constant dense<0.000000e+00> : vector<8x8xf32>
    %134 = tpu.matmul %131, %132, %cst_66 {dimension_numbers = #tpu.dot_dimension_numbers<[1], [1], [0], [0], [0, 0, 1, 0], [], []>} : vector<8x128xf32>, vector<8x128xf32>, vector<8x8xf32> -> vector<8x8xf32>
    %cst_67 = arith.constant 1.250000e-01 : f32
    %135 = vector.broadcast %cst_67 : f32 to vector<8x8xf32>
    %136 = arith.mulf %134, %135 : vector<8x8xf32>
    %c2_68 = arith.constant 2 : index
    %c0_69 = arith.constant 0 : index
    %c0_70 = arith.constant 0 : index
    %137 = vector.load %arg10[%c2_68, %c0_69, %c0_70] : memref<4x8x1xf32, #tpu.memory_space<vmem>>, vector<1x8x1xf32>
    %138 = vector.shape_cast %137 : vector<1x8x1xf32> to vector<8x1xf32>
    %cst_71 = arith.constant dense<0xFF800000> : vector<8xf32>
    %139 = vector.multi_reduction <maximumf>, %136, %cst_71 [1] : vector<8x8xf32> to vector<8xf32>
    %140 = vector.shape_cast %139 : vector<8xf32> to vector<8x1xf32>
    %141 = arith.maximumf %138, %140 : vector<8x1xf32>
    %142 = arith.subf %138, %141 : vector<8x1xf32>
    %143 = math.exp %142 : vector<8x1xf32>
    %144 = vector.broadcast %141 : vector<8x1xf32> to vector<8x8xf32>
    %145 = arith.subf %136, %144 : vector<8x8xf32>
    %146 = math.exp %145 : vector<8x8xf32>
    %c2_72 = arith.constant 2 : index
    %c0_73 = arith.constant 0 : index
    %c0_74 = arith.constant 0 : index
    %147 = vector.load %arg11[%c2_72, %c0_73, %c0_74] : memref<4x8x1xf32, #tpu.memory_space<vmem>>, vector<1x8x1xf32>
    %148 = vector.shape_cast %147 : vector<1x8x1xf32> to vector<8x1xf32>
    %149 = arith.mulf %143, %148 : vector<8x1xf32>
    %cst_75 = arith.constant dense<0.000000e+00> : vector<8xf32>
    %150 = vector.multi_reduction <add>, %146, %cst_75 [1] : vector<8x8xf32> to vector<8xf32>
    %151 = vector.shape_cast %150 : vector<8xf32> to vector<8x1xf32>
    %152 = arith.addf %149, %151 : vector<8x1xf32>
    %c2_76 = arith.constant 2 : index
    %c0_77 = arith.constant 0 : index
    %c0_78 = arith.constant 0 : index
    %153 = vector.load %arg11[%c2_76, %c0_77, %c0_78] : memref<4x8x1xf32, #tpu.memory_space<vmem>>, vector<1x8x1xf32>
    %154 = vector.shape_cast %153 : vector<1x8x1xf32> to vector<8x1xf32>
    %155 = vector.shape_cast %152 : vector<8x1xf32> to vector<1x8x1xf32>
    tpu.vector_store %arg11[%c2_76, %c0_77, %c0_78], %155 {strides = array<i32>} : memref<4x8x1xf32, #tpu.memory_space<vmem>>, vector<1x8x1xf32>,
    %c2_79 = arith.constant 2 : index
    %c0_80 = arith.constant 0 : index
    %c0_81 = arith.constant 0 : index
    %156 = vector.load %arg9[%c2_79, %c0_80, %c0_81] : memref<4x8x128xf32, #tpu.memory_space<vmem>>, vector<1x8x128xf32>
    %157 = vector.shape_cast %156 : vector<1x8x128xf32> to vector<8x128xf32>
    %158 = vector.broadcast %143 : vector<8x1xf32> to vector<8x128xf32>
    %159 = arith.mulf %158, %157 : vector<8x128xf32>
    %cst_82 = arith.constant dense<0.000000e+00> : vector<8x128xf32>
    %160 = tpu.matmul %146, %133, %cst_82 {dimension_numbers = #tpu.dot_dimension_numbers<[1], [0], [0], [1], [0, 0, 1, 1], [], []>} : vector<8x8xf32>, vector<8x128xf32>, vector<8x128xf32> -> vector<8x128xf32>
    %161 = arith.addf %159, %160 : vector<8x128xf32>
    %c2_83 = arith.constant 2 : index
    %c0_84 = arith.constant 0 : index
    %c0_85 = arith.constant 0 : index
    %162 = vector.load %arg9[%c2_83, %c0_84, %c0_85] : memref<4x8x128xf32, #tpu.memory_space<vmem>>, vector<1x8x128xf32>
    %163 = vector.shape_cast %162 : vector<1x8x128xf32> to vector<8x128xf32>
    %164 = vector.shape_cast %161 : vector<8x128xf32> to vector<1x8x128xf32>
    tpu.vector_store %arg9[%c2_83, %c0_84, %c0_85], %164 {strides = array<i32>} : memref<4x8x128xf32, #tpu.memory_space<vmem>>, vector<1x8x128xf32>,
    %c2_86 = arith.constant 2 : index
    %c0_87 = arith.constant 0 : index
    %c0_88 = arith.constant 0 : index
    %165 = vector.load %arg10[%c2_86, %c0_87, %c0_88] : memref<4x8x1xf32, #tpu.memory_space<vmem>>, vector<1x8x1xf32>
    %166 = vector.shape_cast %165 : vector<1x8x1xf32> to vector<8x1xf32>
    %167 = vector.shape_cast %141 : vector<8x1xf32> to vector<1x8x1xf32>
    tpu.vector_store %arg10[%c2_86, %c0_87, %c0_88], %167 {strides = array<i32>} : memref<4x8x1xf32, #tpu.memory_space<vmem>>, vector<1x8x1xf32>,
    %c0_89 = arith.constant 0 : index
    %c384 = arith.constant 384 : index
    %168 = vector.load %arg8[%c0_89, %c384] : memref<8x512xf32, #tpu.memory_space<vmem>>, vector<8x128xf32>
    %169 = vector.extract_strided_slice %56 {offsets = [0, 384], sizes = [8, 128], strides = [1, 1]} : vector<8x512xf32> to vector<8x128xf32>
    %170 = vector.extract_strided_slice %54 {offsets = [0, 384], sizes = [8, 128], strides = [1, 1]} : vector<8x512xf32> to vector<8x128xf32>
    %cst_90 = arith.constant dense<0.000000e+00> : vector<8x8xf32>
    %171 = tpu.matmul %168, %169, %cst_90 {dimension_numbers = #tpu.dot_dimension_numbers<[1], [1], [0], [0], [0, 0, 1, 0], [], []>} : vector<8x128xf32>, vector<8x128xf32>, vector<8x8xf32> -> vector<8x8xf32>
    %cst_91 = arith.constant 1.250000e-01 : f32
    %172 = vector.broadcast %cst_91 : f32 to vector<8x8xf32>
    %173 = arith.mulf %171, %172 : vector<8x8xf32>
    %c3 = arith.constant 3 : index
    %c0_92 = arith.constant 0 : index
    %c0_93 = arith.constant 0 : index
    %174 = vector.load %arg10[%c3, %c0_92, %c0_93] : memref<4x8x1xf32, #tpu.memory_space<vmem>>, vector<1x8x1xf32>
    %175 = vector.shape_cast %174 : vector<1x8x1xf32> to vector<8x1xf32>
    %cst_94 = arith.constant dense<0xFF800000> : vector<8xf32>
    %176 = vector.multi_reduction <maximumf>, %173, %cst_94 [1] : vector<8x8xf32> to vector<8xf32>
    %177 = vector.shape_cast %176 : vector<8xf32> to vector<8x1xf32>
    %178 = arith.maximumf %175, %177 : vector<8x1xf32>
    %179 = arith.subf %175, %178 : vector<8x1xf32>
    %180 = math.exp %179 : vector<8x1xf32>
    %181 = vector.broadcast %178 : vector<8x1xf32> to vector<8x8xf32>
    %182 = arith.subf %173, %181 : vector<8x8xf32>
    %183 = math.exp %182 : vector<8x8xf32>
    %c3_95 = arith.constant 3 : index
    %c0_96 = arith.constant 0 : index
    %c0_97 = arith.constant 0 : index
    %184 = vector.load %arg11[%c3_95, %c0_96, %c0_97] : memref<4x8x1xf32, #tpu.memory_space<vmem>>, vector<1x8x1xf32>
    %185 = vector.shape_cast %184 : vector<1x8x1xf32> to vector<8x1xf32>
    %186 = arith.mulf %180, %185 : vector<8x1xf32>
    %cst_98 = arith.constant dense<0.000000e+00> : vector<8xf32>
    %187 = vector.multi_reduction <add>, %183, %cst_98 [1] : vector<8x8xf32> to vector<8xf32>
    %188 = vector.shape_cast %187 : vector<8xf32> to vector<8x1xf32>
    %189 = arith.addf %186, %188 : vector<8x1xf32>
    %c3_99 = arith.constant 3 : index
    %c0_100 = arith.constant 0 : index
    %c0_101 = arith.constant 0 : index
    %190 = vector.load %arg11[%c3_99, %c0_100, %c0_101] : memref<4x8x1xf32, #tpu.memory_space<vmem>>, vector<1x8x1xf32>
    %191 = vector.shape_cast %190 : vector<1x8x1xf32> to vector<8x1xf32>
    %192 = vector.shape_cast %189 : vector<8x1xf32> to vector<1x8x1xf32>
    tpu.vector_store %arg11[%c3_99, %c0_100, %c0_101], %192 {strides = array<i32>} : memref<4x8x1xf32, #tpu.memory_space<vmem>>, vector<1x8x1xf32>,
    %c3_102 = arith.constant 3 : index
    %c0_103 = arith.constant 0 : index
    %c0_104 = arith.constant 0 : index
    %193 = vector.load %arg9[%c3_102, %c0_103, %c0_104] : memref<4x8x128xf32, #tpu.memory_space<vmem>>, vector<1x8x128xf32>
    %194 = vector.shape_cast %193 : vector<1x8x128xf32> to vector<8x128xf32>
    %195 = vector.broadcast %180 : vector<8x1xf32> to vector<8x128xf32>
    %196 = arith.mulf %195, %194 : vector<8x128xf32>
    %cst_105 = arith.constant dense<0.000000e+00> : vector<8x128xf32>
    %197 = tpu.matmul %183, %170, %cst_105 {dimension_numbers = #tpu.dot_dimension_numbers<[1], [0], [0], [1], [0, 0, 1, 1], [], []>} : vector<8x8xf32>, vector<8x128xf32>, vector<8x128xf32> -> vector<8x128xf32>
    %198 = arith.addf %196, %197 : vector<8x128xf32>
    %c3_106 = arith.constant 3 : index
    %c0_107 = arith.constant 0 : index
    %c0_108 = arith.constant 0 : index
    %199 = vector.load %arg9[%c3_106, %c0_107, %c0_108] : memref<4x8x128xf32, #tpu.memory_space<vmem>>, vector<1x8x128xf32>
    %200 = vector.shape_cast %199 : vector<1x8x128xf32> to vector<8x128xf32>
    %201 = vector.shape_cast %198 : vector<8x128xf32> to vector<1x8x128xf32>
    tpu.vector_store %arg9[%c3_106, %c0_107, %c0_108], %201 {strides = array<i32>} : memref<4x8x128xf32, #tpu.memory_space<vmem>>, vector<1x8x128xf32>,
    %c3_109 = arith.constant 3 : index
    %c0_110 = arith.constant 0 : index
    %c0_111 = arith.constant 0 : index
    %202 = vector.load %arg10[%c3_109, %c0_110, %c0_111] : memref<4x8x1xf32, #tpu.memory_space<vmem>>, vector<1x8x1xf32>
    %203 = vector.shape_cast %202 : vector<1x8x1xf32> to vector<8x1xf32>
    %204 = vector.shape_cast %178 : vector<8x1xf32> to vector<1x8x1xf32>
    tpu.vector_store %arg10[%c3_109, %c0_110, %c0_111], %204 {strides = array<i32>} : memref<4x8x1xf32, #tpu.memory_space<vmem>>, vector<1x8x1xf32>,
    %c0_i32_112 = arith.constant 0 : i32
    %205 = arith.cmpi eq, %arg2, %c0_i32_112 : i32
    %206 = arith.extui %205 : i1 to i32
    %c0_i32_113 = arith.constant 0 : i32
    %207 = arith.cmpi ne, %206, %c0_i32_113 : i32
    scf.if %207 {
      %c0_114 = arith.constant 0 : index
      %c0_115 = arith.constant 0 : index
      %c0_116 = arith.constant 0 : index
      %208 = vector.load %arg9[%c0_114, %c0_115, %c0_116] : memref<4x8x128xf32, #tpu.memory_space<vmem>>, vector<1x8x128xf32>
      %209 = vector.shape_cast %208 : vector<1x8x128xf32> to vector<8x128xf32>
      %c0_117 = arith.constant 0 : index
      %c0_118 = arith.constant 0 : index
      %c0_119 = arith.constant 0 : index
      %210 = vector.load %arg11[%c0_117, %c0_118, %c0_119] : memref<4x8x1xf32, #tpu.memory_space<vmem>>, vector<1x8x1xf32>
      %211 = vector.shape_cast %210 : vector<1x8x1xf32> to vector<8x1xf32>
      %212 = tpu.reciprocal %211 {approx = true} : vector<8x1xf32> -> vector<8x1xf32>
      %213 = vector.broadcast %212 : vector<8x1xf32> to vector<8x128xf32>
      %214 = arith.mulf %209, %213 : vector<8x128xf32>
      %c1_120 = arith.constant 1 : index
      %c0_121 = arith.constant 0 : index
      %c0_122 = arith.constant 0 : index
      %215 = vector.load %arg9[%c1_120, %c0_121, %c0_122] : memref<4x8x128xf32, #tpu.memory_space<vmem>>, vector<1x8x128xf32>
      %216 = vector.shape_cast %215 : vector<1x8x128xf32> to vector<8x128xf32>
      %c1_123 = arith.constant 1 : index
      %c0_124 = arith.constant 0 : index
      %c0_125 = arith.constant 0 : index
      %217 = vector.load %arg11[%c1_123, %c0_124, %c0_125] : memref<4x8x1xf32, #tpu.memory_space<vmem>>, vector<1x8x1xf32>
      %218 = vector.shape_cast %217 : vector<1x8x1xf32> to vector<8x1xf32>
      %219 = tpu.reciprocal %218 {approx = true} : vector<8x1xf32> -> vector<8x1xf32>
      %220 = vector.broadcast %219 : vector<8x1xf32> to vector<8x128xf32>
      %221 = arith.mulf %216, %220 : vector<8x128xf32>
      %c2_126 = arith.constant 2 : index
      %c0_127 = arith.constant 0 : index
      %c0_128 = arith.constant 0 : index
      %222 = vector.load %arg9[%c2_126, %c0_127, %c0_128] : memref<4x8x128xf32, #tpu.memory_space<vmem>>, vector<1x8x128xf32>
      %223 = vector.shape_cast %222 : vector<1x8x128xf32> to vector<8x128xf32>
      %c2_129 = arith.constant 2 : index
      %c0_130 = arith.constant 0 : index
      %c0_131 = arith.constant 0 : index
      %224 = vector.load %arg11[%c2_129, %c0_130, %c0_131] : memref<4x8x1xf32, #tpu.memory_space<vmem>>, vector<1x8x1xf32>
      %225 = vector.shape_cast %224 : vector<1x8x1xf32> to vector<8x1xf32>
      %226 = tpu.reciprocal %225 {approx = true} : vector<8x1xf32> -> vector<8x1xf32>
      %227 = vector.broadcast %226 : vector<8x1xf32> to vector<8x128xf32>
      %228 = arith.mulf %223, %227 : vector<8x128xf32>
      %c3_132 = arith.constant 3 : index
      %c0_133 = arith.constant 0 : index
      %c0_134 = arith.constant 0 : index
      %229 = vector.load %arg9[%c3_132, %c0_133, %c0_134] : memref<4x8x128xf32, #tpu.memory_space<vmem>>, vector<1x8x128xf32>
      %230 = vector.shape_cast %229 : vector<1x8x128xf32> to vector<8x128xf32>
      %c3_135 = arith.constant 3 : index
      %c0_136 = arith.constant 0 : index
      %c0_137 = arith.constant 0 : index
      %231 = vector.load %arg11[%c3_135, %c0_136, %c0_137] : memref<4x8x1xf32, #tpu.memory_space<vmem>>, vector<1x8x1xf32>
      %232 = vector.shape_cast %231 : vector<1x8x1xf32> to vector<8x1xf32>
      %233 = tpu.reciprocal %232 {approx = true} : vector<8x1xf32> -> vector<8x1xf32>
      %234 = vector.broadcast %233 : vector<8x1xf32> to vector<8x128xf32>
      %235 = arith.mulf %230, %234 : vector<8x128xf32>
      %236 = tpu.concatenate %214, %221, %228, %235 in 1 : vector<8x128xf32>, vector<8x128xf32>, vector<8x128xf32>, vector<8x128xf32> -> vector<8x512xf32>
      %c3_138 = arith.constant 3 : index
      %c0_139 = arith.constant 0 : index
      %c0_140 = arith.constant 0 : index
      %237 = vector.load %arg6[%c3_138, %c0_139, %c0_140] : memref<4x512x512xf32, #tpu.memory_space<vmem>>, vector<1x512x512xf32>
      %238 = vector.shape_cast %237 : vector<1x512x512xf32> to vector<512x512xf32>
      %cst_141 = arith.constant dense<0.000000e+00> : vector<8x512xf32>
      %239 = tpu.matmul %236, %238, %cst_141 {dimension_numbers = #tpu.dot_dimension_numbers<[1], [0], [0], [1], [0, 0, 1, 1], [], []>} : vector<8x512xf32>, vector<512x512xf32>, vector<8x512xf32> -> vector<8x512xf32>
      %c0_142 = arith.constant 0 : index
      %c0_143 = arith.constant 0 : index
      %c0_144 = arith.constant 0 : index
      %240 = vector.load %arg7[%c0_142, %c0_143, %c0_144] : memref<1x8x512xf32, #tpu.memory_space<vmem>>, vector<1x8x512xf32>
      %241 = vector.shape_cast %240 : vector<1x8x512xf32> to vector<8x512xf32>
      %242 = vector.shape_cast %239 : vector<8x512xf32> to vector<1x8x512xf32>
      tpu.vector_store %arg7[%c0_142, %c0_143, %c0_144], %242 {strides = array<i32>} : memref<1x8x512xf32, #tpu.memory_space<vmem>>, vector<1x8x512xf32>,
    } else {
    }
    return
  }
  func.func @transform_0(%arg0: i32, %arg1: i32, %arg2: i32) -> (i32, i32, i32) {
    %c0_i32 = arith.constant 0 : i32
    %c0_i32_0 = arith.constant 0 : i32
    return %arg0, %arg1, %c0_i32 : i32, i32, i32
  }
  func.func @transform_1(%arg0: i32, %arg1: i32, %arg2: i32) -> (i32, i32, i32) {
    %c0_i32 = arith.constant 0 : i32
    %c0_i32_0 = arith.constant 0 : i32
    return %arg0, %arg2, %c0_i32 : i32, i32, i32
  }
  func.func @transform_2(%arg0: i32, %arg1: i32, %arg2: i32) -> (i32, i32, i32) {
    %c0_i32 = arith.constant 0 : i32
    %c0_i32_0 = arith.constant 0 : i32
    return %arg0, %arg2, %c0_i32 : i32, i32, i32
  }
  func.func @transform_3(%arg0: i32, %arg1: i32, %arg2: i32) -> (i32, i32, i32) {
    %c0_i32 = arith.constant 0 : i32
    %c0_i32_0 = arith.constant 0 : i32
    %c0_i32_1 = arith.constant 0 : i32
    %c0_i32_2 = arith.constant 0 : i32
    return %c0_i32, %c0_i32_0, %c0_i32_1 : i32, i32, i32
  }
  func.func @transform_4(%arg0: i32, %arg1: i32, %arg2: i32) -> (i32, i32, i32) {
    %c0_i32 = arith.constant 0 : i32
    %c0_i32_0 = arith.constant 0 : i32
    return %arg0, %arg1, %c0_i32 : i32, i32, i32
  }
}

</mosaic_0001>

<bundles_post_ra>
// kernel: tpu_custom_call.1
= control target key start
LH: loop header
LB: loop body
LE: loop exit
PB: predicated region body
PF: predicated region fallthrough
CT: control target
= control target key end

     0   :  { %s4450_s0 = inlined_call_operand.hbm [shape: f32[2,8,512], index: 0, kind: input, shape index: {}]   ;;  %s4451_s1 = inlined_call_operand.hbm [shape: f32[2,8,512], index: 1, kind: input, shape index: {}]   ;;  %s4452_s2 = inlined_call_operand.hbm [shape: f32[2,8,512], index: 2, kind: input, shape index: {}]   ;;  %s4453_s3 = inlined_call_operand.hbm [shape: f32[4,512,512], index: 3, kind: input, shape index: {}]   ;;  %s4454_s4 = inlined_call_operand.hbm [shape: f32[2,8,512], index: 4, kind: output, shape index: {}]  }
   0x1   :  { %4460 = sst [smem:[#allocation23_spill]] %s4451_s1 }
   0x2   :  { %4461 = sst [smem:[#allocation24_spill]] %s4453_s3 }
   0x3   :  { %9 = vsyncpa [#allocation7], 0 }
   0x4   :  { %11 = vsyncpa [#allocation7 + $0x1], 0 }
   0x5   :  { %12 = vsyncpa [#allocation10], 0 }
   0x6   :  { %14 = vsyncpa [#allocation10 + $0x1], 0 }
   0x7   :  { %15 = vsyncpa [#allocation13], 0 }
   0x8   :  { %16 = vsyncpa [#allocation8], 0 }
   0x9   :  { %18 = vsyncpa [#allocation8 + $0x1], 0  ;;  %s3738_s15 = smov 0   ;;  %s3740_s16 = smov 0  }
   0xa   :  { %s3742_s17 = smov 0   ;;  %s3744_s18 = smov 0  }
   0xb   :  { %s3746_s19 = smov 0   ;;  %s3748_s20 = smov 0  }
   0xc LB: > { %4462 = sst [smem:[#allocation19_spill]] %s3701_s19  ;;  %s3769_s21 = sadd.s32 4294967295, %s3705_s20   ;;  %s3705_s20 = sphi %s3748_s20, %s24_s20   ;;  %s3701_s19 = sphi %s3746_s19, %s4534_s19   ;;  %s3697_s18 = sphi %s3744_s18, %s4533_s18   ;;  %s3693_s17 = sphi %s3742_s17, %s4537_s17   ;;  %s3689_s16 = sphi %s3740_s16, %s4536_s16   ;;  %s3685_s15 = sphi %s3738_s15, %s4535_s15  }
   0xd   : > { %4463 = sst [smem:[#allocation20_spill]] %s3705_s20  ;;  %s3344_s22 = sadd.s32 4294967294, %s3705_s20  }
   0xe   : > { %s43_s23 = sadd.s32 1, %s3701_s19  ;;  %s52_s24 = sadd.s32 1, %s3693_s17 }
   0xf   : > { %p45_p0 = scmp.ge.s32.totalorder %s43_s23, 2  ;;  %p59_p1 = scmp.ne.s32.totalorder %s3693_s17, %s3689_s16 }
  0x10   : > { %p60_p2 = scmp.eq.s32.totalorder %s3705_s20, 0  ;;  %p65_p3 = scmp.ne.s32.totalorder %s3689_s16, %s3685_s15 }
  0x11   : > { %s4539_s23 = smov (%p45_p0, %s43_s23), 0  ;;  %p168_p5 = scmp.eq.s32.totalorder %s3769_s21, 1 }
  0x12   : > { %4464 = sst [smem:[#allocation21_spill]] %s4539_s23  ;;  %p3781_p4 = por %p60_p2, %p59_p1 }
  0x13   : > { %s47_s26 = ssub.s32 %s3701_s19, %s4539_s23  ;;  %p174_p6 = scmp.eq.s32.totalorder %s3344_s22, 1 }
  0x14   : > { %p50_p7 = scmp.eq.s32.totalorder %s47_s26, 0  ;;  %p3788_p8 = por %p168_p5, %p59_p1 }
  0x15   : > { %p3795_p9 = por %p174_p6, %p65_p3  ;;  %p3347_p10 = scmp.ge.s32.totalorder %s3705_s20, 2 }
  0x16   : > { %s3800_s29 = scalar_select %p50_p7, %s3693_s17, %s52_s24  }
  0x17   : > { %p3411_p11 = scmp.lt.s32.totalorder %s3705_s20, 2  ;;  %s4455_s30 = sand.u32 1, %s3693_s17  }
  0x18   : > { %4468 = sst [smem:[#allocation22_spill]] %s3800_s29  ;;  %s3806_s5 = sshll.u32 %s3701_s19, 5 }
  0x19   : > { %s3810_s6 = sshll.u32 %s4455_s30, 5  ;;  %p3814_p12 = pnand %p3411_p11, %p3781_p4 }
  0x1a   : > { %s230_s8 = sand.u32 1, %s3705_s20   ;;  %s4470_s1 = sld [smem:[#allocation23_spill]] }
  0x1b   : > { %s234_s12 = scalar_lea.vmem [#allocation9], %s3810_s6  ;;  %s3824_s22 = scalar_lea.sflag [#allocation10], %s230_s8 }
  0x1c   : > { %s245_s13 = sshll.u32 %s234_s12, 4  ;;  %p66_p13 = scmp.eq.s32.totalorder %s3769_s21, 0  ;;  %s246_s13 = int_to_ptr.vmem [resolvable:$true] %s245_s13 }
  0x1d   : > { %p3345_p0 = scmp.ge.s32.totalorder %s3705_s20, 1  ;;  %p181_p1 = scmp.lt.s32.totalorder %s3705_s20, 3 }
  0x1e   : > { %p3837_p2 = por %p66_p13, %p65_p3  ;;  %s4472_s3 = sld [smem:[#allocation24_spill]] }
  0x1f   : > { %p3844_p4 = pnand %p3345_p0, %p181_p1  ;;  %s3707_s10 = smov [#allocation12]  }
  0x20   : > { %s241_s11 = scalar_lea.hbm %s4470_s1, %s3806_s5  ;;  %s3708_s26 = smov 512  }
  0x21   : > { %s243_s14 = sshll.u32 %s241_s11, 4  ;;  %p3392_p5 = pneg %p3844_p4  ;;  %s244_s14 = int_to_ptr.hbm [resolvable:$true] %s243_s14 }
  0x22   : > { %3402 = dma.hbm_to_vmem [thread:$0]  (!%p3814_p12), %s244_s14, 512, %s246_s13, %s3824_s22  }
  0x23   : > { %s194_s11 = sshll.u32 %s3707_s10, 4  ;;  %p3393_p3 = pnand %p3392_p5, %p66_p13  ;;  %s195_s11 = int_to_ptr.vmem [resolvable:$true] %s194_s11 }
  0x24   : > { %s192_s9 = sshll.u32 %s4472_s3, 4  ;;  %s219_s14 = scalar_lea.hbm %s4450_s0, %s3806_s5  ;;  %s193_s9 = int_to_ptr.hbm [resolvable:$true] %s192_s9 }
  0x25   : > { %s221_s25 = sshll.u32 %s219_s14, 4  ;;  %s3709_s30 = smov 32   ;;  %s222_s25 = int_to_ptr.hbm [resolvable:$true] %s221_s25 }
  0x26   : > { %3395 = dma.hbm_to_vmem [thread:$0]  (!%p3393_p3), %s193_s9, 131072, %s195_s11, [#allocation13], %s3708_s26, %s3708_s26, %s3709_s30  }
  0x27   : > { %s212_s1 = scalar_lea.vmem [#allocation6], %s3810_s6  ;;  %s4474_s23 = sand.u32 1, %s3693_s17  }
  0x28   : > { %s223_s3 = sshll.u32 %s212_s1, 4  ;;  %s209_s19 = scalar_lea.sflag [#allocation7], %s4474_s23  ;;  %s224_s3 = int_to_ptr.vmem [resolvable:$true] %s223_s3 }
  0x29   : > { %3399 = dma.hbm_to_vmem [thread:$0]  (!%p3814_p12), %s222_s25, 512, %s224_s3, %s209_s19  }
  0x2a   : > { %s263_s20 = scalar_lea.hbm %s4452_s2, %s3806_s5  ;;  %s256_s12 = scalar_lea.vmem [#allocation11], %s3810_s6 }
  0x2b   : > { %s267_s13 = sshll.u32 %s256_s12, 4  ;;  %s265_s14 = sshll.u32 %s263_s20, 4  ;;  %s268_s13 = int_to_ptr.vmem [resolvable:$true] %s267_s13  ;;  %s266_s14 = int_to_ptr.hbm [resolvable:$true] %s265_s14 }
  0x2c   : > { %3405 = dma.hbm_to_vmem [thread:$0]  (!%p3814_p12), %s266_s14, 512, %s268_s13, %s3824_s22  }
  0x2d   : > { %276 = sbr.rel (%p3844_p4) target bundleno = 1356 (0x54c), region = 36  ;;  %s3872_s1 = sand.u32 (!%p3844_p4), 1, %s3689_s16  }
  0x2e   : > { %s3875_s3 = sshll.u32 (!%p3844_p4), %s3872_s1, 5  ;;  %s279_s19 = scalar_lea.sflag (!%p3844_p4), [#allocation7], %s3872_s1 }
  0x2f   : > { %s3879_s23 = scalar_lea.vmem (!%p3844_p4), [#allocation6], %s3875_s3 }
  0x32   : > { %3668 = dma.done.wait (%p3837_p2), %s279_s19, 512  }
  0x33   : > { %3670 = vsyncadd (%p3837_p2), %s279_s19, 4294966784  ;;  %s288_s20 = sand.u32 1, %s3769_s21   ;;  %s3887_s30 = scalar_lea.vmem [#allocation9], %s3875_s3 }
  0x34   : > { %s289_s29 = scalar_lea.sflag [#allocation10], %s288_s20 }
  0x35   : > { %3672 = dma.done.wait (%p3837_p2), %s289_s29, 1024  }
  0x36   : > { %3674 = vsyncadd (%p3837_p2), %s289_s29, 4294966272  ;;  %s3894_s5 = scalar_lea.vmem [#allocation11], %s3875_s3 }
  0x37   : > { %3676 = dma.done.wait (%p66_p13), [#allocation13], 131072  }
  0x38   : > { %3678 = vsyncadd (%p66_p13), [#allocation13], 4294836224  ;;  %v532_v0 = vld [vmem:[#allocation12 + $0x1e0] sm:$0xff]  ;;  %v533_v61 = vld [vmem:[#allocation12 + $0x1e8] sm:$0xff]  ;;  %s4405_s21 = scalar_lea.vmem [#allocation14], %s3875_s3  ;;  %s3379_s6 = sshll.u32 %s3697_s18, 5 }
  0x39   : > { %v660_v1 = vld [vmem:[#allocation12 + $0x5e0] sm:$0xff]  ;;  %728 = vmatpush.msra.mxu0 %v532_v0  ;;  %v661_v62 = vld [vmem:[#allocation12 + $0x5e8] sm:$0xff]  ;;  %s3192_s24 = scalar_lea.hbm %s4454_s4, %s3379_s6  ;;  %s3194_s9 = sshll.u32 %s4405_s21, 4  ;;  %s3195_s9 = int_to_ptr.vmem [resolvable:$true] %s3194_s9 }
  0x3a   : > { %v528_v2 = vld [vmem:[#allocation12 + $0x1c0] sm:$0xff]  ;;  %768 = vmatpush.msra.mxu2 %v660_v1  ;;  %v529_v1 = vld [vmem:[#allocation12 + $0x1c8] sm:$0xff]  ;;  %s3196_s8 = sshll.u32 %s3192_s24, 4  ;;  %s3179_s11 = scalar_lea.sflag [#allocation8], %s3872_s1  ;;  %s3197_s8 = int_to_ptr.hbm [resolvable:$true] %s3196_s8 }
  0x3b   : > { %v656_v3 = vld [vmem:[#allocation12 + $0x5c0] sm:$0xff]  ;;  %729 = vmatpush.msra.mxu0 %v528_v2  ;;  %v657_v2 = vld [vmem:[#allocation12 + $0x5c8] sm:$0xff]  ;;  %s3629_s25 = sshra.s32 %s3197_s8, 4  ;;  %s3635_s12 = scalar_lea.hbm %s4454_s4, 64  ;;  %s3630_s25 = int_to_ptr.hbm [resolvable:$true] %s3629_s25 }
  0x3c   : > { %v724_v4 = vld [vmem:[#allocation12 + $0x7e0] sm:$0xff]  ;;  %769 = vmatpush.msra.mxu2 %v656_v3  ;;  %v725_v3 = vld [vmem:[#allocation12 + $0x7e8] sm:$0xff]  ;;  %s3631_s18 = scalar_lea.hbm %s3630_s25, 32  ;;  %p3636_p12 = scmp.lt.s32.totalorder %s3630_s25, %s4454_s4 }
  0x3d   : > { %v524_v5 = vld [vmem:[#allocation12 + $0x1a0] sm:$0xff]  ;;  %788 = vmatpush.msra.mxu3 %v724_v4  ;;  %p3632_p6 = scmp.ne.s32.totalorder %s3630_s25, %s3631_s18  ;;  %p3637_p13 = scmp.lt.s32.totalorder %s3635_s12, %s3631_s18 }
  0x3e   : > { %v596_v6 = vld [vmem:[#allocation12 + $0x3e0] sm:$0xff]  ;;  %730 = vmatpush.msra.mxu0 %v524_v5  ;;  %v525_v5 = vld [vmem:[#allocation12 + $0x1a8] sm:$0xff] }
  0x3f   : > { %v652_v7 = vld [vmem:[#allocation12 + $0x5a0] sm:$0xff]  ;;  %748 = vmatpush.msra.mxu1 %v596_v6  ;;  %v597_v6 = vld [vmem:[#allocation12 + $0x3e8] sm:$0xff]  ;;  %p3633_p7 = pnand %p3632_p6, %p3788_p8  ;;  %p3638_p0 = por %p3637_p13, %p3636_p12 }
  0x40   : > { %v720_v8 = vld [vmem:[#allocation12 + $0x7c0] sm:$0xff]  ;;  %770 = vmatpush.msra.mxu2 %v652_v7  ;;  %v653_v7 = vld [vmem:[#allocation12 + $0x5a8] sm:$0xff] }
  0x41   : > { %v592_v9 = vld [vmem:[#allocation12 + $0x3c0] sm:$0xff]  ;;  %789 = vmatpush.msra.mxu3 %v720_v8  ;;  %v721_v8 = vld [vmem:[#allocation12 + $0x7c8] sm:$0xff]  ;;  %p3634_p11 = pneg %p3633_p7 }
  0x42   : > { %v520_v10 = vld [vmem:[#allocation12 + $0x180] sm:$0xff]  ;;  %749 = vmatpush.msra.mxu1 %v592_v9  ;;  %v521_v9 = vld [vmem:[#allocation12 + $0x188] sm:$0xff] }
  0x43   : > { %v648_v11 = vld [vmem:[#allocation12 + $0x580] sm:$0xff]  ;;  %731 = vmatpush.msra.mxu0 %v520_v10  ;;  %v593_v10 = vld [vmem:[#allocation12 + $0x3c8] sm:$0xff]  ;;  %p3639_p1 = pnand %p3638_p0, %p3634_p11 }
  0x44   : > { %v716_v12 = vld [vmem:[#allocation12 + $0x7a0] sm:$0xff]  ;;  %771 = vmatpush.msra.mxu2 %v648_v11  ;;  %v649_v11 = vld [vmem:[#allocation12 + $0x588] sm:$0xff] }
  0x45   : > { %v588_v13 = vld [vmem:[#allocation12 + $0x3a0] sm:$0xff]  ;;  %790 = vmatpush.msra.mxu3 %v716_v12  ;;  %v717_v12 = vld [vmem:[#allocation12 + $0x7a8] sm:$0xff] }
  0x46   : > { %v712_v14 = vld [vmem:[#allocation12 + $0x780] sm:$0xff]  ;;  %750 = vmatpush.msra.mxu1 %v588_v13  ;;  %v517_v13 = vld [vmem:[#allocation12 + $0x168] sm:$0xff] }
  0x47   : > { %v516_v15 = vld [vmem:[#allocation12 + $0x160] sm:$0xff]  ;;  %791 = vmatpush.msra.mxu3 %v712_v14  ;;  %v589_v14 = vld [vmem:[#allocation12 + $0x3a8] sm:$0xff] }
  0x48   : > { %v644_v16 = vld [vmem:[#allocation12 + $0x560] sm:$0xff]  ;;  %732 = vmatpush.msra.mxu0 %v516_v15  ;;  %v645_v15 = vld [vmem:[#allocation12 + $0x568] sm:$0xff] }
  0x49   : > { %v584_v17 = vld [vmem:[#allocation12 + $0x380] sm:$0xff]  ;;  %772 = vmatpush.msra.mxu2 %v644_v16  ;;  %v713_v16 = vld [vmem:[#allocation12 + $0x788] sm:$0xff] }
  0x4a   : > { %v708_v18 = vld [vmem:[#allocation12 + $0x760] sm:$0xff]  ;;  %751 = vmatpush.msra.mxu1 %v584_v17  ;;  %v513_v17 = vld [vmem:[#allocation12 + $0x148] sm:$0xff] }
  0x4b   : > { %v512_v19 = vld [vmem:[#allocation12 + $0x140] sm:$0xff]  ;;  %792 = vmatpush.msra.mxu3 %v708_v18  ;;  %v585_v18 = vld [vmem:[#allocation12 + $0x388] sm:$0xff] }
  0x4c   : > { %v640_v20 = vld [vmem:[#allocation12 + $0x540] sm:$0xff]  ;;  %733 = vmatpush.msra.mxu0 %v512_v19  ;;  %v641_v19 = vld [vmem:[#allocation12 + $0x548] sm:$0xff] }
  0x4d   : > { %v580_v21 = vld [vmem:[#allocation12 + $0x360] sm:$0xff]  ;;  %773 = vmatpush.msra.mxu2 %v640_v20  ;;  %v709_v20 = vld [vmem:[#allocation12 + $0x768] sm:$0xff] }
  0x4e   : > { %v704_v22 = vld [vmem:[#allocation12 + $0x740] sm:$0xff]  ;;  %752 = vmatpush.msra.mxu1 %v580_v21  ;;  %v509_v21 = vld [vmem:[#allocation12 + $0x128] sm:$0xff] }
  0x4f   : > { %v508_v23 = vld [vmem:[#allocation12 + $0x120] sm:$0xff]  ;;  %793 = vmatpush.msra.mxu3 %v704_v22  ;;  %v581_v22 = vld [vmem:[#allocation12 + $0x368] sm:$0xff] }
  0x50   : > { %v636_v24 = vld [vmem:[#allocation12 + $0x520] sm:$0xff]  ;;  %734 = vmatpush.msra.mxu0 %v508_v23  ;;  %v637_v23 = vld [vmem:[#allocation12 + $0x528] sm:$0xff] }
  0x51   : > { %v576_v25 = vld [vmem:[#allocation12 + $0x340] sm:$0xff]  ;;  %774 = vmatpush.msra.mxu2 %v636_v24  ;;  %v705_v24 = vld [vmem:[#allocation12 + $0x748] sm:$0xff] }
  0x52   : > { %v700_v26 = vld [vmem:[#allocation12 + $0x720] sm:$0xff]  ;;  %753 = vmatpush.msra.mxu1 %v576_v25  ;;  %v505_v25 = vld [vmem:[#allocation12 + $0x108] sm:$0xff] }
  0x53   : > { %v504_v27 = vld [vmem:[#allocation12 + $0x100] sm:$0xff]  ;;  %794 = vmatpush.msra.mxu3 %v700_v26  ;;  %v577_v26 = vld [vmem:[#allocation12 + $0x348] sm:$0xff] }
  0x54   : > { %v632_v28 = vld [vmem:[#allocation12 + $0x500] sm:$0xff]  ;;  %735 = vmatpush.msra.mxu0 %v504_v27  ;;  %v633_v27 = vld [vmem:[#allocation12 + $0x508] sm:$0xff] }
  0x55   : > { %v572_v29 = vld [vmem:[#allocation12 + $0x320] sm:$0xff]  ;;  %775 = vmatpush.msra.mxu2 %v632_v28  ;;  %v701_v28 = vld [vmem:[#allocation12 + $0x728] sm:$0xff] }
  0x56   : > { %v696_v30 = vld [vmem:[#allocation12 + $0x700] sm:$0xff]  ;;  %754 = vmatpush.msra.mxu1 %v572_v29  ;;  %v501_v29 = vld [vmem:[#allocation12 + $0xe8] sm:$0xff] }
  0x57   : > { %v500_v31 = vld [vmem:[#allocation12 + $0xe0] sm:$0xff]  ;;  %795 = vmatpush.msra.mxu3 %v696_v30  ;;  %v573_v30 = vld [vmem:[#allocation12 + $0x328] sm:$0xff] }
  0x58   : > { %v628_v32 = vld [vmem:[#allocation12 + $0x4e0] sm:$0xff]  ;;  %736 = vmatpush.msra.mxu0 %v500_v31  ;;  %v629_v31 = vld [vmem:[#allocation12 + $0x4e8] sm:$0xff] }
  0x59   : > { %v568_v33 = vld [vmem:[#allocation12 + $0x300] sm:$0xff]  ;;  %776 = vmatpush.msra.mxu2 %v628_v32  ;;  %v697_v32 = vld [vmem:[#allocation12 + $0x708] sm:$0xff] }
  0x5a   : > { %v692_v34 = vld [vmem:[#allocation12 + $0x6e0] sm:$0xff]  ;;  %755 = vmatpush.msra.mxu1 %v568_v33  ;;  %v497_v33 = vld [vmem:[#allocation12 + $0xc8] sm:$0xff] }
  0x5b   : > { %v496_v35 = vld [vmem:[#allocation12 + $0xc0] sm:$0xff]  ;;  %796 = vmatpush.msra.mxu3 %v692_v34  ;;  %v569_v34 = vld [vmem:[#allocation12 + $0x308] sm:$0xff] }
  0x5c   : > { %v624_v36 = vld [vmem:[#allocation12 + $0x4c0] sm:$0xff]  ;;  %737 = vmatpush.msra.mxu0 %v496_v35  ;;  %v625_v35 = vld [vmem:[#allocation12 + $0x4c8] sm:$0xff] }
  0x5d   : > { %v564_v37 = vld [vmem:[#allocation12 + $0x2e0] sm:$0xff]  ;;  %777 = vmatpush.msra.mxu2 %v624_v36  ;;  %v693_v36 = vld [vmem:[#allocation12 + $0x6e8] sm:$0xff] }
  0x5e   : > { %v688_v38 = vld [vmem:[#allocation12 + $0x6c0] sm:$0xff]  ;;  %756 = vmatpush.msra.mxu1 %v564_v37  ;;  %v493_v37 = vld [vmem:[#allocation12 + $0xa8] sm:$0xff] }
  0x5f   : > { %v492_v39 = vld [vmem:[#allocation12 + $0xa0] sm:$0xff]  ;;  %797 = vmatpush.msra.mxu3 %v688_v38  ;;  %v565_v38 = vld [vmem:[#allocation12 + $0x2e8] sm:$0xff] }
  0x60   : > { %v620_v40 = vld [vmem:[#allocation12 + $0x4a0] sm:$0xff]  ;;  %738 = vmatpush.msra.mxu0 %v492_v39  ;;  %v621_v39 = vld [vmem:[#allocation12 + $0x4a8] sm:$0xff] }
  0x61   : > { %v560_v41 = vld [vmem:[#allocation12 + $0x2c0] sm:$0xff]  ;;  %778 = vmatpush.msra.mxu2 %v620_v40  ;;  %v689_v40 = vld [vmem:[#allocation12 + $0x6c8] sm:$0xff] }
  0x62   : > { %v684_v42 = vld [vmem:[#allocation12 + $0x6a0] sm:$0xff]  ;;  %757 = vmatpush.msra.mxu1 %v560_v41  ;;  %v489_v41 = vld [vmem:[#allocation12 + $0x88] sm:$0xff] }
  0x63   : > { %v488_v43 = vld [vmem:[#allocation12 + $0x80] sm:$0xff]  ;;  %798 = vmatpush.msra.mxu3 %v684_v42  ;;  %v561_v42 = vld [vmem:[#allocation12 + $0x2c8] sm:$0xff] }
  0x64   : > { %v616_v44 = vld [vmem:[#allocation12 + $0x480] sm:$0xff]  ;;  %739 = vmatpush.msra.mxu0 %v488_v43  ;;  %v617_v43 = vld [vmem:[#allocation12 + $0x488] sm:$0xff] }
  0x65   : > { %v556_v45 = vld [vmem:[#allocation12 + $0x2a0] sm:$0xff]  ;;  %779 = vmatpush.msra.mxu2 %v616_v44  ;;  %v685_v44 = vld [vmem:[#allocation12 + $0x6a8] sm:$0xff] }
  0x66   : > { %v680_v46 = vld [vmem:[#allocation12 + $0x680] sm:$0xff]  ;;  %758 = vmatpush.msra.mxu1 %v556_v45  ;;  %v485_v45 = vld [vmem:[#allocation12 + $0x68] sm:$0xff] }
  0x67   : > { %v484_v47 = vld [vmem:[#allocation12 + $0x60] sm:$0xff]  ;;  %799 = vmatpush.msra.mxu3 %v680_v46  ;;  %v557_v46 = vld [vmem:[#allocation12 + $0x2a8] sm:$0xff] }
  0x68   : > { %v612_v48 = vld [vmem:[#allocation12 + $0x460] sm:$0xff]  ;;  %740 = vmatpush.msra.mxu0 %v484_v47  ;;  %v613_v47 = vld [vmem:[#allocation12 + $0x468] sm:$0xff] }
  0x69   : > { %v552_v49 = vld [vmem:[#allocation12 + $0x280] sm:$0xff]  ;;  %780 = vmatpush.msra.mxu2 %v612_v48  ;;  %v681_v48 = vld [vmem:[#allocation12 + $0x688] sm:$0xff] }
  0x6a   : > { %v676_v50 = vld [vmem:[#allocation12 + $0x660] sm:$0xff]  ;;  %759 = vmatpush.msra.mxu1 %v552_v49  ;;  %v481_v49 = vld [vmem:[#allocation12 + $0x48] sm:$0xff] }
  0x6b   : > { %v480_v51 = vld [vmem:[#allocation12 + $0x40] sm:$0xff]  ;;  %800 = vmatpush.msra.mxu3 %v676_v50  ;;  %v553_v50 = vld [vmem:[#allocation12 + $0x288] sm:$0xff] }
  0x6c   : > { %v608_v52 = vld [vmem:[#allocation12 + $0x440] sm:$0xff]  ;;  %741 = vmatpush.msra.mxu0 %v480_v51  ;;  %v609_v51 = vld [vmem:[#allocation12 + $0x448] sm:$0xff] }
  0x6d   : > { %v548_v53 = vld [vmem:[#allocation12 + $0x260] sm:$0xff]  ;;  %781 = vmatpush.msra.mxu2 %v608_v52  ;;  %v677_v52 = vld [vmem:[#allocation12 + $0x668] sm:$0xff] }
  0x6e   : > { %v672_v54 = vld [vmem:[#allocation12 + $0x640] sm:$0xff]  ;;  %760 = vmatpush.msra.mxu1 %v548_v53  ;;  %v477_v53 = vld [vmem:[#allocation12 + $0x28] sm:$0xff] }
  0x6f   : > { %v476_v55 = vld [vmem:[#allocation12 + $0x20] sm:$0xff]  ;;  %801 = vmatpush.msra.mxu3 %v672_v54  ;;  %v549_v54 = vld [vmem:[#allocation12 + $0x268] sm:$0xff] }
  0x70   : > { %v604_v56 = vld [vmem:[#allocation12 + $0x420] sm:$0xff]  ;;  %742 = vmatpush.msra.mxu0 %v476_v55  ;;  %v605_v55 = vld [vmem:[#allocation12 + $0x428] sm:$0xff] }
  0x71   : > { %v544_v57 = vld [vmem:[#allocation12 + $0x240] sm:$0xff]  ;;  %782 = vmatpush.msra.mxu2 %v604_v56  ;;  %v673_v56 = vld [vmem:[#allocation12 + $0x648] sm:$0xff] }
  0x72   : > { %v668_v58 = vld [vmem:[#allocation12 + $0x620] sm:$0xff]  ;;  %761 = vmatpush.msra.mxu1 %v544_v57  ;;  %v473_v57 = vld [vmem:[#allocation12 + $0x8] sm:$0xff] }
  0x73   : > { %v472_v59 = vld [vmem:[#allocation12] sm:$0xff]  ;;  %802 = vmatpush.msra.mxu3 %v668_v58  ;;  %v545_v58 = vld [vmem:[#allocation12 + $0x248] sm:$0xff] }
  0x74   : > { %v600_v60 = vld [vmem:[#allocation12 + $0x400] sm:$0xff]  ;;  %743 = vmatpush.msra.mxu0 %v472_v59  ;;  %v601_v59 = vld [vmem:[#allocation12 + $0x408] sm:$0xff] }
  0x75   : > { %v540_v63 = vld [vmem:[#allocation12 + $0x220] sm:$0xff]  ;;  %783 = vmatpush.msra.mxu2 %v600_v60  ;;  %v669_v60 = vld [vmem:[#allocation12 + $0x628] sm:$0xff] }
  0x76   : > { %v664_v0 = vld [vmem:[#allocation12 + $0x600] sm:$0xff]  ;;  %808 = vmatpush.msrb.mxu0 %v533_v61  ;;  %762 = vmatpush.msra.mxu1 %v540_v63  ;;  %v534_v63 = vld [vmem:[#allocation12 + $0x1f0] sm:$0xff] }
  0x77   : > { %848 = vmatpush.msrb.mxu2 %v661_v62  ;;  %v536_v4 = vld [vmem:[#allocation12 + $0x200] sm:$0xff]  ;;  %803 = vmatpush.msra.mxu3 %v664_v0  ;;  %v3904_v62 = vld [vmem:[%s3879_s23 + $0x10] sm:$0xff] }
  0x78   : > { %809 = vmatpush.msrb.mxu0 %v529_v1  ;;  %763 = vmatpush.msra.mxu1 %v536_v4  ;;  %v3901_v61 = vld [vmem:[%s3879_s23] sm:$0xff]  ;;  %v662_v0 = vld [vmem:[#allocation12 + $0x5f0] sm:$0xff]  ;;  %v541_v1 = vld [vmem:[#allocation12 + $0x228] sm:$0xff] }
  0x79   : > { %849 = vmatpush.msrb.mxu2 %v657_v2  ;;  %868 = vmatpush.msrb.mxu3 %v725_v3  ;;  %v665_v2 = vld [vmem:[#allocation12 + $0x608] sm:$0xff]  ;;  %v3909_v3 = vld [vmem:[%s3879_s23 + $0x18] sm:$0xff]  ;;  %v530_v4 = vld [vmem:[#allocation12 + $0x1d0] sm:$0xff] }
  0x7a   : > { %810 = vmatpush.msrb.mxu0 %v525_v5  ;;  %828 = vmatpush.msrb.mxu1 %v597_v6  ;;  %v658_v5 = vld [vmem:[#allocation12 + $0x5d0] sm:$0xff] }
  0x7b   : > { %850 = vmatpush.msrb.mxu2 %v653_v7  ;;  %869 = vmatpush.msrb.mxu3 %v721_v8  ;;  %v726_v6 = vld [vmem:[#allocation12 + $0x7f0] sm:$0xff]  ;;  %v537_v7 = vld [vmem:[#allocation12 + $0x208] sm:$0xff] }
  0x7c   : > { %811 = vmatpush.msrb.mxu0 %v521_v9  ;;  %829 = vmatpush.msrb.mxu1 %v593_v10  ;;  %v526_v8 = vld [vmem:[#allocation12 + $0x1b0] sm:$0xff]  ;;  %v3913_v9 = vld [vmem:[%s3879_s23 + $0x8] sm:$0xff] }
  0x7d   : > { %851 = vmatpush.msrb.mxu2 %v649_v11  ;;  %870 = vmatpush.msrb.mxu3 %v717_v12  ;;  %v654_v10 = vld [vmem:[#allocation12 + $0x5b0] sm:$0xff] }
  0x7e   : > { %812 = vmatpush.msrb.mxu0 %v517_v13  ;;  %830 = vmatpush.msrb.mxu1 %v589_v14  ;;  %v598_v11 = vld [vmem:[#allocation12 + $0x3f0] sm:$0xff] }
  0x7f   : > { %852 = vmatpush.msrb.mxu2 %v645_v15  ;;  %871 = vmatpush.msrb.mxu3 %v713_v16  ;;  %v722_v12 = vld [vmem:[#allocation12 + $0x7d0] sm:$0xff] }
  0x80   : > { %813 = vmatpush.msrb.mxu0 %v513_v17  ;;  %831 = vmatpush.msrb.mxu1 %v585_v18  ;;  %v522_v13 = vld [vmem:[#allocation12 + $0x190] sm:$0xff] }
  0x81   : > { %853 = vmatpush.msrb.mxu2 %v641_v19  ;;  %872 = vmatpush.msrb.mxu3 %v709_v20  ;;  %v650_v14 = vld [vmem:[#allocation12 + $0x590] sm:$0xff] }
  0x82   : > { %814 = vmatpush.msrb.mxu0 %v509_v21  ;;  %832 = vmatpush.msrb.mxu1 %v581_v22  ;;  %v594_v15 = vld [vmem:[#allocation12 + $0x3d0] sm:$0xff] }
  0x83   : > { %854 = vmatpush.msrb.mxu2 %v637_v23  ;;  %873 = vmatpush.msrb.mxu3 %v705_v24  ;;  %v718_v16 = vld [vmem:[#allocation12 + $0x7b0] sm:$0xff] }
  0x84   : > { %815 = vmatpush.msrb.mxu0 %v505_v25  ;;  %833 = vmatpush.msrb.mxu1 %v577_v26  ;;  %v518_v17 = vld [vmem:[#allocation12 + $0x170] sm:$0xff] }
  0x85   : > { %855 = vmatpush.msrb.mxu2 %v633_v27  ;;  %874 = vmatpush.msrb.mxu3 %v701_v28  ;;  %v646_v18 = vld [vmem:[#allocation12 + $0x570] sm:$0xff] }
  0x86   : > { %816 = vmatpush.msrb.mxu0 %v501_v29  ;;  %834 = vmatpush.msrb.mxu1 %v573_v30  ;;  %v590_v19 = vld [vmem:[#allocation12 + $0x3b0] sm:$0xff] }
  0x87   : > { %856 = vmatpush.msrb.mxu2 %v629_v31  ;;  %875 = vmatpush.msrb.mxu3 %v697_v32  ;;  %v714_v20 = vld [vmem:[#allocation12 + $0x790] sm:$0xff] }
  0x88   : > { %817 = vmatpush.msrb.mxu0 %v497_v33  ;;  %835 = vmatpush.msrb.mxu1 %v569_v34  ;;  %v514_v21 = vld [vmem:[#allocation12 + $0x150] sm:$0xff] }
  0x89   : > { %857 = vmatpush.msrb.mxu2 %v625_v35  ;;  %876 = vmatpush.msrb.mxu3 %v693_v36  ;;  %v642_v22 = vld [vmem:[#allocation12 + $0x550] sm:$0xff] }
  0x8a   : > { %818 = vmatpush.msrb.mxu0 %v493_v37  ;;  %836 = vmatpush.msrb.mxu1 %v565_v38  ;;  %v586_v23 = vld [vmem:[#allocation12 + $0x390] sm:$0xff] }
  0x8b   : > { %858 = vmatpush.msrb.mxu2 %v621_v39  ;;  %877 = vmatpush.msrb.mxu3 %v689_v40  ;;  %v710_v24 = vld [vmem:[#allocation12 + $0x770] sm:$0xff] }
  0x8c   : > { %819 = vmatpush.msrb.mxu0 %v489_v41  ;;  %837 = vmatpush.msrb.mxu1 %v561_v42  ;;  %v510_v25 = vld [vmem:[#allocation12 + $0x130] sm:$0xff] }
  0x8d   : > { %859 = vmatpush.msrb.mxu2 %v617_v43  ;;  %878 = vmatpush.msrb.mxu3 %v685_v44  ;;  %v638_v26 = vld [vmem:[#allocation12 + $0x530] sm:$0xff] }
  0x8e   : > { %820 = vmatpush.msrb.mxu0 %v485_v45  ;;  %838 = vmatpush.msrb.mxu1 %v557_v46  ;;  %v582_v27 = vld [vmem:[#allocation12 + $0x370] sm:$0xff] }
  0x8f   : > { %860 = vmatpush.msrb.mxu2 %v613_v47  ;;  %879 = vmatpush.msrb.mxu3 %v681_v48  ;;  %v706_v28 = vld [vmem:[#allocation12 + $0x750] sm:$0xff] }
  0x90   : > { %821 = vmatpush.msrb.mxu0 %v481_v49  ;;  %839 = vmatpush.msrb.mxu1 %v553_v50  ;;  %v506_v29 = vld [vmem:[#allocation12 + $0x110] sm:$0xff] }
  0x91   : > { %861 = vmatpush.msrb.mxu2 %v609_v51  ;;  %880 = vmatpush.msrb.mxu3 %v677_v52  ;;  %v634_v30 = vld [vmem:[#allocation12 + $0x510] sm:$0xff] }
  0x92   : > { %822 = vmatpush.msrb.mxu0 %v477_v53  ;;  %840 = vmatpush.msrb.mxu1 %v549_v54  ;;  %v578_v31 = vld [vmem:[#allocation12 + $0x350] sm:$0xff] }
  0x93   : > { %862 = vmatpush.msrb.mxu2 %v605_v55  ;;  %881 = vmatpush.msrb.mxu3 %v673_v56  ;;  %v702_v32 = vld [vmem:[#allocation12 + $0x730] sm:$0xff] }
  0x94   : > { %823 = vmatpush.msrb.mxu0 %v473_v57  ;;  %841 = vmatpush.msrb.mxu1 %v545_v58  ;;  %v502_v33 = vld [vmem:[#allocation12 + $0xf0] sm:$0xff] }
  0x95   : > { %863 = vmatpush.msrb.mxu2 %v601_v59  ;;  %882 = vmatpush.msrb.mxu3 %v669_v60  ;;  %v630_v34 = vld [vmem:[#allocation12 + $0x4f0] sm:$0xff] }
  0x96   : > { %744 = vmatmul.f32.vlgmr.msra.gmra.mxu0 %v3901_v61  ;;  %784 = vmatmul.f32.vlgmr.msra.gmra.mxu2 %v3904_v62  ;;  %v574_v35 = vld [vmem:[#allocation12 + $0x330] sm:$0xff] }
  0x97   : > { %888 = vmatpush.msra.mxu0 %v534_v63  ;;  %928 = vmatpush.msra.mxu2 %v662_v0  ;;  %v698_v36 = vld [vmem:[#allocation12 + $0x710] sm:$0xff] }
  0x98   : > { %842 = vmatpush.msrb.mxu1 %v541_v1  ;;  %883 = vmatpush.msrb.mxu3 %v665_v2  ;;  %v498_v37 = vld [vmem:[#allocation12 + $0xd0] sm:$0xff] }
  0x99   : > { %804 = vmatmul.f32.vlgmr.msra.gmra.mxu3 %v3909_v3  ;;  %889 = vmatpush.msra.mxu0 %v530_v4  ;;  %v626_v38 = vld [vmem:[#allocation12 + $0x4d0] sm:$0xff]  ;;  %v535_v4 = vld [vmem:[#allocation12 + $0x1f8] sm:$0xff] }
  0x9a   : > { %929 = vmatpush.msra.mxu2 %v658_v5  ;;  %948 = vmatpush.msra.mxu3 %v726_v6  ;;  %v570_v39 = vld [vmem:[#allocation12 + $0x310] sm:$0xff]  ;;  %v663_v5 = vld [vmem:[#allocation12 + $0x5f8] sm:$0xff] }
  0x9b   : > { %843 = vmatpush.msrb.mxu1 %v537_v7  ;;  %890 = vmatpush.msra.mxu0 %v526_v8  ;;  %v694_v40 = vld [vmem:[#allocation12 + $0x6f0] sm:$0xff]  ;;  %v531_v8 = vld [vmem:[#allocation12 + $0x1d8] sm:$0xff] }
  0x9c   : > { %764 = vmatmul.f32.vlgmr.msra.gmra.mxu1 %v3913_v9  ;;  %930 = vmatpush.msra.mxu2 %v654_v10  ;;  %v494_v41 = vld [vmem:[#allocation12 + $0xb0] sm:$0xff]  ;;  %v659_v10 = vld [vmem:[#allocation12 + $0x5d8] sm:$0xff] }
  0x9d   : > { %908 = vmatpush.msra.mxu1 %v598_v11  ;;  %949 = vmatpush.msra.mxu3 %v722_v12  ;;  %v622_v42 = vld [vmem:[#allocation12 + $0x4b0] sm:$0xff]  ;;  %v727_v11 = vld [vmem:[#allocation12 + $0x7f8] sm:$0xff] }
  0x9e   : > { %891 = vmatpush.msra.mxu0 %v522_v13  ;;  %931 = vmatpush.msra.mxu2 %v650_v14  ;;  %v566_v43 = vld [vmem:[#allocation12 + $0x2f0] sm:$0xff]  ;;  %v527_v13 = vld [vmem:[#allocation12 + $0x1b8] sm:$0xff] }
  0x9f   : > { %909 = vmatpush.msra.mxu1 %v594_v15  ;;  %950 = vmatpush.msra.mxu3 %v718_v16  ;;  %v690_v44 = vld [vmem:[#allocation12 + $0x6d0] sm:$0xff]  ;;  %v655_v14 = vld [vmem:[#allocation12 + $0x5b8] sm:$0xff] }
  0xa0   : > { %892 = vmatpush.msra.mxu0 %v518_v17  ;;  %932 = vmatpush.msra.mxu2 %v646_v18  ;;  %v490_v45 = vld [vmem:[#allocation12 + $0x90] sm:$0xff]  ;;  %v599_v15 = vld [vmem:[#allocation12 + $0x3f8] sm:$0xff] }
  0xa1   : > { %910 = vmatpush.msra.mxu1 %v590_v19  ;;  %951 = vmatpush.msra.mxu3 %v714_v20  ;;  %v618_v46 = vld [vmem:[#allocation12 + $0x490] sm:$0xff]  ;;  %v723_v16 = vld [vmem:[#allocation12 + $0x7d8] sm:$0xff] }
  0xa2   : > { %893 = vmatpush.msra.mxu0 %v514_v21  ;;  %933 = vmatpush.msra.mxu2 %v642_v22  ;;  %v562_v47 = vld [vmem:[#allocation12 + $0x2d0] sm:$0xff]  ;;  %v523_v17 = vld [vmem:[#allocation12 + $0x198] sm:$0xff] }
  0xa3   : > { %911 = vmatpush.msra.mxu1 %v586_v23  ;;  %952 = vmatpush.msra.mxu3 %v710_v24  ;;  %v686_v48 = vld [vmem:[#allocation12 + $0x6b0] sm:$0xff]  ;;  %v651_v18 = vld [vmem:[#allocation12 + $0x598] sm:$0xff] }
  0xa4   : > { %894 = vmatpush.msra.mxu0 %v510_v25  ;;  %934 = vmatpush.msra.mxu2 %v638_v26  ;;  %v486_v49 = vld [vmem:[#allocation12 + $0x70] sm:$0xff]  ;;  %v595_v19 = vld [vmem:[#allocation12 + $0x3d8] sm:$0xff] }
  0xa5   : > { %912 = vmatpush.msra.mxu1 %v582_v27  ;;  %953 = vmatpush.msra.mxu3 %v706_v28  ;;  %v614_v50 = vld [vmem:[#allocation12 + $0x470] sm:$0xff]  ;;  %v719_v20 = vld [vmem:[#allocation12 + $0x7b8] sm:$0xff] }
  0xa6   : > { %895 = vmatpush.msra.mxu0 %v506_v29  ;;  %935 = vmatpush.msra.mxu2 %v634_v30  ;;  %v558_v51 = vld [vmem:[#allocation12 + $0x2b0] sm:$0xff]  ;;  %v519_v21 = vld [vmem:[#allocation12 + $0x178] sm:$0xff] }
  0xa7   : > { %913 = vmatpush.msra.mxu1 %v578_v31  ;;  %954 = vmatpush.msra.mxu3 %v702_v32  ;;  %v682_v52 = vld [vmem:[#allocation12 + $0x690] sm:$0xff]  ;;  %v647_v22 = vld [vmem:[#allocation12 + $0x578] sm:$0xff] }
  0xa8   : > { %896 = vmatpush.msra.mxu0 %v502_v33  ;;  %936 = vmatpush.msra.mxu2 %v630_v34  ;;  %v482_v53 = vld [vmem:[#allocation12 + $0x50] sm:$0xff]  ;;  %v591_v23 = vld [vmem:[#allocation12 + $0x3b8] sm:$0xff] }
  0xa9   : > { %914 = vmatpush.msra.mxu1 %v574_v35  ;;  %955 = vmatpush.msra.mxu3 %v698_v36  ;;  %v610_v54 = vld [vmem:[#allocation12 + $0x450] sm:$0xff]  ;;  %v715_v24 = vld [vmem:[#allocation12 + $0x798] sm:$0xff] }
  0xaa   : > { %897 = vmatpush.msra.mxu0 %v498_v37  ;;  %937 = vmatpush.msra.mxu2 %v626_v38  ;;  %v554_v55 = vld [vmem:[#allocation12 + $0x290] sm:$0xff]  ;;  %v515_v25 = vld [vmem:[#allocation12 + $0x158] sm:$0xff] }
  0xab   : > { %915 = vmatpush.msra.mxu1 %v570_v39  ;;  %956 = vmatpush.msra.mxu3 %v694_v40  ;;  %v678_v56 = vld [vmem:[#allocation12 + $0x670] sm:$0xff]  ;;  %v643_v26 = vld [vmem:[#allocation12 + $0x558] sm:$0xff] }
  0xac   : > { %898 = vmatpush.msra.mxu0 %v494_v41  ;;  %938 = vmatpush.msra.mxu2 %v622_v42  ;;  %v478_v57 = vld [vmem:[#allocation12 + $0x30] sm:$0xff]  ;;  %v587_v27 = vld [vmem:[#allocation12 + $0x398] sm:$0xff] }
  0xad   : > { %916 = vmatpush.msra.mxu1 %v566_v43  ;;  %957 = vmatpush.msra.mxu3 %v690_v44  ;;  %v606_v58 = vld [vmem:[#allocation12 + $0x430] sm:$0xff]  ;;  %v711_v28 = vld [vmem:[#allocation12 + $0x778] sm:$0xff] }
  0xae   : > { %899 = vmatpush.msra.mxu0 %v490_v45  ;;  %939 = vmatpush.msra.mxu2 %v618_v46  ;;  %v550_v59 = vld [vmem:[#allocation12 + $0x270] sm:$0xff]  ;;  %v511_v29 = vld [vmem:[#allocation12 + $0x138] sm:$0xff] }
  0xaf   : > { %917 = vmatpush.msra.mxu1 %v562_v47  ;;  %958 = vmatpush.msra.mxu3 %v686_v48  ;;  %v674_v60 = vld [vmem:[#allocation12 + $0x650] sm:$0xff]  ;;  %v639_v30 = vld [vmem:[#allocation12 + $0x538] sm:$0xff] }
  0xb0   : > { %900 = vmatpush.msra.mxu0 %v486_v49  ;;  %940 = vmatpush.msra.mxu2 %v614_v50  ;;  %v474_v63 = vld [vmem:[#allocation12 + $0x10] sm:$0xff]  ;;  %v583_v31 = vld [vmem:[#allocation12 + $0x378] sm:$0xff] }
  0xb1   : > { %918 = vmatpush.msra.mxu1 %v558_v51  ;;  %959 = vmatpush.msra.mxu3 %v682_v52  ;;  %v602_v0 = vld [vmem:[#allocation12 + $0x410] sm:$0xff]  ;;  %v707_v32 = vld [vmem:[#allocation12 + $0x758] sm:$0xff] }
  0xb2   : > { %901 = vmatpush.msra.mxu0 %v482_v53  ;;  %941 = vmatpush.msra.mxu2 %v610_v54  ;;  %v546_v1 = vld [vmem:[#allocation12 + $0x250] sm:$0xff]  ;;  %v507_v33 = vld [vmem:[#allocation12 + $0x118] sm:$0xff] }
  0xb3   : > { %919 = vmatpush.msra.mxu1 %v554_v55  ;;  %960 = vmatpush.msra.mxu3 %v678_v56  ;;  %v670_v2 = vld [vmem:[#allocation12 + $0x630] sm:$0xff]  ;;  %v635_v34 = vld [vmem:[#allocation12 + $0x518] sm:$0xff] }
  0xb4   : > { %902 = vmatpush.msra.mxu0 %v478_v57  ;;  %942 = vmatpush.msra.mxu2 %v606_v58  ;;  %v542_v6 = vld [vmem:[#allocation12 + $0x230] sm:$0xff]  ;;  %v579_v35 = vld [vmem:[#allocation12 + $0x358] sm:$0xff] }
  0xb5   : > { %920 = vmatpush.msra.mxu1 %v550_v59  ;;  %961 = vmatpush.msra.mxu3 %v674_v60  ;;  %v666_v7 = vld [vmem:[#allocation12 + $0x610] sm:$0xff]  ;;  %v703_v36 = vld [vmem:[#allocation12 + $0x738] sm:$0xff] }
  0xb6   : > { %903 = vmatpush.msra.mxu0 %v474_v63  ;;  %943 = vmatpush.msra.mxu2 %v602_v0  ;;  %v538_v12 = vld [vmem:[#allocation12 + $0x210] sm:$0xff]  ;;  %v503_v37 = vld [vmem:[#allocation12 + $0xf8] sm:$0xff] }
  0xb7   : > { %921 = vmatpush.msra.mxu1 %v546_v1  ;;  %962 = vmatpush.msra.mxu3 %v670_v2  ;;  %v631_v38 = vld [vmem:[#allocation12 + $0x4f8] sm:$0xff] }
  0xb8   : > { %824 = vmatmul.f32.vlgmr.msrb.gmra.mxu0 %v3901_v61  ;;  %864 = vmatmul.f32.vlgmr.msrb.gmra.mxu2 %v3904_v62  ;;  %v575_v39 = vld [vmem:[#allocation12 + $0x338] sm:$0xff] }
  0xb9   : > { %968 = vmatpush.msrb.mxu0 %v535_v4  ;;  %1008 = vmatpush.msrb.mxu2 %v663_v5  ;;  %v699_v40 = vld [vmem:[#allocation12 + $0x718] sm:$0xff] }
  0xba   : > { %922 = vmatpush.msra.mxu1 %v542_v6  ;;  %963 = vmatpush.msra.mxu3 %v666_v7  ;;  %v499_v41 = vld [vmem:[#allocation12 + $0xd8] sm:$0xff] }
  0xbb   : > { %884 = vmatmul.f32.vlgmr.msrb.gmra.mxu3 %v3909_v3  ;;  %969 = vmatpush.msrb.mxu0 %v531_v8  ;;  %v627_v42 = vld [vmem:[#allocation12 + $0x4d8] sm:$0xff]  ;;  %v1134_v8 = vld [vmem:[#allocation12 + $0x9e0] sm:$0xff] }
  0xbc   : > { %1009 = vmatpush.msrb.mxu2 %v659_v10  ;;  %1028 = vmatpush.msrb.mxu3 %v727_v11  ;;  %v571_v43 = vld [vmem:[#allocation12 + $0x318] sm:$0xff]  ;;  %v1262_v10 = vld [vmem:[#allocation12 + $0xde0] sm:$0xff] }
  0xbd   : > { %923 = vmatpush.msra.mxu1 %v538_v12  ;;  %970 = vmatpush.msrb.mxu0 %v527_v13  ;;  %v695_v44 = vld [vmem:[#allocation12 + $0x6f8] sm:$0xff]  ;;  %v1130_v13 = vld [vmem:[#allocation12 + $0x9c0] sm:$0xff] }
  0xbe   : > { %844 = vmatmul.f32.vlgmr.msrb.gmra.mxu1 %v3913_v9  ;;  %1010 = vmatpush.msrb.mxu2 %v655_v14  ;;  %v495_v45 = vld [vmem:[#allocation12 + $0xb8] sm:$0xff]  ;;  %v1258_v14 = vld [vmem:[#allocation12 + $0xdc0] sm:$0xff] }
  0xbf   : > { %988 = vmatpush.msrb.mxu1 %v599_v15  ;;  %1029 = vmatpush.msrb.mxu3 %v723_v16  ;;  %v623_v46 = vld [vmem:[#allocation12 + $0x4b8] sm:$0xff]  ;;  %v1326_v15 = vld [vmem:[#allocation12 + $0xfe0] sm:$0xff] }
  0xc0   : > { %971 = vmatpush.msrb.mxu0 %v523_v17  ;;  %1011 = vmatpush.msrb.mxu2 %v651_v18  ;;  %v567_v47 = vld [vmem:[#allocation12 + $0x2f8] sm:$0xff]  ;;  %v1126_v17 = vld [vmem:[#allocation12 + $0x9a0] sm:$0xff] }
  0xc1   : > { %989 = vmatpush.msrb.mxu1 %v595_v19  ;;  %1030 = vmatpush.msrb.mxu3 %v719_v20  ;;  %v691_v48 = vld [vmem:[#allocation12 + $0x6d8] sm:$0xff]  ;;  %v1254_v18 = vld [vmem:[#allocation12 + $0xda0] sm:$0xff] }
  0xc2   : > { %972 = vmatpush.msrb.mxu0 %v519_v21  ;;  %1012 = vmatpush.msrb.mxu2 %v647_v22  ;;  %v491_v49 = vld [vmem:[#allocation12 + $0x98] sm:$0xff]  ;;  %v1198_v19 = vld [vmem:[#allocation12 + $0xbe0] sm:$0xff] }
  0xc3   : > { %990 = vmatpush.msrb.mxu1 %v591_v23  ;;  %1031 = vmatpush.msrb.mxu3 %v715_v24  ;;  %v619_v50 = vld [vmem:[#allocation12 + $0x498] sm:$0xff]  ;;  %v1322_v20 = vld [vmem:[#allocation12 + $0xfc0] sm:$0xff] }
  0xc4   : > { %973 = vmatpush.msrb.mxu0 %v515_v25  ;;  %1013 = vmatpush.msrb.mxu2 %v643_v26  ;;  %v563_v51 = vld [vmem:[#allocation12 + $0x2d8] sm:$0xff]  ;;  %v1122_v21 = vld [vmem:[#allocation12 + $0x980] sm:$0xff] }
  0xc5   : > { %991 = vmatpush.msrb.mxu1 %v587_v27  ;;  %1032 = vmatpush.msrb.mxu3 %v711_v28  ;;  %v687_v52 = vld [vmem:[#allocation12 + $0x6b8] sm:$0xff]  ;;  %v1250_v22 = vld [vmem:[#allocation12 + $0xd80] sm:$0xff] }
  0xc6   : > { %974 = vmatpush.msrb.mxu0 %v511_v29  ;;  %1014 = vmatpush.msrb.mxu2 %v639_v30  ;;  %v487_v53 = vld [vmem:[#allocation12 + $0x78] sm:$0xff]  ;;  %v1194_v23 = vld [vmem:[#allocation12 + $0xbc0] sm:$0xff] }
  0xc7   : > { %992 = vmatpush.msrb.mxu1 %v583_v31  ;;  %1033 = vmatpush.msrb.mxu3 %v707_v32  ;;  %v615_v54 = vld [vmem:[#allocation12 + $0x478] sm:$0xff]  ;;  %v1318_v24 = vld [vmem:[#allocation12 + $0xfa0] sm:$0xff] }
  0xc8   : > { %975 = vmatpush.msrb.mxu0 %v507_v33  ;;  %1015 = vmatpush.msrb.mxu2 %v635_v34  ;;  %v559_v55 = vld [vmem:[#allocation12 + $0x2b8] sm:$0xff]  ;;  %v1118_v25 = vld [vmem:[#allocation12 + $0x960] sm:$0xff] }
  0xc9   : > { %993 = vmatpush.msrb.mxu1 %v579_v35  ;;  %1034 = vmatpush.msrb.mxu3 %v703_v36  ;;  %v683_v56 = vld [vmem:[#allocation12 + $0x698] sm:$0xff]  ;;  %v1246_v26 = vld [vmem:[#allocation12 + $0xd60] sm:$0xff] }
  0xca   : > { %976 = vmatpush.msrb.mxu0 %v503_v37  ;;  %1016 = vmatpush.msrb.mxu2 %v631_v38  ;;  %v483_v57 = vld [vmem:[#allocation12 + $0x58] sm:$0xff]  ;;  %v1190_v27 = vld [vmem:[#allocation12 + $0xba0] sm:$0xff] }
  0xcb   : > { %994 = vmatpush.msrb.mxu1 %v575_v39  ;;  %1035 = vmatpush.msrb.mxu3 %v699_v40  ;;  %v611_v58 = vld [vmem:[#allocation12 + $0x458] sm:$0xff]  ;;  %v1314_v28 = vld [vmem:[#allocation12 + $0xf80] sm:$0xff] }
  0xcc   : > { %977 = vmatpush.msrb.mxu0 %v499_v41  ;;  %1017 = vmatpush.msrb.mxu2 %v627_v42  ;;  %v555_v59 = vld [vmem:[#allocation12 + $0x298] sm:$0xff]  ;;  %v1114_v29 = vld [vmem:[#allocation12 + $0x940] sm:$0xff] }
  0xcd   : > { %995 = vmatpush.msrb.mxu1 %v571_v43  ;;  %1036 = vmatpush.msrb.mxu3 %v695_v44  ;;  %v679_v60 = vld [vmem:[#allocation12 + $0x678] sm:$0xff]  ;;  %v1242_v30 = vld [vmem:[#allocation12 + $0xd40] sm:$0xff] }
  0xce   : > { %978 = vmatpush.msrb.mxu0 %v495_v45  ;;  %1018 = vmatpush.msrb.mxu2 %v623_v46  ;;  %v479_v63 = vld [vmem:[#allocation12 + $0x38] sm:$0xff]  ;;  %v1186_v31 = vld [vmem:[#allocation12 + $0xb80] sm:$0xff] }
  0xcf   : > { %996 = vmatpush.msrb.mxu1 %v567_v47  ;;  %1037 = vmatpush.msrb.mxu3 %v691_v48  ;;  %v607_v0 = vld [vmem:[#allocation12 + $0x438] sm:$0xff]  ;;  %v1310_v32 = vld [vmem:[#allocation12 + $0xf60] sm:$0xff] }
  0xd0   : > { %979 = vmatpush.msrb.mxu0 %v491_v49  ;;  %1019 = vmatpush.msrb.mxu2 %v619_v50  ;;  %v551_v1 = vld [vmem:[#allocation12 + $0x278] sm:$0xff]  ;;  %v1110_v33 = vld [vmem:[#allocation12 + $0x920] sm:$0xff] }
  0xd1   : > { %997 = vmatpush.msrb.mxu1 %v563_v51  ;;  %1038 = vmatpush.msrb.mxu3 %v687_v52  ;;  %v675_v2 = vld [vmem:[#allocation12 + $0x658] sm:$0xff]  ;;  %v1238_v34 = vld [vmem:[#allocation12 + $0xd20] sm:$0xff] }
  0xd2   : > { %980 = vmatpush.msrb.mxu0 %v487_v53  ;;  %1020 = vmatpush.msrb.mxu2 %v615_v54  ;;  %v475_v4 = vld [vmem:[#allocation12 + $0x18] sm:$0xff]  ;;  %v1182_v35 = vld [vmem:[#allocation12 + $0xb60] sm:$0xff] }
  0xd3   : > { %998 = vmatpush.msrb.mxu1 %v559_v55  ;;  %1039 = vmatpush.msrb.mxu3 %v683_v56  ;;  %v603_v5 = vld [vmem:[#allocation12 + $0x418] sm:$0xff]  ;;  %v1306_v36 = vld [vmem:[#allocation12 + $0xf40] sm:$0xff] }
  0xd4   : > { %981 = vmatpush.msrb.mxu0 %v483_v57  ;;  %1021 = vmatpush.msrb.mxu2 %v611_v58  ;;  %v547_v6 = vld [vmem:[#allocation12 + $0x258] sm:$0xff]  ;;  %v1106_v37 = vld [vmem:[#allocation12 + $0x900] sm:$0xff] }
  0xd5   : > { %999 = vmatpush.msrb.mxu1 %v555_v59  ;;  %1040 = vmatpush.msrb.mxu3 %v679_v60  ;;  %v671_v7 = vld [vmem:[#allocation12 + $0x638] sm:$0xff]  ;;  %v1234_v38 = vld [vmem:[#allocation12 + $0xd00] sm:$0xff] }
  0xd6   : > { %982 = vmatpush.msrb.mxu0 %v479_v63  ;;  %1022 = vmatpush.msrb.mxu2 %v607_v0  ;;  %v543_v11 = vld [vmem:[#allocation12 + $0x238] sm:$0xff]  ;;  %v1178_v39 = vld [vmem:[#allocation12 + $0xb40] sm:$0xff] }
  0xd7   : > { %1000 = vmatpush.msrb.mxu1 %v551_v1  ;;  %1041 = vmatpush.msrb.mxu3 %v675_v2  ;;  %v667_v12 = vld [vmem:[#allocation12 + $0x618] sm:$0xff]  ;;  %v1302_v40 = vld [vmem:[#allocation12 + $0xf20] sm:$0xff] }
  0xd8   : > { %983 = vmatpush.msrb.mxu0 %v475_v4  ;;  %1023 = vmatpush.msrb.mxu2 %v603_v5  ;;  %v539_v16 = vld [vmem:[#allocation12 + $0x218] sm:$0xff]  ;;  %v1102_v41 = vld [vmem:[#allocation12 + $0x8e0] sm:$0xff] }
  0xd9   : > { %1001 = vmatpush.msrb.mxu1 %v547_v6  ;;  %1042 = vmatpush.msrb.mxu3 %v671_v7  ;;  %v1230_v42 = vld [vmem:[#allocation12 + $0xce0] sm:$0xff] }
  0xda   : > { %904 = vmatmul.f32.vlgmr.msra.gmra.mxu0 %v3901_v61  ;;  %944 = vmatmul.f32.vlgmr.msra.gmra.mxu2 %v3904_v62  ;;  %v1174_v43 = vld [vmem:[#allocation12 + $0xb20] sm:$0xff] }
  0xdb   : > { %1330 = vmatpush.msra.mxu0 %v1134_v8  ;;  %1370 = vmatpush.msra.mxu2 %v1262_v10  ;;  %v1298_v44 = vld [vmem:[#allocation12 + $0xf00] sm:$0xff] }
  0xdc   : > { %1002 = vmatpush.msrb.mxu1 %v543_v11  ;;  %1043 = vmatpush.msrb.mxu3 %v667_v12  ;;  %v1098_v45 = vld [vmem:[#allocation12 + $0x8c0] sm:$0xff] }
  0xdd   : > { %964 = vmatmul.f32.vlgmr.msra.gmra.mxu3 %v3909_v3  ;;  %1331 = vmatpush.msra.mxu0 %v1130_v13  ;;  %v1226_v46 = vld [vmem:[#allocation12 + $0xcc0] sm:$0xff]  ;;  %v1135_v13 = vld [vmem:[#allocation12 + $0x9e8] sm:$0xff] }
  0xde   : > { %1371 = vmatpush.msra.mxu2 %v1258_v14  ;;  %1390 = vmatpush.msra.mxu3 %v1326_v15  ;;  %v1170_v47 = vld [vmem:[#allocation12 + $0xb00] sm:$0xff]  ;;  %v1263_v14 = vld [vmem:[#allocation12 + $0xde8] sm:$0xff] }
  0xdf   : > { %1003 = vmatpush.msrb.mxu1 %v539_v16  ;;  %1332 = vmatpush.msra.mxu0 %v1126_v17  ;;  %v1294_v48 = vld [vmem:[#allocation12 + $0xee0] sm:$0xff]  ;;  %v1131_v17 = vld [vmem:[#allocation12 + $0x9c8] sm:$0xff] }
  0xe0   : > { %924 = vmatmul.f32.vlgmr.msra.gmra.mxu1 %v3913_v9  ;;  %1372 = vmatpush.msra.mxu2 %v1254_v18  ;;  %v1094_v49 = vld [vmem:[#allocation12 + $0x8a0] sm:$0xff]  ;;  %v1259_v18 = vld [vmem:[#allocation12 + $0xdc8] sm:$0xff] }
  0xe1   : > { %1350 = vmatpush.msra.mxu1 %v1198_v19  ;;  %1391 = vmatpush.msra.mxu3 %v1322_v20  ;;  %v1222_v50 = vld [vmem:[#allocation12 + $0xca0] sm:$0xff]  ;;  %v1327_v19 = vld [vmem:[#allocation12 + $0xfe8] sm:$0xff] }
  0xe2   : > { %1333 = vmatpush.msra.mxu0 %v1122_v21  ;;  %1373 = vmatpush.msra.mxu2 %v1250_v22  ;;  %v1166_v51 = vld [vmem:[#allocation12 + $0xae0] sm:$0xff]  ;;  %v1127_v21 = vld [vmem:[#allocation12 + $0x9a8] sm:$0xff] }
  0xe3   : > { %1351 = vmatpush.msra.mxu1 %v1194_v23  ;;  %1392 = vmatpush.msra.mxu3 %v1318_v24  ;;  %v1290_v52 = vld [vmem:[#allocation12 + $0xec0] sm:$0xff]  ;;  %v1255_v22 = vld [vmem:[#allocation12 + $0xda8] sm:$0xff] }
  0xe4   : > { %1334 = vmatpush.msra.mxu0 %v1118_v25  ;;  %1374 = vmatpush.msra.mxu2 %v1246_v26  ;;  %v1090_v53 = vld [vmem:[#allocation12 + $0x880] sm:$0xff]  ;;  %v1199_v23 = vld [vmem:[#allocation12 + $0xbe8] sm:$0xff] }
  0xe5   : > { %1352 = vmatpush.msra.mxu1 %v1190_v27  ;;  %1393 = vmatpush.msra.mxu3 %v1314_v28  ;;  %v1218_v54 = vld [vmem:[#allocation12 + $0xc80] sm:$0xff]  ;;  %v1323_v24 = vld [vmem:[#allocation12 + $0xfc8] sm:$0xff] }
  0xe6   : > { %1335 = vmatpush.msra.mxu0 %v1114_v29  ;;  %1375 = vmatpush.msra.mxu2 %v1242_v30  ;;  %v1162_v55 = vld [vmem:[#allocation12 + $0xac0] sm:$0xff]  ;;  %v1195_v25 = vld [vmem:[#allocation12 + $0xbc8] sm:$0xff] }
  0xe7   : > { %1353 = vmatpush.msra.mxu1 %v1186_v31  ;;  %1394 = vmatpush.msra.mxu3 %v1310_v32  ;;  %v1286_v56 = vld [vmem:[#allocation12 + $0xea0] sm:$0xff]  ;;  %v1319_v26 = vld [vmem:[#allocation12 + $0xfa8] sm:$0xff] }
  0xe8   : > { %1336 = vmatpush.msra.mxu0 %v1110_v33  ;;  %1376 = vmatpush.msra.mxu2 %v1238_v34  ;;  %v1086_v57 = vld [vmem:[#allocation12 + $0x860] sm:$0xff]  ;;  %v1119_v27 = vld [vmem:[#allocation12 + $0x968] sm:$0xff] }
  0xe9   : > { %1354 = vmatpush.msra.mxu1 %v1182_v35  ;;  %1395 = vmatpush.msra.mxu3 %v1306_v36  ;;  %v1214_v58 = vld [vmem:[#allocation12 + $0xc60] sm:$0xff]  ;;  %v1247_v28 = vld [vmem:[#allocation12 + $0xd68] sm:$0xff] }
  0xea   : > { %1337 = vmatpush.msra.mxu0 %v1106_v37  ;;  %1377 = vmatpush.msra.mxu2 %v1234_v38  ;;  %v1158_v59 = vld [vmem:[#allocation12 + $0xaa0] sm:$0xff]  ;;  %v1315_v29 = vld [vmem:[#allocation12 + $0xf88] sm:$0xff] }
  0xeb   : > { %1355 = vmatpush.msra.mxu1 %v1178_v39  ;;  %1396 = vmatpush.msra.mxu3 %v1302_v40  ;;  %v1282_v60 = vld [vmem:[#allocation12 + $0xe80] sm:$0xff]  ;;  %v1115_v30 = vld [vmem:[#allocation12 + $0x948] sm:$0xff] }
  0xec   : > { %1338 = vmatpush.msra.mxu0 %v1102_v41  ;;  %1378 = vmatpush.msra.mxu2 %v1230_v42  ;;  %v1082_v63 = vld [vmem:[#allocation12 + $0x840] sm:$0xff]  ;;  %v1243_v31 = vld [vmem:[#allocation12 + $0xd48] sm:$0xff] }
  0xed   : > { %1356 = vmatpush.msra.mxu1 %v1174_v43  ;;  %1397 = vmatpush.msra.mxu3 %v1298_v44  ;;  %v1210_v0 = vld [vmem:[#allocation12 + $0xc40] sm:$0xff]  ;;  %v1187_v32 = vld [vmem:[#allocation12 + $0xb88] sm:$0xff] }
  0xee   : > { %1339 = vmatpush.msra.mxu0 %v1098_v45  ;;  %1379 = vmatpush.msra.mxu2 %v1226_v46  ;;  %v1154_v1 = vld [vmem:[#allocation12 + $0xa80] sm:$0xff]  ;;  %v1311_v33 = vld [vmem:[#allocation12 + $0xf68] sm:$0xff] }
  0xef   : > { %1357 = vmatpush.msra.mxu1 %v1170_v47  ;;  %1398 = vmatpush.msra.mxu3 %v1294_v48  ;;  %v1278_v2 = vld [vmem:[#allocation12 + $0xe60] sm:$0xff]  ;;  %v1239_v34 = vld [vmem:[#allocation12 + $0xd28] sm:$0xff] }
  0xf0   : > { %1340 = vmatpush.msra.mxu0 %v1094_v49  ;;  %1380 = vmatpush.msra.mxu2 %v1222_v50  ;;  %v1078_v4 = vld [vmem:[#allocation12 + $0x820] sm:$0xff]  ;;  %v1183_v35 = vld [vmem:[#allocation12 + $0xb68] sm:$0xff] }
  0xf1   : > { %1358 = vmatpush.msra.mxu1 %v1166_v51  ;;  %1399 = vmatpush.msra.mxu3 %v1290_v52  ;;  %v1206_v5 = vld [vmem:[#allocation12 + $0xc20] sm:$0xff]  ;;  %v1307_v36 = vld [vmem:[#allocation12 + $0xf48] sm:$0xff] }
  0xf2   : > { %1341 = vmatpush.msra.mxu0 %v1090_v53  ;;  %1381 = vmatpush.msra.mxu2 %v1218_v54  ;;  %v1150_v6 = vld [vmem:[#allocation12 + $0xa60] sm:$0xff]  ;;  %v1107_v37 = vld [vmem:[#allocation12 + $0x908] sm:$0xff] }
  0xf3   : > { %1359 = vmatpush.msra.mxu1 %v1162_v55  ;;  %1400 = vmatpush.msra.mxu3 %v1286_v56  ;;  %v1274_v7 = vld [vmem:[#allocation12 + $0xe40] sm:$0xff]  ;;  %v1235_v38 = vld [vmem:[#allocation12 + $0xd08] sm:$0xff] }
  0xf4   : > { %1342 = vmatpush.msra.mxu0 %v1086_v57  ;;  %1382 = vmatpush.msra.mxu2 %v1214_v58  ;;  %v1074_v8 = vld [vmem:[#allocation12 + $0x800] sm:$0xff]  ;;  %v1179_v39 = vld [vmem:[#allocation12 + $0xb48] sm:$0xff] }
  0xf5   : > { %1360 = vmatpush.msra.mxu1 %v1158_v59  ;;  %1401 = vmatpush.msra.mxu3 %v1282_v60  ;;  %v1202_v10 = vld [vmem:[#allocation12 + $0xc00] sm:$0xff]  ;;  %v1303_v40 = vld [vmem:[#allocation12 + $0xf28] sm:$0xff] }
  0xf6   : > { %1343 = vmatpush.msra.mxu0 %v1082_v63  ;;  %1383 = vmatpush.msra.mxu2 %v1210_v0  ;;  %v1146_v11 = vld [vmem:[#allocation12 + $0xa40] sm:$0xff]  ;;  %v1103_v41 = vld [vmem:[#allocation12 + $0x8e8] sm:$0xff] }
  0xf7   : > { %1361 = vmatpush.msra.mxu1 %v1154_v1  ;;  %1402 = vmatpush.msra.mxu3 %v1278_v2  ;;  %v1270_v12 = vld [vmem:[#allocation12 + $0xe20] sm:$0xff]  ;;  %v1231_v42 = vld [vmem:[#allocation12 + $0xce8] sm:$0xff] }
  0xf8   : > { %1344 = vmatpush.msra.mxu0 %v1078_v4  ;;  %1384 = vmatpush.msra.mxu2 %v1206_v5  ;;  %v1142_v15 = vld [vmem:[#allocation12 + $0xa20] sm:$0xff]  ;;  %v1175_v43 = vld [vmem:[#allocation12 + $0xb28] sm:$0xff] }
  0xf9   : > { %1362 = vmatpush.msra.mxu1 %v1150_v6  ;;  %1403 = vmatpush.msra.mxu3 %v1274_v7  ;;  %v1266_v16 = vld [vmem:[#allocation12 + $0xe00] sm:$0xff]  ;;  %v1299_v44 = vld [vmem:[#allocation12 + $0xf08] sm:$0xff] }
  0xfa   : > { %1345 = vmatpush.msra.mxu0 %v1074_v8  ;;  %1385 = vmatpush.msra.mxu2 %v1202_v10  ;;  %v1138_v20 = vld [vmem:[#allocation12 + $0xa00] sm:$0xff]  ;;  %v1099_v45 = vld [vmem:[#allocation12 + $0x8c8] sm:$0xff] }
  0xfb   : > { %1363 = vmatpush.msra.mxu1 %v1146_v11  ;;  %1404 = vmatpush.msra.mxu3 %v1270_v12  ;;  %v1227_v46 = vld [vmem:[#allocation12 + $0xcc8] sm:$0xff] }
  0xfc   : > { %984 = vmatmul.f32.vlgmr.msrb.gmra.mxu0 %v3901_v61  ;;  %1024 = vmatmul.f32.vlgmr.msrb.gmra.mxu2 %v3904_v62  ;;  %v1123_v61 = vld [vmem:[#allocation12 + $0x988] sm:$0xff] }
  0xfd   : > { %1410 = vmatpush.msrb.mxu0 %v1135_v13  ;;  %1450 = vmatpush.msrb.mxu2 %v1263_v14  ;;  %v1251_v62 = vld [vmem:[#allocation12 + $0xd88] sm:$0xff]  ;;  %v3929_v13 = vld [vmem:[%s3887_s30] sm:$0xff]  ;;  %v3932_v14 = vld [vmem:[%s3887_s30 + $0x10] sm:$0xff] }
  0xfe   : > { %1364 = vmatpush.msra.mxu1 %v1142_v15  ;;  %1405 = vmatpush.msra.mxu3 %v1266_v16  ;;  %v1171_v47 = vld [vmem:[#allocation12 + $0xb08] sm:$0xff]  ;;  %v1136_v15 = vld [vmem:[#allocation12 + $0x9f0] sm:$0xff] }
  0xff   : > { %1044 = vmatmul.f32.vlgmr.msrb.gmra.mxu3 %v3909_v3  ;;  %1411 = vmatpush.msrb.mxu0 %v1131_v17  ;;  %v1191_v3 = vld [vmem:[#allocation12 + $0xba8] sm:$0xff]  ;;  %v1264_v16 = vld [vmem:[#allocation12 + $0xdf0] sm:$0xff] }
 0x100   : > { %1451 = vmatpush.msrb.mxu2 %v1259_v18  ;;  %1470 = vmatpush.msrb.mxu3 %v1327_v19  ;;  %v1295_v48 = vld [vmem:[#allocation12 + $0xee8] sm:$0xff]  ;;  %v3937_v19 = vld [vmem:[%s3887_s30 + $0x18] sm:$0xff] }
 0x101   : > { %1365 = vmatpush.msra.mxu1 %v1138_v20  ;;  %1412 = vmatpush.msrb.mxu0 %v1127_v21  ;;  %v1095_v49 = vld [vmem:[#allocation12 + $0x8a8] sm:$0xff]  ;;  %v1132_v20 = vld [vmem:[#allocation12 + $0x9d0] sm:$0xff] }
 0x102   : > { %1004 = vmatmul.f32.vlgmr.msrb.gmra.mxu1 %v3913_v9  ;;  %1452 = vmatpush.msrb.mxu2 %v1255_v22  ;;  %v1111_v9 = vld [vmem:[#allocation12 + $0x928] sm:$0xff]  ;;  %v1260_v21 = vld [vmem:[#allocation12 + $0xdd0] sm:$0xff] }
 0x103   : > { %1430 = vmatpush.msrb.mxu1 %v1199_v23  ;;  %1471 = vmatpush.msrb.mxu3 %v1323_v24  ;;  %v1223_v50 = vld [vmem:[#allocation12 + $0xca8] sm:$0xff]  ;;  %v1328_v22 = vld [vmem:[#allocation12 + $0xff0] sm:$0xff] }
 0x104   : > { %1413 = vmatpush.msrb.mxu0 %v1123_v61  ;;  %1453 = vmatpush.msrb.mxu2 %v1251_v62  ;;  %v1167_v51 = vld [vmem:[#allocation12 + $0xae8] sm:$0xff]  ;;  %v1128_v24 = vld [vmem:[#allocation12 + $0x9b0] sm:$0xff] }
 0x105   : > { %1431 = vmatpush.msrb.mxu1 %v1195_v25  ;;  %1472 = vmatpush.msrb.mxu3 %v1319_v26  ;;  %v1291_v52 = vld [vmem:[#allocation12 + $0xec8] sm:$0xff]  ;;  %v1256_v62 = vld [vmem:[#allocation12 + $0xdb0] sm:$0xff] }
 0x106   : > { %1414 = vmatpush.msrb.mxu0 %v1119_v27  ;;  %1454 = vmatpush.msrb.mxu2 %v1247_v28  ;;  %v1091_v53 = vld [vmem:[#allocation12 + $0x888] sm:$0xff]  ;;  %v1200_v25 = vld [vmem:[#allocation12 + $0xbf0] sm:$0xff] }
 0x107   : > { %1432 = vmatpush.msrb.mxu1 %v1191_v3  ;;  %1473 = vmatpush.msrb.mxu3 %v1315_v29  ;;  %v1219_v54 = vld [vmem:[#allocation12 + $0xc88] sm:$0xff]  ;;  %v1324_v26 = vld [vmem:[#allocation12 + $0xfd0] sm:$0xff] }
 0x108   : > { %1415 = vmatpush.msrb.mxu0 %v1115_v30  ;;  %1455 = vmatpush.msrb.mxu2 %v1243_v31  ;;  %v1163_v55 = vld [vmem:[#allocation12 + $0xac8] sm:$0xff]  ;;  %v1124_v27 = vld [vmem:[#allocation12 + $0x990] sm:$0xff] }
 0x109   : > { %1433 = vmatpush.msrb.mxu1 %v1187_v32  ;;  %1474 = vmatpush.msrb.mxu3 %v1311_v33  ;;  %v1287_v56 = vld [vmem:[#allocation12 + $0xea8] sm:$0xff]  ;;  %v1252_v28 = vld [vmem:[#allocation12 + $0xd90] sm:$0xff] }
 0x10a   : > { %1416 = vmatpush.msrb.mxu0 %v1111_v9  ;;  %1456 = vmatpush.msrb.mxu2 %v1239_v34  ;;  %v1087_v57 = vld [vmem:[#allocation12 + $0x868] sm:$0xff]  ;;  %v1196_v3 = vld [vmem:[#allocation12 + $0xbd0] sm:$0xff] }
 0x10b   : > { %1434 = vmatpush.msrb.mxu1 %v1183_v35  ;;  %1475 = vmatpush.msrb.mxu3 %v1307_v36  ;;  %v1215_v58 = vld [vmem:[#allocation12 + $0xc68] sm:$0xff]  ;;  %v1320_v29 = vld [vmem:[#allocation12 + $0xfb0] sm:$0xff] }
 0x10c   : > { %1417 = vmatpush.msrb.mxu0 %v1107_v37  ;;  %1457 = vmatpush.msrb.mxu2 %v1235_v38  ;;  %v1159_v59 = vld [vmem:[#allocation12 + $0xaa8] sm:$0xff]  ;;  %v1120_v30 = vld [vmem:[#allocation12 + $0x970] sm:$0xff] }
 0x10d   : > { %1435 = vmatpush.msrb.mxu1 %v1179_v39  ;;  %1476 = vmatpush.msrb.mxu3 %v1303_v40  ;;  %v1283_v60 = vld [vmem:[#allocation12 + $0xe88] sm:$0xff]  ;;  %v1248_v31 = vld [vmem:[#allocation12 + $0xd70] sm:$0xff] }
 0x10e   : > { %1418 = vmatpush.msrb.mxu0 %v1103_v41  ;;  %1458 = vmatpush.msrb.mxu2 %v1231_v42  ;;  %v1083_v63 = vld [vmem:[#allocation12 + $0x848] sm:$0xff]  ;;  %v1192_v32 = vld [vmem:[#allocation12 + $0xbb0] sm:$0xff] }
 0x10f   : > { %1436 = vmatpush.msrb.mxu1 %v1175_v43  ;;  %1477 = vmatpush.msrb.mxu3 %v1299_v44  ;;  %v1211_v0 = vld [vmem:[#allocation12 + $0xc48] sm:$0xff]  ;;  %v1316_v33 = vld [vmem:[#allocation12 + $0xf90] sm:$0xff] }
 0x110   : > { %1419 = vmatpush.msrb.mxu0 %v1099_v45  ;;  %1459 = vmatpush.msrb.mxu2 %v1227_v46  ;;  %v1155_v1 = vld [vmem:[#allocation12 + $0xa88] sm:$0xff]  ;;  %v1116_v9 = vld [vmem:[#allocation12 + $0x950] sm:$0xff] }
 0x111   : > { %1437 = vmatpush.msrb.mxu1 %v1171_v47  ;;  %1478 = vmatpush.msrb.mxu3 %v1295_v48  ;;  %v1279_v2 = vld [vmem:[#allocation12 + $0xe68] sm:$0xff]  ;;  %v1244_v34 = vld [vmem:[#allocation12 + $0xd50] sm:$0xff] }
 0x112   : > { %1420 = vmatpush.msrb.mxu0 %v1095_v49  ;;  %1460 = vmatpush.msrb.mxu2 %v1223_v50  ;;  %v1079_v4 = vld [vmem:[#allocation12 + $0x828] sm:$0xff]  ;;  %v1188_v35 = vld [vmem:[#allocation12 + $0xb90] sm:$0xff] }
 0x113   : > { %1438 = vmatpush.msrb.mxu1 %v1167_v51  ;;  %1479 = vmatpush.msrb.mxu3 %v1291_v52  ;;  %v1207_v5 = vld [vmem:[#allocation12 + $0xc28] sm:$0xff]  ;;  %v1312_v36 = vld [vmem:[#allocation12 + $0xf70] sm:$0xff] }
 0x114   : > { %1421 = vmatpush.msrb.mxu0 %v1091_v53  ;;  %1461 = vmatpush.msrb.mxu2 %v1219_v54  ;;  %v1151_v6 = vld [vmem:[#allocation12 + $0xa68] sm:$0xff]  ;;  %v1112_v37 = vld [vmem:[#allocation12 + $0x930] sm:$0xff] }
 0x115   : > { %1439 = vmatpush.msrb.mxu1 %v1163_v55  ;;  %1480 = vmatpush.msrb.mxu3 %v1287_v56  ;;  %v1275_v7 = vld [vmem:[#allocation12 + $0xe48] sm:$0xff]  ;;  %v1240_v38 = vld [vmem:[#allocation12 + $0xd30] sm:$0xff] }
 0x116   : > { %1422 = vmatpush.msrb.mxu0 %v1087_v57  ;;  %1462 = vmatpush.msrb.mxu2 %v1215_v58  ;;  %v1075_v8 = vld [vmem:[#allocation12 + $0x808] sm:$0xff]  ;;  %v1184_v39 = vld [vmem:[#allocation12 + $0xb70] sm:$0xff] }
 0x117   : > { %1440 = vmatpush.msrb.mxu1 %v1159_v59  ;;  %1481 = vmatpush.msrb.mxu3 %v1283_v60  ;;  %v1203_v10 = vld [vmem:[#allocation12 + $0xc08] sm:$0xff]  ;;  %v1308_v40 = vld [vmem:[#allocation12 + $0xf50] sm:$0xff] }
 0x118   : > { %1423 = vmatpush.msrb.mxu0 %v1083_v63  ;;  %1463 = vmatpush.msrb.mxu2 %v1211_v0  ;;  %v1147_v11 = vld [vmem:[#allocation12 + $0xa48] sm:$0xff]  ;;  %v1108_v41 = vld [vmem:[#allocation12 + $0x910] sm:$0xff] }
 0x119   : > { %1441 = vmatpush.msrb.mxu1 %v1155_v1  ;;  %1482 = vmatpush.msrb.mxu3 %v1279_v2  ;;  %v1271_v12 = vld [vmem:[#allocation12 + $0xe28] sm:$0xff]  ;;  %v1236_v42 = vld [vmem:[#allocation12 + $0xd10] sm:$0xff] }
 0x11a   : > { %1424 = vmatpush.msrb.mxu0 %v1079_v4  ;;  %1464 = vmatpush.msrb.mxu2 %v1207_v5  ;;  %v1143_v17 = vld [vmem:[#allocation12 + $0xa28] sm:$0xff]  ;;  %v1180_v43 = vld [vmem:[#allocation12 + $0xb50] sm:$0xff] }
 0x11b   : > { %1442 = vmatpush.msrb.mxu1 %v1151_v6  ;;  %1483 = vmatpush.msrb.mxu3 %v1275_v7  ;;  %v1267_v18 = vld [vmem:[#allocation12 + $0xe08] sm:$0xff]  ;;  %v1304_v44 = vld [vmem:[#allocation12 + $0xf30] sm:$0xff] }
 0x11c   : > { %1425 = vmatpush.msrb.mxu0 %v1075_v8  ;;  %1465 = vmatpush.msrb.mxu2 %v1203_v10  ;;  %v1139_v23 = vld [vmem:[#allocation12 + $0xa08] sm:$0xff]  ;;  %v1104_v45 = vld [vmem:[#allocation12 + $0x8f0] sm:$0xff] }
 0x11d   : > { %1443 = vmatpush.msrb.mxu1 %v1147_v11  ;;  %1484 = vmatpush.msrb.mxu3 %v1271_v12  ;;  %v3941_v61 = vld [vmem:[%s3887_s30 + $0x8] sm:$0xff]  ;;  %v1232_v46 = vld [vmem:[#allocation12 + $0xcf0] sm:$0xff] }
 0x11e   : > { %1346 = vmatmul.f32.vlgmr.msra.gmra.mxu0 %v3929_v13  ;;  %1386 = vmatmul.f32.vlgmr.msra.gmra.mxu2 %v3932_v14  ;;  %v1176_v47 = vld [vmem:[#allocation12 + $0xb30] sm:$0xff] }
 0x11f   : > { %1490 = vmatpush.msra.mxu0 %v1136_v15  ;;  %1530 = vmatpush.msra.mxu2 %v1264_v16  ;;  %v1300_v48 = vld [vmem:[#allocation12 + $0xf10] sm:$0xff] }
 0x120   : > { %1444 = vmatpush.msrb.mxu1 %v1143_v17  ;;  %1485 = vmatpush.msrb.mxu3 %v1267_v18  ;;  %v1100_v49 = vld [vmem:[#allocation12 + $0x8d0] sm:$0xff] }
 0x121   : > { %1406 = vmatmul.f32.vlgmr.msra.gmra.mxu3 %v3937_v19  ;;  %1491 = vmatpush.msra.mxu0 %v1132_v20  ;;  %v1228_v50 = vld [vmem:[#allocation12 + $0xcd0] sm:$0xff]  ;;  %v1137_v20 = vld [vmem:[#allocation12 + $0x9f8] sm:$0xff] }
 0x122   : > { %1531 = vmatpush.msra.mxu2 %v1260_v21  ;;  %1550 = vmatpush.msra.mxu3 %v1328_v22  ;;  %v1172_v51 = vld [vmem:[#allocation12 + $0xb10] sm:$0xff]  ;;  %v1265_v21 = vld [vmem:[#allocation12 + $0xdf8] sm:$0xff] }
 0x123   : > { %1445 = vmatpush.msrb.mxu1 %v1139_v23  ;;  %1492 = vmatpush.msra.mxu0 %v1128_v24  ;;  %v1296_v52 = vld [vmem:[#allocation12 + $0xef0] sm:$0xff]  ;;  %v1133_v24 = vld [vmem:[#allocation12 + $0x9d8] sm:$0xff] }
 0x124   : > { %1366 = vmatmul.f32.vlgmr.msra.gmra.mxu1 %v3941_v61  ;;  %1532 = vmatpush.msra.mxu2 %v1256_v62  ;;  %v1096_v53 = vld [vmem:[#allocation12 + $0x8b0] sm:$0xff]  ;;  %v1261_v62 = vld [vmem:[#allocation12 + $0xdd8] sm:$0xff] }
 0x125   : > { %1510 = vmatpush.msra.mxu1 %v1200_v25  ;;  %1551 = vmatpush.msra.mxu3 %v1324_v26  ;;  %v1224_v54 = vld [vmem:[#allocation12 + $0xcb0] sm:$0xff]  ;;  %v1329_v25 = vld [vmem:[#allocation12 + $0xff8] sm:$0xff] }
 0x126   : > { %1493 = vmatpush.msra.mxu0 %v1124_v27  ;;  %1533 = vmatpush.msra.mxu2 %v1252_v28  ;;  %v1168_v55 = vld [vmem:[#allocation12 + $0xaf0] sm:$0xff]  ;;  %v1129_v27 = vld [vmem:[#allocation12 + $0x9b8] sm:$0xff] }
 0x127   : > { %1511 = vmatpush.msra.mxu1 %v1196_v3  ;;  %1552 = vmatpush.msra.mxu3 %v1320_v29  ;;  %v1292_v56 = vld [vmem:[#allocation12 + $0xed0] sm:$0xff]  ;;  %v1257_v28 = vld [vmem:[#allocation12 + $0xdb8] sm:$0xff] }
 0x128   : > { %1494 = vmatpush.msra.mxu0 %v1120_v30  ;;  %1534 = vmatpush.msra.mxu2 %v1248_v31  ;;  %v1092_v57 = vld [vmem:[#allocation12 + $0x890] sm:$0xff]  ;;  %v1201_v3 = vld [vmem:[#allocation12 + $0xbf8] sm:$0xff] }
 0x129   : > { %1512 = vmatpush.msra.mxu1 %v1192_v32  ;;  %1553 = vmatpush.msra.mxu3 %v1316_v33  ;;  %v1220_v58 = vld [vmem:[#allocation12 + $0xc90] sm:$0xff]  ;;  %v1325_v29 = vld [vmem:[#allocation12 + $0xfd8] sm:$0xff] }
 0x12a   : > { %1495 = vmatpush.msra.mxu0 %v1116_v9  ;;  %1535 = vmatpush.msra.mxu2 %v1244_v34  ;;  %v1164_v59 = vld [vmem:[#allocation12 + $0xad0] sm:$0xff]  ;;  %v1125_v30 = vld [vmem:[#allocation12 + $0x998] sm:$0xff] }
 0x12b   : > { %1513 = vmatpush.msra.mxu1 %v1188_v35  ;;  %1554 = vmatpush.msra.mxu3 %v1312_v36  ;;  %v1288_v60 = vld [vmem:[#allocation12 + $0xeb0] sm:$0xff]  ;;  %v1253_v31 = vld [vmem:[#allocation12 + $0xd98] sm:$0xff] }
 0x12c   : > { %1496 = vmatpush.msra.mxu0 %v1112_v37  ;;  %1536 = vmatpush.msra.mxu2 %v1240_v38  ;;  %v1088_v63 = vld [vmem:[#allocation12 + $0x870] sm:$0xff]  ;;  %v1197_v32 = vld [vmem:[#allocation12 + $0xbd8] sm:$0xff] }
 0x12d   : > { %1514 = vmatpush.msra.mxu1 %v1184_v39  ;;  %1555 = vmatpush.msra.mxu3 %v1308_v40  ;;  %v1216_v0 = vld [vmem:[#allocation12 + $0xc70] sm:$0xff]  ;;  %v1321_v33 = vld [vmem:[#allocation12 + $0xfb8] sm:$0xff] }
 0x12e   : > { %1497 = vmatpush.msra.mxu0 %v1108_v41  ;;  %1537 = vmatpush.msra.mxu2 %v1236_v42  ;;  %v1160_v1 = vld [vmem:[#allocation12 + $0xab0] sm:$0xff]  ;;  %v1121_v9 = vld [vmem:[#allocation12 + $0x978] sm:$0xff] }
 0x12f   : > { %1515 = vmatpush.msra.mxu1 %v1180_v43  ;;  %1556 = vmatpush.msra.mxu3 %v1304_v44  ;;  %v1284_v2 = vld [vmem:[#allocation12 + $0xe90] sm:$0xff]  ;;  %v1249_v34 = vld [vmem:[#allocation12 + $0xd78] sm:$0xff] }
 0x130   : > { %1498 = vmatpush.msra.mxu0 %v1104_v45  ;;  %1538 = vmatpush.msra.mxu2 %v1232_v46  ;;  %v1084_v4 = vld [vmem:[#allocation12 + $0x850] sm:$0xff]  ;;  %v1193_v35 = vld [vmem:[#allocation12 + $0xbb8] sm:$0xff] }
 0x131   : > { %1516 = vmatpush.msra.mxu1 %v1176_v47  ;;  %1557 = vmatpush.msra.mxu3 %v1300_v48  ;;  %v1212_v5 = vld [vmem:[#allocation12 + $0xc50] sm:$0xff]  ;;  %v1317_v36 = vld [vmem:[#allocation12 + $0xf98] sm:$0xff] }
 0x132   : > { %1499 = vmatpush.msra.mxu0 %v1100_v49  ;;  %1539 = vmatpush.msra.mxu2 %v1228_v50  ;;  %v1156_v6 = vld [vmem:[#allocation12 + $0xa90] sm:$0xff]  ;;  %v1117_v37 = vld [vmem:[#allocation12 + $0x958] sm:$0xff] }
 0x133   : > { %1517 = vmatpush.msra.mxu1 %v1172_v51  ;;  %1558 = vmatpush.msra.mxu3 %v1296_v52  ;;  %v1280_v7 = vld [vmem:[#allocation12 + $0xe70] sm:$0xff]  ;;  %v1245_v38 = vld [vmem:[#allocation12 + $0xd58] sm:$0xff] }
 0x134   : > { %1500 = vmatpush.msra.mxu0 %v1096_v53  ;;  %1540 = vmatpush.msra.mxu2 %v1224_v54  ;;  %v1080_v8 = vld [vmem:[#allocation12 + $0x830] sm:$0xff]  ;;  %v1189_v39 = vld [vmem:[#allocation12 + $0xb98] sm:$0xff] }
 0x135   : > { %1518 = vmatpush.msra.mxu1 %v1168_v55  ;;  %1559 = vmatpush.msra.mxu3 %v1292_v56  ;;  %v1208_v10 = vld [vmem:[#allocation12 + $0xc30] sm:$0xff]  ;;  %v1313_v40 = vld [vmem:[#allocation12 + $0xf78] sm:$0xff] }
 0x136   : > { %1501 = vmatpush.msra.mxu0 %v1092_v57  ;;  %1541 = vmatpush.msra.mxu2 %v1220_v58  ;;  %v1152_v11 = vld [vmem:[#allocation12 + $0xa70] sm:$0xff]  ;;  %v1113_v41 = vld [vmem:[#allocation12 + $0x938] sm:$0xff] }
 0x137   : > { %1519 = vmatpush.msra.mxu1 %v1164_v59  ;;  %1560 = vmatpush.msra.mxu3 %v1288_v60  ;;  %v1276_v12 = vld [vmem:[#allocation12 + $0xe50] sm:$0xff]  ;;  %v1241_v42 = vld [vmem:[#allocation12 + $0xd38] sm:$0xff] }
 0x138   : > { %1502 = vmatpush.msra.mxu0 %v1088_v63  ;;  %1542 = vmatpush.msra.mxu2 %v1216_v0  ;;  %v1076_v15 = vld [vmem:[#allocation12 + $0x810] sm:$0xff]  ;;  %v1185_v43 = vld [vmem:[#allocation12 + $0xb78] sm:$0xff] }
 0x139   : > { %1520 = vmatpush.msra.mxu1 %v1160_v1  ;;  %1561 = vmatpush.msra.mxu3 %v1284_v2  ;;  %v1204_v16 = vld [vmem:[#allocation12 + $0xc10] sm:$0xff]  ;;  %v1309_v44 = vld [vmem:[#allocation12 + $0xf58] sm:$0xff] }
 0x13a   : > { %1503 = vmatpush.msra.mxu0 %v1084_v4  ;;  %1543 = vmatpush.msra.mxu2 %v1212_v5  ;;  %v1148_v17 = vld [vmem:[#allocation12 + $0xa50] sm:$0xff]  ;;  %v1109_v45 = vld [vmem:[#allocation12 + $0x918] sm:$0xff] }
 0x13b   : > { %1521 = vmatpush.msra.mxu1 %v1156_v6  ;;  %1562 = vmatpush.msra.mxu3 %v1280_v7  ;;  %v1272_v18 = vld [vmem:[#allocation12 + $0xe30] sm:$0xff]  ;;  %v1237_v46 = vld [vmem:[#allocation12 + $0xd18] sm:$0xff] }
 0x13c   : > { %1504 = vmatpush.msra.mxu0 %v1080_v8  ;;  %1544 = vmatpush.msra.mxu2 %v1208_v10  ;;  %v1144_v22 = vld [vmem:[#allocation12 + $0xa30] sm:$0xff]  ;;  %v1181_v47 = vld [vmem:[#allocation12 + $0xb58] sm:$0xff] }
 0x13d   : > { %1522 = vmatpush.msra.mxu1 %v1152_v11  ;;  %1563 = vmatpush.msra.mxu3 %v1276_v12  ;;  %v1268_v23 = vld [vmem:[#allocation12 + $0xe10] sm:$0xff]  ;;  %v1305_v48 = vld [vmem:[#allocation12 + $0xf38] sm:$0xff] }
 0x13e   : > { %1505 = vmatpush.msra.mxu0 %v1076_v15  ;;  %1545 = vmatpush.msra.mxu2 %v1204_v16  ;;  %v1140_v26 = vld [vmem:[#allocation12 + $0xa10] sm:$0xff]  ;;  %v1105_v49 = vld [vmem:[#allocation12 + $0x8f8] sm:$0xff] }
 0x13f   : > { %1523 = vmatpush.msra.mxu1 %v1148_v17  ;;  %1564 = vmatpush.msra.mxu3 %v1272_v18  ;;  %v1233_v50 = vld [vmem:[#allocation12 + $0xcf8] sm:$0xff] }
 0x140   : > { %1426 = vmatmul.f32.vlgmr.msrb.gmra.mxu0 %v3929_v13  ;;  %1466 = vmatmul.f32.vlgmr.msrb.gmra.mxu2 %v3932_v14  ;;  %v1177_v51 = vld [vmem:[#allocation12 + $0xb38] sm:$0xff] }
 0x141   : > { %1570 = vmatpush.msrb.mxu0 %v1137_v20  ;;  %1610 = vmatpush.msrb.mxu2 %v1265_v21  ;;  %v1301_v52 = vld [vmem:[#allocation12 + $0xf18] sm:$0xff] }
 0x142   : > { %1524 = vmatpush.msra.mxu1 %v1144_v22  ;;  %1565 = vmatpush.msra.mxu3 %v1268_v23  ;;  %v1101_v53 = vld [vmem:[#allocation12 + $0x8d8] sm:$0xff] }
 0x143   : > { %1486 = vmatmul.f32.vlgmr.msrb.gmra.mxu3 %v3937_v19  ;;  %1571 = vmatpush.msrb.mxu0 %v1133_v24  ;;  %v1229_v54 = vld [vmem:[#allocation12 + $0xcd8] sm:$0xff]  ;;  %v1715_v24 = vld [vmem:[#allocation12 + $0x11e0] sm:$0xff] }
 0x144   : > { %1611 = vmatpush.msrb.mxu2 %v1261_v62  ;;  %1630 = vmatpush.msrb.mxu3 %v1329_v25  ;;  %v1173_v55 = vld [vmem:[#allocation12 + $0xb18] sm:$0xff]  ;;  %v1843_v62 = vld [vmem:[#allocation12 + $0x15e0] sm:$0xff] }
 0x145   : > { %1525 = vmatpush.msra.mxu1 %v1140_v26  ;;  %1572 = vmatpush.msrb.mxu0 %v1129_v27  ;;  %v1297_v56 = vld [vmem:[#allocation12 + $0xef8] sm:$0xff]  ;;  %v1711_v27 = vld [vmem:[#allocation12 + $0x11c0] sm:$0xff] }
 0x146   : > { %1446 = vmatmul.f32.vlgmr.msrb.gmra.mxu1 %v3941_v61  ;;  %1612 = vmatpush.msrb.mxu2 %v1257_v28  ;;  %v1097_v57 = vld [vmem:[#allocation12 + $0x8b8] sm:$0xff]  ;;  %v1839_v28 = vld [vmem:[#allocation12 + $0x15c0] sm:$0xff] }
 0x147   : > { %1590 = vmatpush.msrb.mxu1 %v1201_v3  ;;  %1631 = vmatpush.msrb.mxu3 %v1325_v29  ;;  %v1225_v58 = vld [vmem:[#allocation12 + $0xcb8] sm:$0xff]  ;;  %v1907_v29 = vld [vmem:[#allocation12 + $0x17e0] sm:$0xff] }
 0x148   : > { %1573 = vmatpush.msrb.mxu0 %v1125_v30  ;;  %1613 = vmatpush.msrb.mxu2 %v1253_v31  ;;  %v1169_v59 = vld [vmem:[#allocation12 + $0xaf8] sm:$0xff]  ;;  %v1707_v30 = vld [vmem:[#allocation12 + $0x11a0] sm:$0xff] }
 0x149   : > { %1591 = vmatpush.msrb.mxu1 %v1197_v32  ;;  %1632 = vmatpush.msrb.mxu3 %v1321_v33  ;;  %v1293_v60 = vld [vmem:[#allocation12 + $0xed8] sm:$0xff]  ;;  %v1835_v31 = vld [vmem:[#allocation12 + $0x15a0] sm:$0xff] }
 0x14a   : > { %1574 = vmatpush.msrb.mxu0 %v1121_v9  ;;  %1614 = vmatpush.msrb.mxu2 %v1249_v34  ;;  %v1093_v63 = vld [vmem:[#allocation12 + $0x898] sm:$0xff]  ;;  %v1779_v32 = vld [vmem:[#allocation12 + $0x13e0] sm:$0xff] }
 0x14b   : > { %1592 = vmatpush.msrb.mxu1 %v1193_v35  ;;  %1633 = vmatpush.msrb.mxu3 %v1317_v36  ;;  %v1221_v0 = vld [vmem:[#allocation12 + $0xc98] sm:$0xff]  ;;  %v1903_v33 = vld [vmem:[#allocation12 + $0x17c0] sm:$0xff] }
 0x14c   : > { %1575 = vmatpush.msrb.mxu0 %v1117_v37  ;;  %1615 = vmatpush.msrb.mxu2 %v1245_v38  ;;  %v1165_v1 = vld [vmem:[#allocation12 + $0xad8] sm:$0xff]  ;;  %v1831_v9 = vld [vmem:[#allocation12 + $0x1580] sm:$0xff] }
 0x14d   : > { %1593 = vmatpush.msrb.mxu1 %v1189_v39  ;;  %1634 = vmatpush.msrb.mxu3 %v1313_v40  ;;  %v1289_v2 = vld [vmem:[#allocation12 + $0xeb8] sm:$0xff]  ;;  %v1775_v34 = vld [vmem:[#allocation12 + $0x13c0] sm:$0xff] }
 0x14e   : > { %1576 = vmatpush.msrb.mxu0 %v1113_v41  ;;  %1616 = vmatpush.msrb.mxu2 %v1241_v42  ;;  %v1089_v4 = vld [vmem:[#allocation12 + $0x878] sm:$0xff]  ;;  %v1899_v35 = vld [vmem:[#allocation12 + $0x17a0] sm:$0xff] }
 0x14f   : > { %1594 = vmatpush.msrb.mxu1 %v1185_v43  ;;  %1635 = vmatpush.msrb.mxu3 %v1309_v44  ;;  %v1161_v5 = vld [vmem:[#allocation12 + $0xab8] sm:$0xff]  ;;  %v1827_v36 = vld [vmem:[#allocation12 + $0x1560] sm:$0xff] }
 0x150   : > { %1577 = vmatpush.msrb.mxu0 %v1109_v45  ;;  %1617 = vmatpush.msrb.mxu2 %v1237_v46  ;;  %v1217_v6 = vld [vmem:[#allocation12 + $0xc78] sm:$0xff]  ;;  %v1771_v37 = vld [vmem:[#allocation12 + $0x13a0] sm:$0xff] }
 0x151   : > { %1595 = vmatpush.msrb.mxu1 %v1181_v47  ;;  %1636 = vmatpush.msrb.mxu3 %v1305_v48  ;;  %v1285_v7 = vld [vmem:[#allocation12 + $0xe98] sm:$0xff]  ;;  %v1895_v38 = vld [vmem:[#allocation12 + $0x1780] sm:$0xff] }
 0x152   : > { %1578 = vmatpush.msrb.mxu0 %v1105_v49  ;;  %1618 = vmatpush.msrb.mxu2 %v1233_v50  ;;  %v1085_v8 = vld [vmem:[#allocation12 + $0x858] sm:$0xff]  ;;  %v1695_v39 = vld [vmem:[#allocation12 + $0x1140] sm:$0xff] }
 0x153   : > { %1596 = vmatpush.msrb.mxu1 %v1177_v51  ;;  %1637 = vmatpush.msrb.mxu3 %v1301_v52  ;;  %v1157_v10 = vld [vmem:[#allocation12 + $0xa98] sm:$0xff]  ;;  %v1891_v40 = vld [vmem:[#allocation12 + $0x1760] sm:$0xff] }
 0x154   : > { %1579 = vmatpush.msrb.mxu0 %v1101_v53  ;;  %1619 = vmatpush.msrb.mxu2 %v1229_v54  ;;  %v1213_v11 = vld [vmem:[#allocation12 + $0xc58] sm:$0xff]  ;;  %v1691_v41 = vld [vmem:[#allocation12 + $0x1120] sm:$0xff] }
 0x155   : > { %1597 = vmatpush.msrb.mxu1 %v1173_v55  ;;  %1638 = vmatpush.msrb.mxu3 %v1297_v56  ;;  %v1281_v12 = vld [vmem:[#allocation12 + $0xe78] sm:$0xff]  ;;  %v1819_v42 = vld [vmem:[#allocation12 + $0x1520] sm:$0xff] }
 0x156   : > { %1580 = vmatpush.msrb.mxu0 %v1097_v57  ;;  %1620 = vmatpush.msrb.mxu2 %v1225_v58  ;;  %v1081_v15 = vld [vmem:[#allocation12 + $0x838] sm:$0xff]  ;;  %v1763_v43 = vld [vmem:[#allocation12 + $0x1360] sm:$0xff] }
 0x157   : > { %1598 = vmatpush.msrb.mxu1 %v1169_v59  ;;  %1639 = vmatpush.msrb.mxu3 %v1293_v60  ;;  %v1153_v16 = vld [vmem:[#allocation12 + $0xa78] sm:$0xff]  ;;  %v1887_v44 = vld [vmem:[#allocation12 + $0x1740] sm:$0xff] }
 0x158   : > { %1581 = vmatpush.msrb.mxu0 %v1093_v63  ;;  %1621 = vmatpush.msrb.mxu2 %v1221_v0  ;;  %v1209_v17 = vld [vmem:[#allocation12 + $0xc38] sm:$0xff]  ;;  %v1687_v45 = vld [vmem:[#allocation12 + $0x1100] sm:$0xff] }
 0x159   : > { %1599 = vmatpush.msrb.mxu1 %v1165_v1  ;;  %1640 = vmatpush.msrb.mxu3 %v1289_v2  ;;  %v1277_v18 = vld [vmem:[#allocation12 + $0xe58] sm:$0xff]  ;;  %v1815_v46 = vld [vmem:[#allocation12 + $0x1500] sm:$0xff] }
 0x15a   : > { %1546 = vmatmul.f32.vlgmr.msra.gmra.mxu2 %v3932_v14  ;;  %1582 = vmatpush.msrb.mxu0 %v1089_v4  ;;  %v1077_v20 = vld [vmem:[#allocation12 + $0x818] sm:$0xff]  ;;  %v1759_v47 = vld [vmem:[#allocation12 + $0x1340] sm:$0xff] }
 0x15b   : > { %1600 = vmatpush.msrb.mxu1 %v1161_v5  ;;  %1622 = vmatpush.msrb.mxu2 %v1217_v6  ;;  %v1149_v21 = vld [vmem:[#allocation12 + $0xa58] sm:$0xff]  ;;  %v1883_v48 = vld [vmem:[#allocation12 + $0x1720] sm:$0xff] }
 0x15c   : > { %1641 = vmatpush.msrb.mxu3 %v1285_v7  ;;  %1583 = vmatpush.msrb.mxu0 %v1085_v8  ;;  %v1205_v22 = vld [vmem:[#allocation12 + $0xc18] sm:$0xff]  ;;  %v1683_v49 = vld [vmem:[#allocation12 + $0x10e0] sm:$0xff] }
 0x15d   : > { %1566 = vmatmul.f32.vlgmr.msra.gmra.mxu3 %v3937_v19  ;;  %1601 = vmatpush.msrb.mxu1 %v1157_v10  ;;  %v1273_v23 = vld [vmem:[#allocation12 + $0xe38] sm:$0xff]  ;;  %v1811_v50 = vld [vmem:[#allocation12 + $0x14e0] sm:$0xff] }
 0x15e   : > { %1623 = vmatpush.msrb.mxu2 %v1213_v11  ;;  %1642 = vmatpush.msrb.mxu3 %v1281_v12  ;;  %v1145_v25 = vld [vmem:[#allocation12 + $0xa38] sm:$0xff]  ;;  %v1755_v51 = vld [vmem:[#allocation12 + $0x1320] sm:$0xff] }
 0x15f   : > { %1506 = vmatmul.f32.vlgmr.msra.gmra.mxu0 %v3929_v13  ;;  %1526 = vmatmul.f32.vlgmr.msra.gmra.mxu1 %v3941_v61  ;;  %v1269_v26 = vld [vmem:[#allocation12 + $0xe18] sm:$0xff]  ;;  %v1879_v52 = vld [vmem:[#allocation12 + $0x1700] sm:$0xff] }
 0x160   : > { %1584 = vmatpush.msrb.mxu0 %v1081_v15  ;;  %1602 = vmatpush.msrb.mxu1 %v1153_v16  ;;  %v1141_v3 = vld [vmem:[#allocation12 + $0xa18] sm:$0xff]  ;;  %v1679_v53 = vld [vmem:[#allocation12 + $0x10c0] sm:$0xff] }
 0x161   : > { %1624 = vmatpush.msrb.mxu2 %v1209_v17  ;;  %1643 = vmatpush.msrb.mxu3 %v1277_v18  ;;  %v1807_v54 = vld [vmem:[#allocation12 + $0x14c0] sm:$0xff] }
 0x162   : > { %1585 = vmatpush.msrb.mxu0 %v1077_v20  ;;  %1603 = vmatpush.msrb.mxu1 %v1149_v21  ;;  %v1751_v55 = vld [vmem:[#allocation12 + $0x1300] sm:$0xff] }
 0x163   : > { %1625 = vmatpush.msrb.mxu2 %v1205_v22  ;;  %1644 = vmatpush.msrb.mxu3 %v1273_v23  ;;  %v1875_v56 = vld [vmem:[#allocation12 + $0x16e0] sm:$0xff] }
 0x164   : > { %1626 = vmatmul.f32.vlgmr.msrb.gmra.mxu2 %v3932_v14  ;;  %1911 = vmatpush.msra.mxu0 %v1715_v24  ;;  %v1703_v14 = vld [vmem:[#allocation12 + $0x1180] sm:$0xff]  ;;  %v1716_v24 = vld [vmem:[#allocation12 + $0x11e8] sm:$0xff] }
 0x165   : > { %1951 = vmatpush.msra.mxu2 %v1843_v62  ;;  %1604 = vmatpush.msrb.mxu1 %v1145_v25  ;;  %v1675_v57 = vld [vmem:[#allocation12 + $0x10a0] sm:$0xff]  ;;  %v1844_v62 = vld [vmem:[#allocation12 + $0x15e8] sm:$0xff] }
 0x166   : > { %1645 = vmatpush.msrb.mxu3 %v1269_v26  ;;  %1912 = vmatpush.msra.mxu0 %v1711_v27  ;;  %v1803_v58 = vld [vmem:[#allocation12 + $0x14a0] sm:$0xff]  ;;  %v1712_v27 = vld [vmem:[#allocation12 + $0x11c8] sm:$0xff] }
 0x167   : > { %1646 = vmatmul.f32.vlgmr.msrb.gmra.mxu3 %v3937_v19  ;;  %1952 = vmatpush.msra.mxu2 %v1839_v28  ;;  %v1699_v19 = vld [vmem:[#allocation12 + $0x1160] sm:$0xff]  ;;  %v1840_v28 = vld [vmem:[#allocation12 + $0x15c8] sm:$0xff] }
 0x168   : > { %1605 = vmatpush.msrb.mxu1 %v1141_v3  ;;  %1971 = vmatpush.msra.mxu3 %v1907_v29  ;;  %v1747_v59 = vld [vmem:[#allocation12 + $0x12e0] sm:$0xff]  ;;  %v1908_v3 = vld [vmem:[#allocation12 + $0x17e8] sm:$0xff] }
 0x169   : > { %1586 = vmatmul.f32.vlgmr.msrb.gmra.mxu0 %v3929_v13  ;;  %1606 = vmatmul.f32.vlgmr.msrb.gmra.mxu1 %v3941_v61  ;;  %v1823_v13 = vld [vmem:[#allocation12 + $0x1540] sm:$0xff] }
 0x16a   : > { %1913 = vmatpush.msra.mxu0 %v1707_v30  ;;  %1953 = vmatpush.msra.mxu2 %v1835_v31  ;;  %v1767_v61 = vld [vmem:[#allocation12 + $0x1380] sm:$0xff]  ;;  %v1708_v30 = vld [vmem:[#allocation12 + $0x11a8] sm:$0xff] }
 0x16b   : > { %1931 = vmatpush.msra.mxu1 %v1779_v32  ;;  %1972 = vmatpush.msra.mxu3 %v1903_v33  ;;  %v1871_v60 = vld [vmem:[#allocation12 + $0x16c0] sm:$0xff]  ;;  %v1836_v31 = vld [vmem:[#allocation12 + $0x15a8] sm:$0xff] }
 0x16c   : > { %1914 = vmatpush.msra.mxu0 %v1703_v14  ;;  %1954 = vmatpush.msra.mxu2 %v1831_v9  ;;  %v1671_v63 = vld [vmem:[#allocation12 + $0x1080] sm:$0xff]  ;;  %v1780_v32 = vld [vmem:[#allocation12 + $0x13e8] sm:$0xff] }
 0x16d   : > { %1932 = vmatpush.msra.mxu1 %v1775_v34  ;;  %1973 = vmatpush.msra.mxu3 %v1899_v35  ;;  %v1799_v0 = vld [vmem:[#allocation12 + $0x1480] sm:$0xff]  ;;  %v1904_v33 = vld [vmem:[#allocation12 + $0x17c8] sm:$0xff] }
 0x16e   : > { %1915 = vmatpush.msra.mxu0 %v1699_v19  ;;  %1955 = vmatpush.msra.mxu2 %v1827_v36  ;;  %v1743_v1 = vld [vmem:[#allocation12 + $0x12c0] sm:$0xff]  ;;  %v1704_v14 = vld [vmem:[#allocation12 + $0x1188] sm:$0xff] }
 0x16f   : > { %1933 = vmatpush.msra.mxu1 %v1771_v37  ;;  %1974 = vmatpush.msra.mxu3 %v1895_v38  ;;  %v1867_v2 = vld [vmem:[#allocation12 + $0x16a0] sm:$0xff]  ;;  %v1832_v9 = vld [vmem:[#allocation12 + $0x1588] sm:$0xff] }
 0x170   : > { %1916 = vmatpush.msra.mxu0 %v1695_v39  ;;  %1956 = vmatpush.msra.mxu2 %v1823_v13  ;;  %v1667_v4 = vld [vmem:[#allocation12 + $0x1060] sm:$0xff]  ;;  %v1776_v34 = vld [vmem:[#allocation12 + $0x13c8] sm:$0xff] }
 0x171   : > { %1934 = vmatpush.msra.mxu1 %v1767_v61  ;;  %1975 = vmatpush.msra.mxu3 %v1891_v40  ;;  %v1795_v5 = vld [vmem:[#allocation12 + $0x1460] sm:$0xff]  ;;  %v1900_v35 = vld [vmem:[#allocation12 + $0x17a8] sm:$0xff] }
 0x172   : > { %1917 = vmatpush.msra.mxu0 %v1691_v41  ;;  %1957 = vmatpush.msra.mxu2 %v1819_v42  ;;  %v1739_v6 = vld [vmem:[#allocation12 + $0x12a0] sm:$0xff]  ;;  %v1700_v19 = vld [vmem:[#allocation12 + $0x1168] sm:$0xff] }
 0x173   : > { %1935 = vmatpush.msra.mxu1 %v1763_v43  ;;  %1976 = vmatpush.msra.mxu3 %v1887_v44  ;;  %v1863_v7 = vld [vmem:[#allocation12 + $0x1680] sm:$0xff]  ;;  %v1828_v36 = vld [vmem:[#allocation12 + $0x1568] sm:$0xff] }
 0x174   : > { %1918 = vmatpush.msra.mxu0 %v1687_v45  ;;  %1958 = vmatpush.msra.mxu2 %v1815_v46  ;;  %v1663_v8 = vld [vmem:[#allocation12 + $0x1040] sm:$0xff]  ;;  %v1772_v37 = vld [vmem:[#allocation12 + $0x13a8] sm:$0xff] }
 0x175   : > { %1936 = vmatpush.msra.mxu1 %v1759_v47  ;;  %1977 = vmatpush.msra.mxu3 %v1883_v48  ;;  %v1791_v10 = vld [vmem:[#allocation12 + $0x1440] sm:$0xff]  ;;  %v1896_v38 = vld [vmem:[#allocation12 + $0x1788] sm:$0xff] }
 0x176   : > { %1919 = vmatpush.msra.mxu0 %v1683_v49  ;;  %1959 = vmatpush.msra.mxu2 %v1811_v50  ;;  %v1735_v11 = vld [vmem:[#allocation12 + $0x1280] sm:$0xff]  ;;  %v1696_v39 = vld [vmem:[#allocation12 + $0x1148] sm:$0xff] }
 0x177   : > { %1937 = vmatpush.msra.mxu1 %v1755_v51  ;;  %1978 = vmatpush.msra.mxu3 %v1879_v52  ;;  %v1859_v12 = vld [vmem:[#allocation12 + $0x1660] sm:$0xff]  ;;  %v1824_v13 = vld [vmem:[#allocation12 + $0x1548] sm:$0xff] }
 0x178   : > { %1920 = vmatpush.msra.mxu0 %v1679_v53  ;;  %1960 = vmatpush.msra.mxu2 %v1807_v54  ;;  %v1659_v15 = vld [vmem:[#allocation12 + $0x1020] sm:$0xff]  ;;  %v1768_v61 = vld [vmem:[#allocation12 + $0x1388] sm:$0xff] }
 0x179   : > { %1938 = vmatpush.msra.mxu1 %v1751_v55  ;;  %1979 = vmatpush.msra.mxu3 %v1875_v56  ;;  %v1787_v16 = vld [vmem:[#allocation12 + $0x1420] sm:$0xff]  ;;  %v1892_v40 = vld [vmem:[#allocation12 + $0x1768] sm:$0xff] }
 0x17a   : > { %1921 = vmatpush.msra.mxu0 %v1675_v57  ;;  %1961 = vmatpush.msra.mxu2 %v1803_v58  ;;  %v1731_v17 = vld [vmem:[#allocation12 + $0x1260] sm:$0xff]  ;;  %v1692_v41 = vld [vmem:[#allocation12 + $0x1128] sm:$0xff] }
 0x17b   : > { %1939 = vmatpush.msra.mxu1 %v1747_v59  ;;  %1980 = vmatpush.msra.mxu3 %v1871_v60  ;;  %v1855_v18 = vld [vmem:[#allocation12 + $0x1640] sm:$0xff]  ;;  %v1820_v42 = vld [vmem:[#allocation12 + $0x1528] sm:$0xff] }
 0x17c   : > { %1922 = vmatpush.msra.mxu0 %v1671_v63  ;;  %1962 = vmatpush.msra.mxu2 %v1799_v0  ;;  %v1655_v20 = vld [vmem:[#allocation12 + $0x1000] sm:$0xff]  ;;  %v1764_v43 = vld [vmem:[#allocation12 + $0x1368] sm:$0xff] }
 0x17d   : > { %1940 = vmatpush.msra.mxu1 %v1743_v1  ;;  %1981 = vmatpush.msra.mxu3 %v1867_v2  ;;  %v1783_v21 = vld [vmem:[#allocation12 + $0x1400] sm:$0xff]  ;;  %v1888_v44 = vld [vmem:[#allocation12 + $0x1748] sm:$0xff] }
 0x17e   : > { %1923 = vmatpush.msra.mxu0 %v1667_v4  ;;  %1963 = vmatpush.msra.mxu2 %v1795_v5  ;;  %v1727_v22 = vld [vmem:[#allocation12 + $0x1240] sm:$0xff]  ;;  %v1688_v45 = vld [vmem:[#allocation12 + $0x1108] sm:$0xff] }
 0x17f   : > { %1941 = vmatpush.msra.mxu1 %v1739_v6  ;;  %1982 = vmatpush.msra.mxu3 %v1863_v7  ;;  %v1851_v23 = vld [vmem:[#allocation12 + $0x1620] sm:$0xff]  ;;  %v1816_v46 = vld [vmem:[#allocation12 + $0x1508] sm:$0xff] }
 0x180   : > { %1924 = vmatpush.msra.mxu0 %v1663_v8  ;;  %1964 = vmatpush.msra.mxu2 %v1791_v10  ;;  %v1723_v25 = vld [vmem:[#allocation12 + $0x1220] sm:$0xff]  ;;  %v1760_v47 = vld [vmem:[#allocation12 + $0x1348] sm:$0xff] }
 0x181   : > { %1942 = vmatpush.msra.mxu1 %v1735_v11  ;;  %1983 = vmatpush.msra.mxu3 %v1859_v12  ;;  %v1847_v26 = vld [vmem:[#allocation12 + $0x1600] sm:$0xff]  ;;  %v1884_v48 = vld [vmem:[#allocation12 + $0x1728] sm:$0xff] }
 0x182   : > { %1925 = vmatpush.msra.mxu0 %v1659_v15  ;;  %1965 = vmatpush.msra.mxu2 %v1787_v16  ;;  %v1719_v29 = vld [vmem:[#allocation12 + $0x1200] sm:$0xff]  ;;  %v1684_v49 = vld [vmem:[#allocation12 + $0x10e8] sm:$0xff] }
 0x183   : > { %1943 = vmatpush.msra.mxu1 %v1731_v17  ;;  %1984 = vmatpush.msra.mxu3 %v1855_v18  ;;  %v1812_v50 = vld [vmem:[#allocation12 + $0x14e8] sm:$0xff] }
 0x184   : > { %1926 = vmatpush.msra.mxu0 %v1655_v20  ;;  %1966 = vmatpush.msra.mxu2 %v1783_v21  ;;  %v1756_v51 = vld [vmem:[#allocation12 + $0x1328] sm:$0xff] }
 0x185   : > { %1944 = vmatpush.msra.mxu1 %v1727_v22  ;;  %1985 = vmatpush.msra.mxu3 %v1851_v23  ;;  %v1880_v52 = vld [vmem:[#allocation12 + $0x1708] sm:$0xff]  ;;  %v3957_v22 = vld [vmem:[%s3894_s5] sm:$0xff]  ;;  %v3960_v23 = vld [vmem:[%s3894_s5 + $0x10] sm:$0xff] }
 0x186   : > { %1991 = vmatpush.msrb.mxu0 %v1716_v24  ;;  %2031 = vmatpush.msrb.mxu2 %v1844_v62  ;;  %v1680_v53 = vld [vmem:[#allocation12 + $0x10c8] sm:$0xff] }
 0x187   : > { %1945 = vmatpush.msra.mxu1 %v1723_v25  ;;  %1986 = vmatpush.msra.mxu3 %v1847_v26  ;;  %v1808_v54 = vld [vmem:[#allocation12 + $0x14c8] sm:$0xff]  ;;  %v1717_v25 = vld [vmem:[#allocation12 + $0x11f0] sm:$0xff] }
 0x188   : > { %1992 = vmatpush.msrb.mxu0 %v1712_v27  ;;  %2032 = vmatpush.msrb.mxu2 %v1840_v28  ;;  %v1752_v55 = vld [vmem:[#allocation12 + $0x1308] sm:$0xff]  ;;  %v1845_v26 = vld [vmem:[#allocation12 + $0x15f0] sm:$0xff] }
 0x189   : > { %2051 = vmatpush.msrb.mxu3 %v1908_v3  ;;  %1946 = vmatpush.msra.mxu1 %v1719_v29  ;;  %v1876_v56 = vld [vmem:[#allocation12 + $0x16e8] sm:$0xff]  ;;  %v1713_v3 = vld [vmem:[#allocation12 + $0x11d0] sm:$0xff] }
 0x18a   : > { %1993 = vmatpush.msrb.mxu0 %v1708_v30  ;;  %2033 = vmatpush.msrb.mxu2 %v1836_v31  ;;  %v1676_v57 = vld [vmem:[#allocation12 + $0x10a8] sm:$0xff]  ;;  %v1841_v29 = vld [vmem:[#allocation12 + $0x15d0] sm:$0xff]  ;;  %v3965_v30 = vld [vmem:[%s3894_s5 + $0x18] sm:$0xff] }
 0x18b   : > { %2011 = vmatpush.msrb.mxu1 %v1780_v32  ;;  %2052 = vmatpush.msrb.mxu3 %v1904_v33  ;;  %v1804_v58 = vld [vmem:[#allocation12 + $0x14a8] sm:$0xff]  ;;  %v1909_v32 = vld [vmem:[#allocation12 + $0x17f0] sm:$0xff] }
 0x18c   : > { %1994 = vmatpush.msrb.mxu0 %v1704_v14  ;;  %2034 = vmatpush.msrb.mxu2 %v1832_v9  ;;  %v1748_v59 = vld [vmem:[#allocation12 + $0x12e8] sm:$0xff]  ;;  %v1709_v33 = vld [vmem:[#allocation12 + $0x11b0] sm:$0xff] }
 0x18d   : > { %2012 = vmatpush.msrb.mxu1 %v1776_v34  ;;  %2053 = vmatpush.msrb.mxu3 %v1900_v35  ;;  %v1872_v60 = vld [vmem:[#allocation12 + $0x16c8] sm:$0xff]  ;;  %v1837_v14 = vld [vmem:[#allocation12 + $0x15b0] sm:$0xff] }
 0x18e   : > { %1995 = vmatpush.msrb.mxu0 %v1700_v19  ;;  %2035 = vmatpush.msrb.mxu2 %v1828_v36  ;;  %v1672_v63 = vld [vmem:[#allocation12 + $0x1088] sm:$0xff]  ;;  %v1781_v34 = vld [vmem:[#allocation12 + $0x13f0] sm:$0xff] }
 0x18f   : > { %2013 = vmatpush.msrb.mxu1 %v1772_v37  ;;  %2054 = vmatpush.msrb.mxu3 %v1896_v38  ;;  %v1800_v0 = vld [vmem:[#allocation12 + $0x1488] sm:$0xff]  ;;  %v1905_v35 = vld [vmem:[#allocation12 + $0x17d0] sm:$0xff]  ;;  %v3971_v37 = vpop.f32.mrf.mxu0  ;;  %v3973_v38 = vpop.f32.mrf.mxu1 }
 0x190   : > { %1996 = vmatpush.msrb.mxu0 %v1696_v39  ;;  %2036 = vmatpush.msrb.mxu2 %v1824_v13  ;;  %v1744_v1 = vld [vmem:[#allocation12 + $0x12c8] sm:$0xff]  ;;  %v1705_v19 = vld [vmem:[#allocation12 + $0x1190] sm:$0xff] }
 0x191   : > { %2014 = vmatpush.msrb.mxu1 %v1768_v61  ;;  %2055 = vmatpush.msrb.mxu3 %v1892_v40  ;;  %v1868_v2 = vld [vmem:[#allocation12 + $0x16a8] sm:$0xff]  ;;  %v1833_v36 = vld [vmem:[#allocation12 + $0x1590] sm:$0xff]  ;;  %v3976_v61 = vpop.f32.mrf.mxu2 }
 0x192   : > { %1997 = vmatpush.msrb.mxu0 %v1692_v41  ;;  %2037 = vmatpush.msrb.mxu2 %v1820_v42  ;;  %v1668_v4 = vld [vmem:[#allocation12 + $0x1068] sm:$0xff]  ;;  %v1777_v39 = vld [vmem:[#allocation12 + $0x13d0] sm:$0xff] }
 0x193   : > { %2015 = vmatpush.msrb.mxu1 %v1764_v43  ;;  %2056 = vmatpush.msrb.mxu3 %v1888_v44  ;;  %v1796_v5 = vld [vmem:[#allocation12 + $0x1468] sm:$0xff]  ;;  %v1901_v13 = vld [vmem:[#allocation12 + $0x17b0] sm:$0xff] }
 0x194   : > { %1998 = vmatpush.msrb.mxu0 %v1688_v45  ;;  %2038 = vmatpush.msrb.mxu2 %v1816_v46  ;;  %v1740_v6 = vld [vmem:[#allocation12 + $0x12a8] sm:$0xff]  ;;  %v1701_v40 = vld [vmem:[#allocation12 + $0x1170] sm:$0xff]  ;;  %v3978_v46 = vpop.f32.mrf.mxu3 }
 0x195   : > { %2016 = vmatpush.msrb.mxu1 %v1760_v47  ;;  %2057 = vmatpush.msrb.mxu3 %v1884_v48  ;;  %v1864_v7 = vld [vmem:[#allocation12 + $0x1688] sm:$0xff]  ;;  %v1829_v41 = vld [vmem:[#allocation12 + $0x1570] sm:$0xff] }
 0x196   : > { %1999 = vmatpush.msrb.mxu0 %v1684_v49  ;;  %2039 = vmatpush.msrb.mxu2 %v1812_v50  ;;  %v1664_v8 = vld [vmem:[#allocation12 + $0x1048] sm:$0xff]  ;;  %v1773_v42 = vld [vmem:[#allocation12 + $0x13b0] sm:$0xff] }
 0x197   : > { %2017 = vmatpush.msrb.mxu1 %v1756_v51  ;;  %2058 = vmatpush.msrb.mxu3 %v1880_v52  ;;  %v1792_v10 = vld [vmem:[#allocation12 + $0x1448] sm:$0xff]  ;;  %v1897_v43 = vld [vmem:[#allocation12 + $0x1790] sm:$0xff] }
 0x198   : > { %2000 = vmatpush.msrb.mxu0 %v1680_v53  ;;  %2040 = vmatpush.msrb.mxu2 %v1808_v54  ;;  %v1736_v11 = vld [vmem:[#allocation12 + $0x1288] sm:$0xff]  ;;  %v1697_v44 = vld [vmem:[#allocation12 + $0x1150] sm:$0xff] }
 0x199   : > { %2018 = vmatpush.msrb.mxu1 %v1752_v55  ;;  %2059 = vmatpush.msrb.mxu3 %v1876_v56  ;;  %v1860_v12 = vld [vmem:[#allocation12 + $0x1668] sm:$0xff]  ;;  %v1825_v45 = vld [vmem:[#allocation12 + $0x1550] sm:$0xff]  ;;  %v3980_v55 = vpop.f32.mrf.mxu0  ;;  %v3982_v56 = vpop.f32.mrf.mxu1 }
 0x19a   : > { %2001 = vmatpush.msrb.mxu0 %v1676_v57  ;;  %2041 = vmatpush.msrb.mxu2 %v1804_v58  ;;  %v1660_v15 = vld [vmem:[#allocation12 + $0x1028] sm:$0xff]  ;;  %v1769_v47 = vld [vmem:[#allocation12 + $0x1390] sm:$0xff] }
 0x19b   : > { %2019 = vmatpush.msrb.mxu1 %v1748_v59  ;;  %2060 = vmatpush.msrb.mxu3 %v1872_v60  ;;  %v1788_v16 = vld [vmem:[#allocation12 + $0x1428] sm:$0xff]  ;;  %v1893_v48 = vld [vmem:[#allocation12 + $0x1770] sm:$0xff]  ;;  %v3984_v59 = vpop.f32.mrf.mxu2 }
 0x19c   : > { %2002 = vmatpush.msrb.mxu0 %v1672_v63  ;;  %2042 = vmatpush.msrb.mxu2 %v1800_v0  ;;  %v1732_v17 = vld [vmem:[#allocation12 + $0x1268] sm:$0xff]  ;;  %v1693_v49 = vld [vmem:[#allocation12 + $0x1130] sm:$0xff]  ;;  %v343_v0 = vlaneseq }
 0x19d   : > { %2020 = vmatpush.msrb.mxu1 %v1744_v1  ;;  %2061 = vmatpush.msrb.mxu3 %v1868_v2  ;;  %v1856_v18 = vld [vmem:[#allocation12 + $0x1648] sm:$0xff]  ;;  %v1821_v50 = vld [vmem:[#allocation12 + $0x1530] sm:$0xff] }
 0x19e   : > { %2003 = vmatpush.msrb.mxu0 %v1668_v4  ;;  %2043 = vmatpush.msrb.mxu2 %v1796_v5  ;;  %v1656_v20 = vld [vmem:[#allocation12 + $0x1008] sm:$0xff]  ;;  %v1765_v51 = vld [vmem:[#allocation12 + $0x1370] sm:$0xff] }
 0x19f   : > { %2021 = vmatpush.msrb.mxu1 %v1740_v6  ;;  %2062 = vmatpush.msrb.mxu3 %v1864_v7  ;;  %v1784_v21 = vld [vmem:[#allocation12 + $0x1408] sm:$0xff]  ;;  %v1889_v52 = vld [vmem:[#allocation12 + $0x1750] sm:$0xff]  ;;  %v3986_v6 = vpop.f32.mrf.mxu3 }
 0x1a0   : > { %2004 = vmatpush.msrb.mxu0 %v1664_v8  ;;  %2044 = vmatpush.msrb.mxu2 %v1792_v10  ;;  %v1728_v24 = vld [vmem:[#allocation12 + $0x1248] sm:$0xff]  ;;  %v1689_v53 = vld [vmem:[#allocation12 + $0x1110] sm:$0xff] }
 0x1a1   : > { %2022 = vmatpush.msrb.mxu1 %v1736_v11  ;;  %2063 = vmatpush.msrb.mxu3 %v1860_v12  ;;  %v1852_v62 = vld [vmem:[#allocation12 + $0x1628] sm:$0xff]  ;;  %v1817_v54 = vld [vmem:[#allocation12 + $0x1510] sm:$0xff]  ;;  %v3988_v12 = vand.u32 127, %v343_v0  ;;  %v1910_v0 = vld [vmem:[#allocation12 + $0x17f8] sm:$0xff] }
 0x1a2   : > { %2005 = vmatpush.msrb.mxu0 %v1660_v15  ;;  %2045 = vmatpush.msrb.mxu2 %v1788_v16  ;;  %v1724_v27 = vld [vmem:[#allocation12 + $0x1228] sm:$0xff]  ;;  %v1761_v57 = vld [vmem:[#allocation12 + $0x1350] sm:$0xff] }
 0x1a3   : > { %2023 = vmatpush.msrb.mxu1 %v1732_v17  ;;  %2064 = vmatpush.msrb.mxu3 %v1856_v18  ;;  %v1848_v28 = vld [vmem:[#allocation12 + $0x1608] sm:$0xff]  ;;  %v1885_v58 = vld [vmem:[#allocation12 + $0x1730] sm:$0xff] }
 0x1a4   : > { %2006 = vmatpush.msrb.mxu0 %v1656_v20  ;;  %2046 = vmatpush.msrb.mxu2 %v1784_v21  ;;  %v1720_v31 = vld [vmem:[#allocation12 + $0x1208] sm:$0xff]  ;;  %v1685_v60 = vld [vmem:[#allocation12 + $0x10f0] sm:$0xff]  ;;  %v3990_v20 = vpop.f32.mrf.mxu0  ;;  %v3992_v21 = vpop.f32.mrf.mxu1 }
 0x1a5   : > { %1927 = vmatmul.f32.vlgmr.msra.gmra.mxu0 %v3957_v22  ;;  %1967 = vmatmul.f32.vlgmr.msra.gmra.mxu2 %v3960_v23  ;;  %v3968_v9 = vld [vmem:[%s3894_s5 + $0x8] sm:$0xff]  ;;  %v1813_v63 = vld [vmem:[#allocation12 + $0x14f0] sm:$0xff] }
 0x1a6   : > { %2024 = vmatpush.msrb.mxu1 %v1728_v24  ;;  %2065 = vmatpush.msrb.mxu3 %v1852_v62  ;;  %v1757_v1 = vld [vmem:[#allocation12 + $0x1330] sm:$0xff] }
 0x1a7   : > { %2071 = vmatpush.msra.mxu0 %v1717_v25  ;;  %2111 = vmatpush.msra.mxu2 %v1845_v26  ;;  %v1881_v2 = vld [vmem:[#allocation12 + $0x1710] sm:$0xff]  ;;  %v3994_v25 = vpop.f32.mrf.mxu2 }
 0x1a8   : > { %2025 = vmatpush.msrb.mxu1 %v1724_v27  ;;  %2066 = vmatpush.msrb.mxu3 %v1848_v28  ;;  %v1681_v4 = vld [vmem:[#allocation12 + $0x10d0] sm:$0xff]  ;;  %v3997_v28 = vand.u32 15, %v3988_v12 }
 0x1a9   : > { %2072 = vmatpush.msra.mxu0 %v1713_v3  ;;  %2112 = vmatpush.msra.mxu2 %v1841_v29  ;;  %v1809_v5 = vld [vmem:[#allocation12 + $0x14d0] sm:$0xff] }
 0x1aa   : > { %1987 = vmatmul.f32.vlgmr.msra.gmra.mxu3 %v3965_v30  ;;  %2026 = vmatpush.msrb.mxu1 %v1720_v31  ;;  %v1753_v7 = vld [vmem:[#allocation12 + $0x1310] sm:$0xff]  ;;  %vm396_vm0 = vcmp.eq.s32.totalorder %v3997_v28, 0  ;;  %vm400_vm1 = vcmp.eq.s32.totalorder %v3997_v28, 2  ;;  %vm404_vm2 = vcmp.eq.s32.totalorder %v3997_v28, 3  ;;  %vm408_vm4 = vcmp.eq.s32.totalorder %v3997_v28, 4 }
 0x1ab   : > { %2131 = vmatpush.msra.mxu3 %v1909_v32  ;;  %2073 = vmatpush.msra.mxu0 %v1709_v33  ;;  %v1877_v8 = vld [vmem:[#allocation12 + $0x16f0] sm:$0xff]  ;;  %v3999_v33 = vpop.f32.mrf.mxu3  ;;  %vm4010_vm3 = vmor %vm396_vm0, %vm400_vm1  ;;  %vm412_vm6 = vcmp.eq.s32.totalorder %v3997_v28, 8  ;;  %vm416_vm8 = vcmp.eq.s32.totalorder %v3997_v28, 9  ;;  %vm420_vm12 = vcmp.eq.s32.totalorder %v3997_v28, 10 }
 0x1ac   : > { %2113 = vmatpush.msra.mxu2 %v1837_v14  ;;  %1947 = vmatmul.f32.vlgmr.msra.gmra.mxu1 %v3968_v9  ;;  %v1677_v10 = vld [vmem:[#allocation12 + $0x10b0] sm:$0xff]  ;;  %vm4023_vm5 = vmor %vm4010_vm3, %vm404_vm2 }
 0x1ad   : > { %2091 = vmatpush.msra.mxu1 %v1781_v34  ;;  %2132 = vmatpush.msra.mxu3 %v1905_v35  ;;  %v1805_v11 = vld [vmem:[#allocation12 + $0x14b0] sm:$0xff]  ;;  %vm4036_vm7 = vmor %vm4023_vm5, %vm408_vm4 }
 0x1ae   : > { %2074 = vmatpush.msra.mxu0 %v1705_v19  ;;  %2114 = vmatpush.msra.mxu2 %v1833_v36  ;;  %v1749_v15 = vld [vmem:[#allocation12 + $0x12f0] sm:$0xff]  ;;  %vm4055_vm9 = vmor %vm4036_vm7, %vm412_vm6 }
 0x1af   : > { %2092 = vmatpush.msra.mxu1 %v1777_v39  ;;  %2133 = vmatpush.msra.mxu3 %v1901_v13  ;;  %v1873_v16 = vld [vmem:[#allocation12 + $0x16d0] sm:$0xff]  ;;  %vm4073_vm13 = vmor %vm4055_vm9, %vm416_vm8 }
 0x1b0   : > { %2075 = vmatpush.msra.mxu0 %v1701_v40  ;;  %2115 = vmatpush.msra.mxu2 %v1829_v41  ;;  %v1673_v17 = vld [vmem:[#allocation12 + $0x1090] sm:$0xff]  ;;  %v4003_v41 = vpop.f32.mrf.mxu0  ;;  %vm4092_vm2 = vmor %vm4073_vm13, %vm420_vm12 }
 0x1b1   : > { %2093 = vmatpush.msra.mxu1 %v1773_v42  ;;  %2134 = vmatpush.msra.mxu3 %v1897_v43  ;;  %v1801_v18 = vld [vmem:[#allocation12 + $0x1490] sm:$0xff]  ;;  %v4005_v42 = vpop.f32.mrf.mxu1  ;;  %v1822_v43 = vld [vmem:[#allocation12 + $0x1538] sm:$0xff] }
 0x1b2   : > { %2076 = vmatpush.msra.mxu0 %v1697_v44  ;;  %2116 = vmatpush.msra.mxu2 %v1825_v45  ;;  %v1745_v24 = vld [vmem:[#allocation12 + $0x12d0] sm:$0xff]  ;;  %v4014_v44 = vpop.f32.mrf.mxu2 }
 0x1b3   : > { %2094 = vmatpush.msra.mxu1 %v1769_v47  ;;  %2135 = vmatpush.msra.mxu3 %v1893_v48  ;;  %v1869_v62 = vld [vmem:[#allocation12 + $0x16b0] sm:$0xff]  ;;  %v1718_v48 = vld [vmem:[#allocation12 + $0x11f8] sm:$0xff] }
 0x1b4   : > { %2077 = vmatpush.msra.mxu0 %v1693_v49  ;;  %2117 = vmatpush.msra.mxu2 %v1821_v50  ;;  %v1669_v26 = vld [vmem:[#allocation12 + $0x1070] sm:$0xff]  ;;  %v1846_v49 = vld [vmem:[#allocation12 + $0x15f8] sm:$0xff] }
 0x1b5   : > { %2095 = vmatpush.msra.mxu1 %v1765_v51  ;;  %2136 = vmatpush.msra.mxu3 %v1889_v52  ;;  %v1797_v27 = vld [vmem:[#allocation12 + $0x1470] sm:$0xff] }
 0x1b6   : > { %2078 = vmatpush.msra.mxu0 %v1689_v53  ;;  %2118 = vmatpush.msra.mxu2 %v1817_v54  ;;  %v1741_v3 = vld [vmem:[#allocation12 + $0x12b0] sm:$0xff]  ;;  %v345_v53 = vadd.s32 128, %v3988_v12  ;;  %v4028_v54 = vpop.f32.mrf.mxu3 }
 0x1b7   : > { %2096 = vmatpush.msra.mxu1 %v1761_v57  ;;  %2137 = vmatpush.msra.mxu3 %v1885_v58  ;;  %v1865_v29 = vld [vmem:[#allocation12 + $0x1690] sm:$0xff]  ;;  %v1714_v57 = vld [vmem:[#allocation12 + $0x11d8] sm:$0xff] }
 0x1b8   : > { %2079 = vmatpush.msra.mxu0 %v1685_v60  ;;  %2119 = vmatpush.msra.mxu2 %v1813_v63  ;;  %v1665_v31 = vld [vmem:[#allocation12 + $0x1050] sm:$0xff]  ;;  %v1842_v58 = vld [vmem:[#allocation12 + $0x15d8] sm:$0xff]  ;;  %v346_v63 = vadd.s32 256, %v3988_v12 }
 0x1b9   : > { %2097 = vmatpush.msra.mxu1 %v1757_v1  ;;  %2138 = vmatpush.msra.mxu3 %v1881_v2  ;;  %v1793_v32 = vld [vmem:[#allocation12 + $0x1450] sm:$0xff]  ;;  %v1710_v1 = vld [vmem:[#allocation12 + $0x11b8] sm:$0xff] }
 0x1ba   : > { %2080 = vmatpush.msra.mxu0 %v1681_v4  ;;  %2120 = vmatpush.msra.mxu2 %v1809_v5  ;;  %v1737_v14 = vld [vmem:[#allocation12 + $0x1290] sm:$0xff]  ;;  %v1838_v4 = vld [vmem:[#allocation12 + $0x15b8] sm:$0xff]  ;;  %v4040_v5 = vand.u32 15, %v345_v53 }
 0x1bb   : > { %2098 = vmatpush.msra.mxu1 %v1753_v7  ;;  %2139 = vmatpush.msra.mxu3 %v1877_v8  ;;  %v1861_v34 = vld [vmem:[#allocation12 + $0x1670] sm:$0xff]  ;;  %v347_v7 = vadd.s32 384, %v3988_v12  ;;  %v4043_v8 = vpop.f32.mrf.mxu0  ;;  %v1690_v53 = vld [vmem:[#allocation12 + $0x1118] sm:$0xff] }
 0x1bc   : > { %2081 = vmatpush.msra.mxu0 %v1677_v10  ;;  %2121 = vmatpush.msra.mxu2 %v1805_v11  ;;  %v1661_v35 = vld [vmem:[#allocation12 + $0x1030] sm:$0xff]  ;;  %v4045_v10 = vpop.f32.mrf.mxu1  ;;  %v1782_v11 = vld [vmem:[#allocation12 + $0x13f8] sm:$0xff]  ;;  %vm397_vm10 = vcmp.eq.s32.totalorder %v4040_v5, 0  ;;  %vm401_vm11 = vcmp.eq.s32.totalorder %v4040_v5, 2  ;;  %vm405_vm0 = vcmp.eq.s32.totalorder %v4040_v5, 3  ;;  %vm409_vm7 = vcmp.eq.s32.totalorder %v4040_v5, 4 }
 0x1bd   : > { %2099 = vmatpush.msra.mxu1 %v1749_v15  ;;  %2140 = vmatpush.msra.mxu3 %v1873_v16  ;;  %v1789_v19 = vld [vmem:[#allocation12 + $0x1430] sm:$0xff]  ;;  %v1906_v15 = vld [vmem:[#allocation12 + $0x17d8] sm:$0xff]  ;;  %v4048_v16 = vpop.f32.mrf.mxu2  ;;  %vm4084_vm1 = vmor %vm397_vm10, %vm401_vm11  ;;  %vm413_vm13 = vcmp.eq.s32.totalorder %v4040_v5, 8 }
 0x1be   : > { %2082 = vmatpush.msra.mxu0 %v1673_v17  ;;  %2122 = vmatpush.msra.mxu2 %v1801_v18  ;;  %v1733_v36 = vld [vmem:[#allocation12 + $0x1270] sm:$0xff]  ;;  %v1706_v17 = vld [vmem:[#allocation12 + $0x1198] sm:$0xff]  ;;  %vm4118_vm8 = vmor %vm4084_vm1, %vm405_vm0  ;;  %vm424_vm1 = vcmp.eq.s32.totalorder %v3997_v28, 14 }
 0x1bf   : > { %2100 = vmatpush.msra.mxu1 %v1745_v24  ;;  %2141 = vmatpush.msra.mxu3 %v1869_v62  ;;  %v1857_v39 = vld [vmem:[#allocation12 + $0x1650] sm:$0xff]  ;;  %v1834_v18 = vld [vmem:[#allocation12 + $0x1598] sm:$0xff]  ;;  %v4059_v24 = vand.u32 15, %v346_v63 }
 0x1c0   : > { %2083 = vmatpush.msra.mxu0 %v1669_v26  ;;  %2123 = vmatpush.msra.mxu2 %v1797_v27  ;;  %v1657_v13 = vld [vmem:[#allocation12 + $0x1010] sm:$0xff]  ;;  %v1778_v62 = vld [vmem:[#allocation12 + $0x13d8] sm:$0xff] }
 0x1c1   : > { %2101 = vmatpush.msra.mxu1 %v1741_v3  ;;  %2142 = vmatpush.msra.mxu3 %v1865_v29  ;;  %v1785_v40 = vld [vmem:[#allocation12 + $0x1410] sm:$0xff]  ;;  %v1902_v26 = vld [vmem:[#allocation12 + $0x17b8] sm:$0xff]  ;;  %v4064_v29 = vand.u32 15, %v347_v7  ;;  %vm398_vm14 = vcmp.eq.s32.totalorder %v4059_v24, 0  ;;  %vm402_vm15 = vcmp.eq.s32.totalorder %v4059_v24, 2  ;;  %vm406_vm5 = vcmp.eq.s32.totalorder %v4059_v24, 3 }
 0x1c2   : > { %2084 = vmatpush.msra.mxu0 %v1665_v31  ;;  %2124 = vmatpush.msra.mxu2 %v1793_v32  ;;  %v1729_v45 = vld [vmem:[#allocation12 + $0x1250] sm:$0xff]  ;;  %v1702_v27 = vld [vmem:[#allocation12 + $0x1178] sm:$0xff]  ;;  %v4066_v31 = vpop.f32.mrf.mxu3  ;;  %vm4107_vm6 = vmor %vm398_vm14, %vm402_vm15  ;;  %vm410_vm11 = vcmp.eq.s32.totalorder %v4059_v24, 4 }
 0x1c3   : > { %2102 = vmatpush.msra.mxu1 %v1737_v14  ;;  %2143 = vmatpush.msra.mxu3 %v1861_v34  ;;  %v1853_v47 = vld [vmem:[#allocation12 + $0x1630] sm:$0xff]  ;;  %v1830_v3 = vld [vmem:[#allocation12 + $0x1578] sm:$0xff]  ;;  %vm399_vm3 = vcmp.eq.s32.totalorder %v4064_v29, 0  ;;  %vm403_vm4 = vcmp.eq.s32.totalorder %v4064_v29, 2  ;;  %vm407_vm9 = vcmp.eq.s32.totalorder %v4064_v29, 3  ;;  %vm4136_vm12 = vmor %vm4107_vm6, %vm406_vm5  ;;  %vm411_vm15 = vcmp.eq.s32.totalorder %v4064_v29, 4 }
 0x1c4   : > { %2085 = vmatpush.msra.mxu0 %v1661_v35  ;;  %2125 = vmatpush.msra.mxu2 %v1789_v19  ;;  %v1725_v50 = vld [vmem:[#allocation12 + $0x1230] sm:$0xff]  ;;  %v1774_v32 = vld [vmem:[#allocation12 + $0x13b8] sm:$0xff]  ;;  %vm4127_vm10 = vmor %vm399_vm3, %vm403_vm4  ;;  %vm414_vm3 = vcmp.eq.s32.totalorder %v4059_v24, 8  ;;  %vm417_vm5 = vcmp.eq.s32.totalorder %v4040_v5, 9 }
 0x1c5   : > { %2103 = vmatpush.msra.mxu1 %v1733_v36  ;;  %2144 = vmatpush.msra.mxu3 %v1857_v39  ;;  %v1849_v51 = vld [vmem:[#allocation12 + $0x1610] sm:$0xff]  ;;  %v1898_v14 = vld [vmem:[#allocation12 + $0x1798] sm:$0xff]  ;;  %v4111_v52 = vpop.f32.mrf.mxu2  ;;  %vm4147_vm14 = vmor %vm4118_vm8, %vm409_vm7  ;;  %vm415_vm7 = vcmp.eq.s32.totalorder %v4064_v29, 8 }
 0x1c6   : > { %2086 = vmatpush.msra.mxu0 %v1657_v13  ;;  %2126 = vmatpush.msra.mxu2 %v1785_v40  ;;  %v1721_v60 = vld [vmem:[#allocation12 + $0x1210] sm:$0xff]  ;;  %v1698_v35 = vld [vmem:[#allocation12 + $0x1158] sm:$0xff]  ;;  %vm4156_vm0 = vmor %vm4127_vm10, %vm407_vm9  ;;  %vm418_vm10 = vcmp.eq.s32.totalorder %v4059_v24, 9 }
 0x1c7   : > { %2007 = vmatmul.f32.vlgmr.msrb.gmra.mxu0 %v3957_v22  ;;  %2047 = vmatmul.f32.vlgmr.msrb.gmra.mxu2 %v3960_v23  ;;  %v1826_v19 = vld [vmem:[#allocation12 + $0x1558] sm:$0xff]  ;;  %vm4166_vm4 = vmor %vm4136_vm12, %vm410_vm11 }
 0x1c8   : > { %2104 = vmatpush.msra.mxu1 %v1729_v45  ;;  %2145 = vmatpush.msra.mxu3 %v1853_v47  ;;  %v1770_v36 = vld [vmem:[#allocation12 + $0x1398] sm:$0xff]  ;;  %v4098_v47 = vpop.f32.mrf.mxu0  ;;  %vm4175_vm6 = vmor %vm4147_vm14, %vm413_vm13  ;;  %vm419_vm13 = vcmp.eq.s32.totalorder %v4064_v29, 9 }
 0x1c9   : > { %2151 = vmatpush.msrb.mxu0 %v1718_v48  ;;  %2191 = vmatpush.msrb.mxu2 %v1846_v49  ;;  %v1894_v39 = vld [vmem:[#allocation12 + $0x1778] sm:$0xff]  ;;  %v4100_v48 = vpop.f32.mrf.mxu1  ;;  %vm4184_vm8 = vmor %vm4156_vm0, %vm411_vm15  ;;  %vm422_vm15 = vcmp.eq.s32.totalorder %v4059_v24, 10 }
 0x1ca   : > { %2105 = vmatpush.msra.mxu1 %v1725_v50  ;;  %2146 = vmatpush.msra.mxu3 %v1849_v51  ;;  %v1694_v40 = vld [vmem:[#allocation12 + $0x1138] sm:$0xff]  ;;  %v4140_v7 = vpop.f32.mrf.mxu3  ;;  %vm4192_vm9 = vmor %vm4092_vm2, %vm424_vm1  ;;  %vm421_vm2 = vcmp.eq.s32.totalorder %v4040_v5, 10  ;;  %v1448_v45 = vadd.f32 %v4100_v48, %v4098_v47  ;;  %vm425_vm1 = vcmp.eq.s32.totalorder %v4040_v5, 14  ;;  %v926_v48 = vadd.f32 %v3992_v21, %v3990_v20 }
 0x1cb   : > { %2152 = vmatpush.msrb.mxu0 %v1714_v57  ;;  %2192 = vmatpush.msrb.mxu2 %v1842_v58  ;;  %v1766_v49 = vld [vmem:[#allocation12 + $0x1378] sm:$0xff]  ;;  %vm4201_vm11 = vmor %vm4166_vm4, %vm414_vm3  ;;  %vm423_vm4 = vcmp.eq.s32.totalorder %v4064_v29, 10 }
 0x1cc   : > { %2067 = vmatmul.f32.vlgmr.msrb.gmra.mxu3 %v3965_v30  ;;  %2106 = vmatpush.msra.mxu1 %v1721_v60  ;;  %v1890_v50 = vld [vmem:[#allocation12 + $0x1758] sm:$0xff]  ;;  %vm4212_vm12 = vmor %vm4175_vm6, %vm417_vm5  ;;  %vm426_vm6 = vcmp.eq.s32.totalorder %v4059_v24, 14 }
 0x1cd   : > { %2211 = vmatpush.msrb.mxu3 %v1910_v0  ;;  %2153 = vmatpush.msrb.mxu0 %v1710_v1  ;;  %v1818_v57 = vld [vmem:[#allocation12 + $0x1518] sm:$0xff]  ;;  %vm4223_vm14 = vmor %vm4184_vm8, %vm415_vm7 }
 0x1ce   : > { %2193 = vmatpush.msrb.mxu2 %v1838_v4  ;;  %2027 = vmatmul.f32.vlgmr.msrb.gmra.mxu1 %v3968_v9  ;;  %v1762_v60 = vld [vmem:[#allocation12 + $0x1358] sm:$0xff]  ;;  %vm4232_vm0 = vmor %vm4201_vm11, %vm418_vm10  ;;  %vm427_vm10 = vcmp.eq.s32.totalorder %v4064_v29, 14 }
 0x1cf   : > { %2171 = vmatpush.msrb.mxu1 %v1782_v11  ;;  %2212 = vmatpush.msrb.mxu3 %v1906_v15  ;;  %v1886_v63 = vld [vmem:[#allocation12 + $0x1738] sm:$0xff]  ;;  %vm4243_vm3 = vmor %vm4212_vm12, %vm421_vm2 }
 0x1d0   : > { %2154 = vmatpush.msrb.mxu0 %v1706_v17  ;;  %2194 = vmatpush.msrb.mxu2 %v1834_v18  ;;  %v1686_v1 = vld [vmem:[#allocation12 + $0x10f8] sm:$0xff]  ;;  %vm4253_vm5 = vmor %vm4223_vm14, %vm419_vm13  ;;  %v1468_v17 = vadd.f32 %v4111_v52, %v1448_v45  ;;  %v766_v52 = vadd.f32 %v3973_v38, %v3971_v37  ;;  %vm2258_vm13 = vcmask 64512  }
 0x1d1   : > { %2172 = vmatpush.msrb.mxu1 %v1778_v62  ;;  %2213 = vmatpush.msrb.mxu3 %v1902_v26  ;;  %v1814_v2 = vld [vmem:[#allocation12 + $0x14f8] sm:$0xff]  ;;  %vm4263_vm7 = vmor %vm4232_vm0, %vm422_vm15 }
 0x1d2   : > { %2155 = vmatpush.msrb.mxu0 %v1702_v27  ;;  %2195 = vmatpush.msrb.mxu2 %v1830_v3  ;;  %v1758_v11 = vld [vmem:[#allocation12 + $0x1338] sm:$0xff]  ;;  %vm4273_vm8 = vmor %vm4243_vm3, %vm425_vm1  ;;  %v786_v24 = vadd.f32 %v3976_v61, %v766_v52 }
 0x1d3   : > { %2173 = vmatpush.msrb.mxu1 %v1774_v32  ;;  %2214 = vmatpush.msrb.mxu3 %v1898_v14  ;;  %v1882_v15 = vld [vmem:[#allocation12 + $0x1718] sm:$0xff]  ;;  %vm4285_vm11 = vmor %vm4253_vm5, %vm423_vm4 }
 0x1d4   : > { %2156 = vmatpush.msrb.mxu0 %v1698_v35  ;;  %2196 = vmatpush.msrb.mxu2 %v1826_v19  ;;  %v1682_v18 = vld [vmem:[#allocation12 + $0x10d8] sm:$0xff]  ;;  %vm4294_vm2 = vmor %vm4263_vm7, %vm426_vm6 }
 0x1d5   : > { %2174 = vmatpush.msrb.mxu1 %v1770_v36  ;;  %2215 = vmatpush.msrb.mxu3 %v1894_v39  ;;  %v1810_v12 = vld [vmem:[#allocation12 + $0x14d8] sm:$0xff]  ;;  %vm4308_vm12 = vmor %vm4285_vm11, %vm427_vm10 }
 0x1d6   : > { %2157 = vmatpush.msrb.mxu0 %v1694_v40  ;;  %2197 = vmatpush.msrb.mxu2 %v1822_v43  ;;  %v1754_v26 = vld [vmem:[#allocation12 + $0x1318] sm:$0xff] }
 0x1d7   : > { %2175 = vmatpush.msrb.mxu1 %v1766_v49  ;;  %2216 = vmatpush.msrb.mxu3 %v1890_v50  ;;  %v1878_v27 = vld [vmem:[#allocation12 + $0x16f8] sm:$0xff] }
 0x1d8   : > { %2158 = vmatpush.msrb.mxu0 %v1690_v53  ;;  %2198 = vmatpush.msrb.mxu2 %v1818_v57  ;;  %v1678_v32 = vld [vmem:[#allocation12 + $0x10b8] sm:$0xff]  ;;  %v1368_v53 = vadd.f32 %v4045_v10, %v4043_v8 }
 0x1d9   : > { %2176 = vmatpush.msrb.mxu1 %v1762_v60  ;;  %2217 = vmatpush.msrb.mxu3 %v1886_v63  ;;  %v1806_v14 = vld [vmem:[#allocation12 + $0x14b8] sm:$0xff] }
 0x1da   : > { %2159 = vmatpush.msrb.mxu0 %v1686_v1  ;;  %2199 = vmatpush.msrb.mxu2 %v1814_v2  ;;  %v1750_v35 = vld [vmem:[#allocation12 + $0x12f8] sm:$0xff]  ;;  %v1388_v4 = vadd.f32 %v4048_v16, %v1368_v53  ;;  %v1006_v2 = vadd.f32 %v4005_v42, %v4003_v41 }
 0x1db   : > { %2177 = vmatpush.msrb.mxu1 %v1758_v11  ;;  %2218 = vmatpush.msrb.mxu3 %v1882_v15  ;;  %v1874_v19 = vld [vmem:[#allocation12 + $0x16d8] sm:$0xff] }
 0x1dc   : > { %2160 = vmatpush.msrb.mxu0 %v1682_v18  ;;  %2200 = vmatpush.msrb.mxu2 %v1810_v12  ;;  %v1507_v36 = vpop.f32.mrf.mxu0  ;;  %v1527_v39 = vpop.f32.mrf.mxu1  ;;  %v1674_v40 = vld [vmem:[#allocation12 + $0x1098] sm:$0xff]  ;;  %v1408_v38 = vadd.f32 %v4066_v31, %v1388_v4  ;;  %v1026_v21 = vadd.f32 %v4014_v44, %v1006_v2 }
 0x1dd   : > { %2178 = vmatpush.msrb.mxu1 %v1754_v26  ;;  %2219 = vmatpush.msrb.mxu3 %v1878_v27  ;;  %v1802_v43 = vld [vmem:[#allocation12 + $0x1498] sm:$0xff]  ;;  %v1547_v49 = vpop.f32.mrf.mxu2  ;;  %v1528_v8 = vadd.f32 %v1527_v39, %v1507_v36 }
 0x1de   : > { %2161 = vmatpush.msrb.mxu0 %v1678_v32  ;;  %2201 = vmatpush.msrb.mxu2 %v1806_v14  ;;  %v1746_v57 = vld [vmem:[#allocation12 + $0x12d8] sm:$0xff]  ;;  %v846_v14 = vadd.f32 %v3982_v56, %v3980_v55  ;;  %v1488_v56 = vadd.f32 %v4140_v7, %v1468_v17  ;;  %v1046_v41 = vadd.f32 %v4028_v54, %v1026_v21 }
 0x1df   : > { %2179 = vmatpush.msrb.mxu1 %v1750_v35  ;;  %2220 = vmatpush.msrb.mxu3 %v1874_v19  ;;  %v1870_v58 = vld [vmem:[#allocation12 + $0x16b8] sm:$0xff]  ;;  %v1548_v16 = vadd.f32 %v1547_v49, %v1528_v8  ;;  %v3710_v49 = vmov 0.0  }
 0x1e0   : > { %2162 = vmatpush.msrb.mxu0 %v1674_v40  ;;  %2202 = vmatpush.msrb.mxu2 %v1802_v43  ;;  %v1670_v60 = vld [vmem:[#allocation12 + $0x1078] sm:$0xff]  ;;  %v1567_v47 = vpop.f32.mrf.mxu3  ;;  %v3363_v51 = vsel %vm4192_vm9, 1.0, %v3710_v49  ;;  %v866_v45 = vadd.f32 %v3984_v59, %v846_v14  ;;  %v3364_v61 = vsel %vm4273_vm8, 1.0, %v3710_v49  ;;  %v3365_v29 = vsel %vm4294_vm2, 1.0, %v3710_v49 }
 0x1e1   : > { %v1798_v63 = vld [vmem:[#allocation12 + $0x1478] sm:$0xff]  ;;  %2087 = vmatmul.f32.vlgmr.msra.gmra.mxu0 %v3957_v22  ;;  %2127 = vmatmul.f32.vlgmr.msra.gmra.mxu2 %v3960_v23  ;;  %v1568_v39 = vadd.f32 %v1567_v47, %v1548_v16  ;;  %v2231_v50 = vmul.f32 %v3363_v51, %v1408_v38  ;;  %v806_v47 = vadd.f32 %v3978_v46, %v786_v24  ;;  %vm1056_vm9 = vcmask 7168  }
 0x1e2   : > { %v1742_v0 = vld [vmem:[#allocation12 + $0x12b8] sm:$0xff]  ;;  %2180 = vmatpush.msrb.mxu1 %v1746_v57  ;;  %2221 = vmatpush.msrb.mxu3 %v1870_v58  ;;  %v2232_v58 = vmul.f32 %v3364_v61, %v1488_v56  ;;  %v946_v46 = vadd.f32 %v3994_v25, %v926_v48  ;;  %1061 = vst.msk [vmem:[#allocation5] sm:$0xff] %vm1056_vm9, %v3710_v49 }
 0x1e3   : > { %v1866_v1 = vld [vmem:[#allocation12 + $0x1698] sm:$0xff]  ;;  %2163 = vmatpush.msrb.mxu0 %v1670_v60  ;;  %2203 = vmatpush.msrb.mxu2 %v1798_v63  ;;  %v2233_v8 = vmul.f32 %v3365_v29, %v1568_v39  ;;  %v3366_v63 = vsel %vm4308_vm12, 1.0, %v3710_v49  ;;  %1062 = vst.msk [vmem:[#allocation5 + $0x8] sm:$0xff] %vm1056_vm9, %v3710_v49 }
 0x1e4   : > { %v1666_v11 = vld [vmem:[#allocation12 + $0x1058] sm:$0xff]  ;;  %2181 = vmatpush.msrb.mxu1 %v1742_v0  ;;  %2222 = vmatpush.msrb.mxu3 %v1866_v1  ;;  %v886_v1 = vadd.f32 %v3986_v6, %v866_v45  ;;  %v966_v6 = vadd.f32 %v3999_v33, %v946_v46  ;;  %v1051_v4 = vmul.f32 %v3366_v63, %v1046_v41 }
 0x1e5   : > { %v1794_v18 = vld [vmem:[#allocation12 + $0x1458] sm:$0xff]  ;;  %2147 = vmatmul.f32.vlgmr.msra.gmra.mxu3 %v3965_v30  ;;  %2164 = vmatpush.msrb.mxu0 %v1666_v11  ;;  %1063 = vst.msk [vmem:[#allocation5 + $0x10] sm:$0xff] %vm1056_vm9, %v3710_v49 }
 0x1e6   : > { %v1738_v12 = vld [vmem:[#allocation12 + $0x1298] sm:$0xff]  ;;  %2204 = vmatpush.msrb.mxu2 %v1794_v18  ;;  %v1587_v35 = vpop.f32.mrf.mxu0  ;;  %v1607_v19 = vpop.f32.mrf.mxu1  ;;  %2107 = vmatmul.f32.vlgmr.msra.gmra.mxu1 %v3968_v9  ;;  %v1049_v20 = vmul.f32 %v3364_v61, %v886_v1  ;;  %v1050_v42 = vmul.f32 %v3365_v29, %v966_v6  ;;  %1064 = vst.msk [vmem:[#allocation5 + $0x18] sm:$0xff] %vm1056_vm9, %v3710_v49  ;;  %v3712_v29 = vmov 0  }
 0x1e7   : > { %v1862_v26 = vld [vmem:[#allocation12 + $0x1678] sm:$0xff]  ;;  %2182 = vmatpush.msrb.mxu1 %v1738_v12  ;;  %v1608_v13 = vadd.f32 %v1607_v19, %v1587_v35  ;;  %v1627_v40 = vpop.f32.mrf.mxu2  ;;  %3468 = vset.pattern.permute.xlu2 %v3712_v29 }
 0x1e8   : > { %v1662_v3 = vld [vmem:[#allocation12 + $0x1038] sm:$0xff]  ;;  %2223 = vmatpush.msrb.mxu3 %v1862_v26  ;;  %3469 = vset.pattern.permute.xlu0 %v3712_v29 }
 0x1e9   : > { %v1790_v32 = vld [vmem:[#allocation12 + $0x1438] sm:$0xff]  ;;  %2165 = vmatpush.msrb.mxu0 %v1662_v3  ;;  %v1628_v28 = vadd.f32 %v1627_v40, %v1608_v13  ;;  %3470 = vset.pattern.permute.xlu1 %v3712_v29  ;;  %v2650_v29 = vld [vmem:[#allocation12 + $0x19a0] sm:$0xff] }
 0x1ea   : > { %v1734_v5 = vld [vmem:[#allocation12 + $0x1278] sm:$0xff]  ;;  %2205 = vmatpush.msrb.mxu2 %v1790_v32  ;;  %v1647_v57 = vpop.f32.mrf.mxu3 }
 0x1eb   : > { %v1858_v34 = vld [vmem:[#allocation12 + $0x1658] sm:$0xff]  ;;  %2183 = vmatpush.msrb.mxu1 %v1734_v5  ;;  %v1648_v59 = vadd.f32 %v1647_v57, %v1628_v28  ;;  %v3711_v5 = vmov -inf  }
 0x1ec   : > { %v1658_v31 = vld [vmem:[#allocation12 + $0x1018] sm:$0xff]  ;;  %2224 = vmatpush.msrb.mxu3 %v1858_v34  ;;  %1058 = vst.msk [vmem:[#allocation4 + $0x8] sm:$0xff] %vm1056_vm9, %v3711_v5 }
 0x1ed   : > { %v1786_v36 = vld [vmem:[#allocation12 + $0x1418] sm:$0xff]  ;;  %2166 = vmatpush.msrb.mxu0 %v1658_v31  ;;  %v2234_v0 = vmul.f32 %v3366_v63, %v1648_v59  ;;  %1057 = vst.msk [vmem:[#allocation4] sm:$0xff] %vm1056_vm9, %v3711_v5 }
 0x1ee   : > { %v1730_v43 = vld [vmem:[#allocation12 + $0x1258] sm:$0xff]  ;;  %2206 = vmatpush.msrb.mxu2 %v1786_v36  ;;  %2167 = vmatmul.f32.vlgmr.msrb.gmra.mxu0 %v3957_v22  ;;  %1059 = vst.msk [vmem:[#allocation4 + $0x10] sm:$0xff] %vm1056_vm9, %v3711_v5 }
 0x1ef   : > { %v1854_v53 = vld [vmem:[#allocation12 + $0x1638] sm:$0xff]  ;;  %2184 = vmatpush.msrb.mxu1 %v1730_v43  ;;  %2207 = vmatmul.f32.vlgmr.msrb.gmra.mxu2 %v3960_v23  ;;  %v1048_v23 = vmul.f32 %v3363_v51, %v806_v47  ;;  %1060 = vst.msk [vmem:[#allocation4 + $0x18] sm:$0xff] %vm1056_vm9, %v3711_v5 }
 0x1f0   : > { %v1726_v10 = vld [vmem:[#allocation12 + $0x1238] sm:$0xff]  ;;  %2225 = vmatpush.msrb.mxu3 %v1854_v53  ;;  %2251 = vmatpush.xpose.msra.mxu0 %v2231_v50 }
 0x1f1   : > { %v1850_v60 = vld [vmem:[#allocation12 + $0x1618] sm:$0xff]  ;;  %2331 = vmatpush.xpose.msra.mxu2 %v2232_v58  ;;  %2185 = vmatpush.msrb.mxu1 %v1726_v10 }
 0x1f2   : > { %v1722_v22 = vld [vmem:[#allocation12 + $0x1218] sm:$0xff]  ;;  %2226 = vmatpush.msrb.mxu3 %v1850_v60 }
 0x1f3   : > { %2227 = vmatmul.f32.vlgmr.msrb.gmra.mxu3 %v3965_v30  ;;  %2186 = vmatpush.msrb.mxu1 %v1722_v22  ;;  %v4352_v50 = vld [vmem:[#allocation4 + $0x8] sm:$0xff] }
 0x1f4   : > { %2412 = vmatpush.xpose.msrb.mxu0 %v2233_v8  ;;  %2187 = vmatmul.f32.vlgmr.msrb.gmra.mxu1 %v3968_v9  ;;  %v2257_v10 = vld [vmem:[#allocation4] sm:$0xff] }
 0x1f5   : > { %2493 = vmatpush.xpose.msrb.mxu2 %v2234_v0  ;;  %v2419_v1 = vld [vmem:[#allocation4 + $0x10] sm:$0xff] }
 0x1f6   : > { %2252 = vmatmul.f32.vlgmr.msra.gmra.mxu0 %v1048_v23  ;;  %v2500_v60 = vld [vmem:[#allocation4 + $0x18] sm:$0xff] }
 0x1f7   : > { %2332 = vmatmul.f32.vlgmr.msra.gmra.mxu2 %v1049_v20 }
 0x1fe   : > { %2413 = vmatmul.f32.vlgmr.msrb.gmra.mxu0 %v1050_v42 }
 0x1ff   : > { %2494 = vmatmul.f32.vlgmr.msrb.gmra.mxu2 %v1051_v4 }
 0x222   : > { %v1928_v30 = vpop.f32.mrf.mxu0 }
 0x228   : > { %v1968_v15 = vpop.f32.mrf.mxu2 }
 0x229   : > { %v1948_v11 = vpop.f32.mrf.mxu1 }
 0x22a   : > { %v1949_v17 = vadd.f32 %v1948_v11, %v1928_v30 }
 0x22c   : > { %v1969_v25 = vadd.f32 %v1968_v15, %v1949_v17 }
 0x22d   : > { %v1988_v18 = vpop.f32.mrf.mxu3 }
 0x22e   : > { %v1989_v9 = vadd.f32 %v1988_v18, %v1969_v25 }
 0x230   : > { %2307 = vmatpush.msra.mxu1 %v1989_v9 }
 0x244   : > { %v2008_v12 = vpop.f32.mrf.mxu0 }
 0x24a   : > { %v2048_v16 = vpop.f32.mrf.mxu2 }
 0x24b   : > { %v2028_v44 = vpop.f32.mrf.mxu1 }
 0x24c   : > { %v2029_v62 = vadd.f32 %v2028_v44, %v2008_v12 }
 0x24e   : > { %v2049_v26 = vadd.f32 %v2048_v16, %v2029_v62 }
 0x24f   : > { %v2068_v33 = vpop.f32.mrf.mxu3 }
 0x250   : > { %v2069_v52 = vadd.f32 %v2068_v33, %v2049_v26 }
 0x252   : > { %2388 = vmatpush.msra.mxu3 %v2069_v52 }
 0x25e   : > { %v2088_v54 = vpop.f32.mrf.mxu0 }
 0x263   : > { %v2108_v27 = vpop.f32.mrf.mxu1 }
 0x264   : > { %v2128_v3 = vpop.f32.mrf.mxu2  ;;  %v2109_v32 = vadd.f32 %v2108_v27, %v2088_v54 }
 0x266   : > { %v2129_v14 = vadd.f32 %v2128_v3, %v2109_v32 }
 0x268   : > { %v2148_v37 = vpop.f32.mrf.mxu3 }
 0x269   : > { %v2149_v38 = vadd.f32 %v2148_v37, %v2129_v14 }
 0x26b   : > { %2469 = vmatpush.msrb.mxu1 %v2149_v38  ;;  %v2168_v34 = vpop.f32.mrf.mxu0 }
 0x271   : > { %v2188_v35 = vpop.f32.mrf.mxu1 }
 0x272   : > { %v2189_v19 = vadd.f32 %v2188_v35, %v2168_v34  ;;  %v2208_v55 = vpop.f32.mrf.mxu2  ;;  %v2274_v34 = vld [vmem:[#allocation5] sm:$0xff] }
 0x273   : > { %v2253_v40 = vpop.f32.mrf.mxu0 }
 0x274   : > { %v2209_v56 = vadd.f32 %v2208_v55, %v2189_v19  ;;  %v2256_v24 = vmul.f32 0.125, %v2253_v40 }
 0x276   : > { %v2228_v31 = vpop.f32.mrf.mxu3  ;;  %v2259_v53 = vsel %vm2258_vm13, %v2256_v24, -inf }
 0x277   : > { %v2229_v36 = vadd.f32 %v2228_v31, %v2209_v56 }
 0x279   : > { %2550 = vmatpush.msrb.mxu3 %v2229_v36  ;;  %v2517_v36 = vld [vmem:[#allocation5 + $0x18] sm:$0xff] }
 0x27a   : > { %v2333_v39 = vpop.f32.mrf.mxu2 }
 0x27b   : > { %v2336_v13 = vmul.f32 0.125, %v2333_v39  ;;  %v2414_v45 = vpop.f32.mrf.mxu0 }
 0x27c   : > { %v2417_v61 = vmul.f32 0.125, %v2414_v45  ;;  %v2654_v45 = vld [vmem:[#allocation12 + $0x19c0] sm:$0xff] }
 0x27d   : > { %v2339_v43 = vsel %vm2258_vm13, %v2336_v13, -inf }
 0x27e   : > { %2340 = vmax.xlane.f32.xlu0 %v2339_v43  ;;  %v2420_v49 = vsel %vm2258_vm13, %v2417_v61, -inf  ;;  %v2436_v43 = vld [vmem:[#allocation5 + $0x10] sm:$0xff] }
 0x282   : > { %v2495_v51 = vpop.f32.mrf.mxu2 }
 0x283   : > { %v2498_v7 = vmul.f32 0.125, %v2495_v51 }
 0x285   : > { %v2501_v28 = vsel %vm2258_vm13, %v2498_v7, -inf }
 0x286   : > { %2260 = vmax.xlane.f32.xlu0 %v2259_v53  ;;  %2502 = vmax.xlane.f32.xlu1 %v2501_v28  ;;  %v2658_v53 = vld [vmem:[#allocation12 + $0x19e0] sm:$0xff] }
 0x287   : > { %v2850_v28 = vld [vmem:[#allocation12 + $0x1fe0] sm:$0xff]  ;;  %2854 = vmatpush.msra.mxu0 %v2658_v53 }
 0x288   : > { %v2762_v53 = vld [vmem:[#allocation12 + $0x1d20] sm:$0xff] }
 0x289   : > { %2855 = vmatpush.msra.mxu0 %v2654_v45  ;;  %v2670_v45 = vld [vmem:[#allocation12 + $0x1a40] sm:$0xff] }
 0x28b   : > { %2856 = vmatpush.msra.mxu0 %v2650_v29  ;;  %v2843_v29 = vld [vmem:[#allocation12 + $0x1fa8] sm:$0xff] }
 0x28e   : > { %2421 = vmax.xlane.f32.xlu1 %v2420_v49  ;;  %v2846_v49 = vld [vmem:[#allocation12 + $0x1fc0] sm:$0xff] }
 0x2f1   : > { %v2341_v57 = vpop.xlane.xlu0 %2340 }
 0x2f2   : > { %v4355_v58 = vmax.f32 %v4352_v50, %v2341_v57  ;;  %v2355_v57 = vld [vmem:[#allocation5 + $0x8] sm:$0xff] }
 0x2f4   : > { %v2343_v8 = vsub.f32 %v4352_v50, %v4355_v58  ;;  %2395 = vst.msk [vmem:[#allocation4 + $0x8] sm:$0xff] %vm1056_vm9, %v4355_v58  ;;  %2348 = vperm.xlu2 %3468, %v4355_v58   ;;  %v2842_v50 = vld [vmem:[#allocation12 + $0x1fa0] sm:$0xff] }
 0x2f5   : > { %v2646_v58 = vld [vmem:[#allocation12 + $0x1980] sm:$0xff] }
 0x2f6   : > { %v2344_v37 = vmul.f32 1.442695, %v2343_v8  ;;  %v2838_v8 = vld [vmem:[#allocation12 + $0x1f80] sm:$0xff]  ;;  %2857 = vmatpush.msra.mxu0 %v2646_v58 }
 0x2f7   : > { %v2754_v58 = vld [vmem:[#allocation12 + $0x1ce0] sm:$0xff] }
 0x2f9   : > { %v2261_v59 = vpop.xlane.xlu0 %2260  ;;  %v2503_v63 = vpop.xlane.xlu1 %2502 }
 0x2fa   : > { %v2262_v47 = vmax.f32 %v2257_v10, %v2261_v59  ;;  %v2504_v48 = vmax.f32 %v2500_v60, %v2503_v63  ;;  %v2722_v59 = vld [vmem:[#allocation12 + $0x1be0] sm:$0xff] }
 0x2fc   : > { %v2263_v22 = vsub.f32 %v2257_v10, %v2262_v47  ;;  %2314 = vst.msk [vmem:[#allocation4] sm:$0xff] %vm1056_vm9, %v2262_v47  ;;  %v2505_v0 = vsub.f32 %v2500_v60, %v2504_v48  ;;  %2268 = vperm.xlu2 %3468, %v2262_v47   ;;  %2510 = vperm.xlu0 %3469, %v2504_v48   ;;  %v2642_v60 = vld [vmem:[#allocation12 + $0x1960] sm:$0xff] }
 0x2fd   : > { %2557 = vst.msk [vmem:[#allocation4 + $0x18] sm:$0xff] %vm1056_vm9, %v2504_v48  ;;  %v2834_v47 = vld [vmem:[#allocation12 + $0x1f60] sm:$0xff]  ;;  %2858 = vmatpush.msra.mxu0 %v2642_v60  ;;  %v2643_v60 = vld [vmem:[#allocation12 + $0x1968] sm:$0xff] }
 0x2fe   : > { %v2506_v52 = vmul.f32 1.442695, %v2505_v0  ;;  %v2264_v32 = vmul.f32 1.442695, %v2263_v22  ;;  %v2718_v48 = vld [vmem:[#allocation12 + $0x1bc0] sm:$0xff] }
 0x301   : > { %v2422_v2 = vpop.xlane.xlu1 %2421 }
 0x302   : > { %v2423_v23 = vmax.f32 %v2419_v1, %v2422_v2 }
 0x304   : > { %v2424_v46 = vsub.f32 %v2419_v1, %v2423_v23  ;;  %2476 = vst.msk [vmem:[#allocation4 + $0x10] sm:$0xff] %vm1056_vm9, %v2423_v23  ;;  %2429 = vperm.xlu1 %3470, %v2423_v23   ;;  %v2638_v1 = vld [vmem:[#allocation12 + $0x1940] sm:$0xff] }
 0x305   : > { %v2830_v23 = vld [vmem:[#allocation12 + $0x1f40] sm:$0xff]  ;;  %2859 = vmatpush.msra.mxu0 %v2638_v1 }
 0x306   : > { %v2425_v3 = vmul.f32 1.442695, %v2424_v46  ;;  %v2714_v46 = vld [vmem:[#allocation12 + $0x1ba0] sm:$0xff] }
 0x307   : > { %v2746_v1 = vld [vmem:[#allocation12 + $0x1ca0] sm:$0xff] }
 0x34e   : > { %v2349_v20 = vpop.permute.xlu2 %2348 }
 0x34f   : > { %v2351_v21 = vsub.f32 %v2336_v13, %v2349_v20  ;;  %v2634_v20 = vld [vmem:[#allocation12 + $0x1920] sm:$0xff] }
 0x350   : > { %2860 = vmatpush.msra.mxu0 %v2634_v20  ;;  %v2742_v20 = vld [vmem:[#allocation12 + $0x1c80] sm:$0xff] }
 0x351   : > { %v2352_v6 = vmul.f32 1.442695, %v2351_v21  ;;  %v2826_v21 = vld [vmem:[#allocation12 + $0x1f20] sm:$0xff] }
 0x353   : > { %3471 = vpow2.f32 %v2352_v6  ;;  %v2710_v6 = vld [vmem:[#allocation12 + $0x1b80] sm:$0xff] }
 0x356   : > { %v2269_v41 = vpop.permute.xlu2 %2268 }
 0x357   : > { %v2271_v42 = vsub.f32 %v2256_v24, %v2269_v41  ;;  %v2630_v41 = vld [vmem:[#allocation12 + $0x1900] sm:$0xff] }
 0x358   : > { %2861 = vmatpush.msra.mxu0 %v2630_v41  ;;  %v2823_v41 = vld [vmem:[#allocation12 + $0x1f08] sm:$0xff] }
 0x359   : > { %v3472_v4 = vpop.eup %3471  ;;  %v2272_v30 = vmul.f32 1.442695, %v2271_v42  ;;  %v2822_v42 = vld [vmem:[#allocation12 + $0x1f00] sm:$0xff] }
 0x35a   : > { %3368 = vmatmul.msk.f32.vlgmr.msra.gmra.mxu3 %vm2258_vm13, %v3472_v4  ;;  %v2357_v54 = vsel %vm2258_vm13, %v3472_v4, 0.0  ;;  %v2706_v4 = vld [vmem:[#allocation12 + $0x1b60] sm:$0xff] }
 0x35b   : > { %3473 = vpow2.f32 %v2272_v30  ;;  %2914 = vmatpush.msra.mxu3 %v2850_v28  ;;  %v2626_v30 = vld [vmem:[#allocation12 + $0x18e0] sm:$0xff]  ;;  %v2847_v28 = vld [vmem:[#allocation12 + $0x1fc8] sm:$0xff] }
 0x35c   : > { %2862 = vmatpush.msra.mxu0 %v2626_v30  ;;  %v2707_v30 = vld [vmem:[#allocation12 + $0x1b68] sm:$0xff] }
 0x35d   : > { %2915 = vmatpush.msra.mxu3 %v2846_v49  ;;  %v2758_v49 = vld [vmem:[#allocation12 + $0x1d00] sm:$0xff] }
 0x35f   : > { %2916 = vmatpush.msra.mxu3 %v2842_v50  ;;  %v2666_v50 = vld [vmem:[#allocation12 + $0x1a20] sm:$0xff] }
 0x361   : > { %v3474_v11 = vpop.eup %3473  ;;  %2917 = vmatpush.msra.mxu3 %v2838_v8  ;;  %v2839_v8 = vld [vmem:[#allocation12 + $0x1f88] sm:$0xff] }
 0x362   : > { %3367 = vmatmul.msk.f32.vlgmr.msra.gmra.mxu1 %vm2258_vm13, %v3474_v11  ;;  %v2276_v15 = vsel %vm2258_vm13, %v3474_v11, 0.0  ;;  %v2818_v11 = vld [vmem:[#allocation12 + $0x1ee0] sm:$0xff] }
 0x363   : > { %2277 = vadd.xlane.f32.xlu0 %v2276_v15  ;;  %2874 = vmatpush.msra.mxu1 %v2722_v59  ;;  %v2702_v15 = vld [vmem:[#allocation12 + $0x1b40] sm:$0xff]  ;;  %v2723_v59 = vld [vmem:[#allocation12 + $0x1be8] sm:$0xff] }
 0x364   : > { %2918 = vmatpush.msra.mxu3 %v2834_v47  ;;  %v2750_v47 = vld [vmem:[#allocation12 + $0x1cc0] sm:$0xff] }
 0x365   : > { %2875 = vmatpush.msra.mxu1 %v2718_v48  ;;  %v2639_v48 = vld [vmem:[#allocation12 + $0x1948] sm:$0xff] }
 0x366   : > { %2919 = vmatpush.msra.mxu3 %v2830_v23  ;;  %v2715_v23 = vld [vmem:[#allocation12 + $0x1ba8] sm:$0xff] }
 0x367   : > { %2876 = vmatpush.msra.mxu1 %v2714_v46  ;;  %v2827_v46 = vld [vmem:[#allocation12 + $0x1f28] sm:$0xff] }
 0x368   : > { %2920 = vmatpush.msra.mxu3 %v2826_v21  ;;  %v2631_v21 = vld [vmem:[#allocation12 + $0x1908] sm:$0xff] }
 0x369   : > { %2877 = vmatpush.msra.mxu1 %v2710_v6  ;;  %v2711_v6 = vld [vmem:[#allocation12 + $0x1b88] sm:$0xff] }
 0x36a   : > { %2921 = vmatpush.msra.mxu3 %v2822_v42  ;;  %v2738_v42 = vld [vmem:[#allocation12 + $0x1c60] sm:$0xff] }
 0x36b   : > { %2878 = vmatpush.msra.mxu1 %v2706_v4  ;;  %v2627_v4 = vld [vmem:[#allocation12 + $0x18e8] sm:$0xff] }
 0x36c   : > { %2922 = vmatpush.msra.mxu3 %v2818_v11  ;;  %v2819_v11 = vld [vmem:[#allocation12 + $0x1ee8] sm:$0xff] }
 0x36d   : > { %2879 = vmatpush.msra.mxu1 %v2702_v15  ;;  %v2734_v15 = vld [vmem:[#allocation12 + $0x1c40] sm:$0xff] }
 0x36e   : > { %v2511_v17 = vpop.permute.xlu0 %2510 }
 0x36f   : > { %v2513_v25 = vsub.f32 %v2498_v7, %v2511_v17 }
 0x371   : > { %v2514_v18 = vmul.f32 1.442695, %v2513_v25  ;;  %v2622_v25 = vld [vmem:[#allocation12 + $0x18c0] sm:$0xff] }
 0x372   : > { %2863 = vmatpush.msra.mxu0 %v2622_v25  ;;  %v2703_v25 = vld [vmem:[#allocation12 + $0x1b48] sm:$0xff] }
 0x373   : > { %3475 = vpow2.f32 %v2514_v18  ;;  %v2786_v18 = vld [vmem:[#allocation12 + $0x1de0] sm:$0xff] }
 0x374   : > { %2894 = vmatpush.msra.mxu2 %v2786_v18  ;;  %v2815_v18 = vld [vmem:[#allocation12 + $0x1ec8] sm:$0xff] }
 0x376   : > { %v2430_v9 = vpop.permute.xlu1 %2429 }
 0x377   : > { %v2432_v12 = vsub.f32 %v2417_v61, %v2430_v9 }
 0x379   : > { %v3476_v44 = vpop.eup %3475  ;;  %v2433_v16 = vmul.f32 1.442695, %v2432_v12  ;;  %v2814_v12 = vld [vmem:[#allocation12 + $0x1ec0] sm:$0xff] }
 0x37a   : > { %3370 = vmatmul.msk.f32.vlgmr.msrb.gmra.mxu3 %vm2258_vm13, %v3476_v44  ;;  %v2519_v62 = vsel %vm2258_vm13, %v3476_v44, 0.0  ;;  %v2698_v44 = vld [vmem:[#allocation12 + $0x1b20] sm:$0xff] }
 0x37b   : > { %3477 = vpow2.f32 %v2433_v16  ;;  %2520 = vadd.xlane.f32.xlu1 %v2519_v62  ;;  %v2618_v16 = vld [vmem:[#allocation12 + $0x18a0] sm:$0xff]  ;;  %2923 = vmatpush.msra.mxu3 %v2814_v12  ;;  %v2811_v12 = vld [vmem:[#allocation12 + $0x1ea8] sm:$0xff] }
 0x37c   : > { %3479 = vpow2.f32 %v2506_v52  ;;  %v2782_v62 = vld [vmem:[#allocation12 + $0x1dc0] sm:$0xff]  ;;  %2880 = vmatpush.msra.mxu1 %v2698_v44  ;;  %2864 = vmatpush.msra.mxu0 %v2618_v16  ;;  %v2615_v44 = vld [vmem:[#allocation12 + $0x1888] sm:$0xff] }
 0x37d   : > { %3481 = vpow2.f32 %v2425_v3  ;;  %v2614_v52 = vld [vmem:[#allocation12 + $0x1880] sm:$0xff]  ;;  %2895 = vmatpush.msra.mxu2 %v2782_v62  ;;  %v2807_v16 = vld [vmem:[#allocation12 + $0x1e88] sm:$0xff] }
 0x37e   : > { %3483 = vpow2.f32 %v2264_v32  ;;  %v2690_v3 = vld [vmem:[#allocation12 + $0x1ae0] sm:$0xff]  ;;  %2865 = vmatpush.msra.mxu0 %v2614_v52  ;;  %v2611_v62 = vld [vmem:[#allocation12 + $0x1868] sm:$0xff] }
 0x37f   : > { %3485 = vpow2.f32 %v2344_v37  ;;  %v2610_v32 = vld [vmem:[#allocation12 + $0x1860] sm:$0xff]  ;;  %v2799_v52 = vld [vmem:[#allocation12 + $0x1e48] sm:$0xff] }
 0x380   : > { %v2686_v37 = vld [vmem:[#allocation12 + $0x1ac0] sm:$0xff]  ;;  %2866 = vmatpush.msra.mxu0 %v2610_v32 }
 0x381   : > { %v3478_v26 = vpop.eup %3477  ;;  %v2730_v32 = vld [vmem:[#allocation12 + $0x1c20] sm:$0xff] }
 0x382   : > { %3369 = vmatmul.msk.f32.vlgmr.msrb.gmra.mxu1 %vm2258_vm13, %v3478_v26  ;;  %v2438_v33 = vsel %vm2258_vm13, %v3478_v26, 0.0  ;;  %v3480_v27 = vpop.eup %3479  ;;  %v2810_v26 = vld [vmem:[#allocation12 + $0x1ea0] sm:$0xff] }
 0x383   : > { %2439 = vadd.xlane.f32.xlu2 %v2438_v33  ;;  %v3482_v14 = vpop.eup %3481  ;;  %v2518_v39 = vmul.f32 %v3480_v27, %v2517_v36  ;;  %v2694_v33 = vld [vmem:[#allocation12 + $0x1b00] sm:$0xff]  ;;  %2924 = vmatpush.msra.mxu3 %v2810_v26  ;;  %v2803_v26 = vld [vmem:[#allocation12 + $0x1e68] sm:$0xff] }
 0x384   : > { %v3484_v38 = vpop.eup %3483  ;;  %v2437_v24 = vmul.f32 %v3482_v14, %v2436_v43  ;;  %2881 = vmatpush.msra.mxu1 %v2694_v33  ;;  %v2678_v36 = vld [vmem:[#allocation12 + $0x1a80] sm:$0xff]  ;;  %v2659_v43 = vld [vmem:[#allocation12 + $0x19e8] sm:$0xff] }
 0x385   : > { %v3486_v5 = vpop.eup %3485  ;;  %v2275_v35 = vmul.f32 %v3484_v38, %v2274_v34  ;;  %v2774_v34 = vld [vmem:[#allocation12 + $0x1d80] sm:$0xff]  ;;  %v2607_v33 = vld [vmem:[#allocation12 + $0x1848] sm:$0xff] }
 0x386   : > { %v2356_v10 = vmul.f32 %v3486_v5, %v2355_v57  ;;  %2882 = vmatpush.msra.mxu1 %v2690_v3  ;;  %v2647_v57 = vld [vmem:[#allocation12 + $0x1988] sm:$0xff] }
 0x387   : > { %v2795_v3 = vld [vmem:[#allocation12 + $0x1e28] sm:$0xff] }
 0x388   : > { %2883 = vmatpush.msra.mxu1 %v2686_v37  ;;  %v2695_v37 = vld [vmem:[#allocation12 + $0x1b08] sm:$0xff] }
 0x38b   : > { %2358 = vadd.xlane.f32.xlu2 %v2357_v54  ;;  %v2778_v54 = vld [vmem:[#allocation12 + $0x1da0] sm:$0xff] }
 0x38c   : > { %2896 = vmatpush.msra.mxu2 %v2778_v54  ;;  %v2603_v54 = vld [vmem:[#allocation12 + $0x1828] sm:$0xff] }
 0x38e   : > { %2897 = vmatpush.msra.mxu2 %v2774_v34  ;;  %v2726_v34 = vld [vmem:[#allocation12 + $0x1c00] sm:$0xff] }
 0x394   : > { %2528 = vperm.xlu1 %3470, %v3480_v27   ;;  %v2806_v27 = vld [vmem:[#allocation12 + $0x1e80] sm:$0xff] }
 0x395   : > { %2925 = vmatpush.msra.mxu3 %v2806_v27  ;;  %v2699_v27 = vld [vmem:[#allocation12 + $0x1b28] sm:$0xff] }
 0x3a3   : > { %2447 = vperm.xlu2 %3468, %v3482_v14   ;;  %v2802_v14 = vld [vmem:[#allocation12 + $0x1e60] sm:$0xff] }
 0x3a4   : > { %2926 = vmatpush.msra.mxu3 %v2802_v14  ;;  %v2599_v14 = vld [vmem:[#allocation12 + $0x1808] sm:$0xff] }
 0x3ab   : > { %2285 = vperm.xlu2 %3468, %v3484_v38  }
 0x3b3   : > { %2366 = vperm.xlu2 %3468, %v3486_v5   ;;  %v2606_v5 = vld [vmem:[#allocation12 + $0x1840] sm:$0xff] }
 0x3b4   : > { %2867 = vmatpush.msra.mxu0 %v2606_v5 }
 0x3d6   : > { %v2278_v19 = vpop.xlane.xlu0 %2277 }
 0x3d7   : > { %v2279_v55 = vadd.f32 %v2278_v19, %v2275_v35  ;;  %v2798_v35 = vld [vmem:[#allocation12 + $0x1e40] sm:$0xff] }
 0x3d8   : > { %v2682_v19 = vld [vmem:[#allocation12 + $0x1aa0] sm:$0xff]  ;;  %2927 = vmatpush.msra.mxu3 %v2798_v35  ;;  %v2691_v35 = vld [vmem:[#allocation12 + $0x1ae8] sm:$0xff] }
 0x3d9   : > { %2281 = vst.msk [vmem:[#allocation5] sm:$0xff] %vm1056_vm9, %v2279_v55  ;;  %v2602_v55 = vld [vmem:[#allocation12 + $0x1820] sm:$0xff]  ;;  %2884 = vmatpush.msra.mxu1 %v2682_v19  ;;  %v2787_v19 = vld [vmem:[#allocation12 + $0x1de8] sm:$0xff] }
 0x3da   : > { %2868 = vmatpush.msra.mxu0 %v2602_v55  ;;  %v2687_v55 = vld [vmem:[#allocation12 + $0x1ac8] sm:$0xff] }
 0x3db   : > { %2885 = vmatpush.msra.mxu1 %v2678_v36  ;;  %v2779_v36 = vld [vmem:[#allocation12 + $0x1da8] sm:$0xff] }
 0x3e0   : > { %v2562_v56 = vld [vmem:[#allocation5] sm:$0xff] }
 0x3e1   : > { %3487 = vrcp.f32 %v2562_v56  ;;  %v2770_v56 = vld [vmem:[#allocation12 + $0x1d60] sm:$0xff] }
 0x3e2   : > { %2898 = vmatpush.msra.mxu2 %v2770_v56  ;;  %v2783_v56 = vld [vmem:[#allocation12 + $0x1dc8] sm:$0xff] }
 0x3e7   : > { %v3488_v31 = vpop.eup %3487 }
 0x3e8   : > { %2566 = vperm.xlu1 %3470, %v3488_v31   ;;  %v2794_v31 = vld [vmem:[#allocation12 + $0x1e20] sm:$0xff] }
 0x3e9   : > { %2928 = vmatpush.msra.mxu3 %v2794_v31  ;;  %v2683_v31 = vld [vmem:[#allocation12 + $0x1aa8] sm:$0xff] }
 0x3ee   : > { %v2521_v13 = vpop.xlane.xlu1 %2520 }
 0x3ef   : > { %v2522_v40 = vadd.f32 %v2521_v13, %v2518_v39  ;;  %v2598_v39 = vld [vmem:[#allocation12 + $0x1800] sm:$0xff] }
 0x3f0   : > { %v2766_v13 = vld [vmem:[#allocation12 + $0x1d40] sm:$0xff]  ;;  %2869 = vmatpush.msra.mxu0 %v2598_v39  ;;  %v2679_v39 = vld [vmem:[#allocation12 + $0x1a88] sm:$0xff] }
 0x3f1   : > { %2523 = vst.msk [vmem:[#allocation5 + $0x18] sm:$0xff] %vm1056_vm9, %v2522_v40  ;;  %v2790_v40 = vld [vmem:[#allocation12 + $0x1e00] sm:$0xff]  ;;  %2899 = vmatpush.msra.mxu2 %v2766_v13  ;;  %v2775_v13 = vld [vmem:[#allocation12 + $0x1d88] sm:$0xff] }
 0x3f2   : > { %2929 = vmatpush.msra.mxu3 %v2790_v40  ;;  %2934 = vmatpush.msrb.mxu0 %v2659_v43  ;;  %v2675_v40 = vld [vmem:[#allocation12 + $0x1a68] sm:$0xff] }
 0x3f3   : > { %2900 = vmatpush.msra.mxu2 %v2762_v53  ;;  %v2771_v43 = vld [vmem:[#allocation12 + $0x1d68] sm:$0xff] }
 0x3f4   : > { %v2667_v53 = vld [vmem:[#allocation12 + $0x1a28] sm:$0xff] }
 0x3f5   : > { %2901 = vmatpush.msra.mxu2 %v2758_v49  ;;  %v2755_v49 = vld [vmem:[#allocation12 + $0x1ce8] sm:$0xff] }
 0x3f6   : > { %v2440_v51 = vpop.xlane.xlu2 %2439 }
 0x3f7   : > { %v2441_v7 = vadd.f32 %v2440_v51, %v2437_v24  ;;  %v2851_v24 = vld [vmem:[#allocation12 + $0x1fe8] sm:$0xff]  ;;  %v2674_v51 = vld [vmem:[#allocation12 + $0x1a60] sm:$0xff]  ;;  %2902 = vmatpush.msra.mxu2 %v2754_v58 }
 0x3f8   : > { %v2589_v61 = vld [vmem:[#allocation5 + $0x18] sm:$0xff]  ;;  %2994 = vmatpush.msrb.mxu3 %v2851_v24  ;;  %2886 = vmatpush.msra.mxu1 %v2674_v51  ;;  %v2671_v51 = vld [vmem:[#allocation12 + $0x1a48] sm:$0xff] }
 0x3f9   : > { %2442 = vst.msk [vmem:[#allocation5 + $0x10] sm:$0xff] %vm1056_vm9, %v2441_v7  ;;  %3489 = vrcp.f32 %v2589_v61  ;;  %v2655_v7 = vld [vmem:[#allocation12 + $0x19c8] sm:$0xff]  ;;  %2903 = vmatpush.msra.mxu2 %v2750_v47  ;;  %v2309_v47 = vpop.f32.mrf.mxu1 }
 0x3fa   : > { %v2651_v61 = vld [vmem:[#allocation12 + $0x19a8] sm:$0xff]  ;;  %2935 = vmatpush.msrb.mxu0 %v2655_v7  ;;  %2995 = vmatpush.msrb.mxu3 %v2847_v28 }
 0x3fb   : > { %2887 = vmatpush.msra.mxu1 %v2670_v45  ;;  %2904 = vmatpush.msra.mxu2 %v2746_v1  ;;  %v2767_v7 = vld [vmem:[#allocation12 + $0x1d48] sm:$0xff] }
 0x3fc   : > { %2936 = vmatpush.msrb.mxu0 %v2651_v61  ;;  %2996 = vmatpush.msrb.mxu3 %v2843_v29  ;;  %v2763_v28 = vld [vmem:[#allocation12 + $0x1d28] sm:$0xff]  ;;  %v2390_v29 = vpop.f32.mrf.mxu3 }
 0x3fd   : > { %2888 = vmatpush.msra.mxu1 %v2666_v50  ;;  %2905 = vmatpush.msra.mxu2 %v2742_v20  ;;  %v2663_v45 = vld [vmem:[#allocation12 + $0x1a08] sm:$0xff] }
 0x3fe   : > { %v2359_v63 = vpop.xlane.xlu2 %2358  ;;  %2937 = vmatpush.msrb.mxu0 %v2647_v57  ;;  %2997 = vmatpush.msrb.mxu3 %v2839_v8  ;;  %v2759_v61 = vld [vmem:[#allocation12 + $0x1d08] sm:$0xff] }
 0x3ff   : > { %v3490_v22 = vpop.eup %3489  ;;  %v2360_v0 = vadd.f32 %v2359_v63, %v2356_v10  ;;  %v2662_v10 = vld [vmem:[#allocation12 + $0x1a00] sm:$0xff]  ;;  %v2835_v63 = vld [vmem:[#allocation12 + $0x1f68] sm:$0xff]  ;;  %2906 = vmatpush.msra.mxu2 %v2738_v42  ;;  %v2656_v42 = vld [vmem:[#allocation12 + $0x19d0] sm:$0xff] }
 0x400   : > { %2593 = vperm.xlu2 %3468, %v3490_v22   ;;  %v2580_v2 = vld [vmem:[#allocation5 + $0x10] sm:$0xff]  ;;  %2889 = vmatpush.msra.mxu1 %v2662_v10  ;;  %v2719_v22 = vld [vmem:[#allocation12 + $0x1bc8] sm:$0xff] }
 0x401   : > { %2361 = vst.msk [vmem:[#allocation5 + $0x8] sm:$0xff] %vm1056_vm9, %v2360_v0  ;;  %3491 = vrcp.f32 %v2580_v2  ;;  %2938 = vmatpush.msrb.mxu0 %v2643_v60  ;;  %v2831_v0 = vld [vmem:[#allocation12 + $0x1f48] sm:$0xff]  ;;  %2998 = vmatpush.msrb.mxu3 %v2835_v63 }
 0x402   : > { %2954 = vmatpush.msrb.mxu1 %v2723_v59  ;;  %v2635_v2 = vld [vmem:[#allocation12 + $0x1928] sm:$0xff]  ;;  %2907 = vmatpush.msra.mxu2 %v2734_v15  ;;  %v2844_v15 = vld [vmem:[#allocation12 + $0x1fb0] sm:$0xff] }
 0x403   : > { %2939 = vmatpush.msrb.mxu0 %v2639_v48  ;;  %2999 = vmatpush.msrb.mxu3 %v2831_v0  ;;  %v2751_v50 = vld [vmem:[#allocation12 + $0x1cc8] sm:$0xff] }
 0x404   : > { %2955 = vmatpush.msrb.mxu1 %v2719_v22  ;;  %2908 = vmatpush.msra.mxu2 %v2730_v32  ;;  %v2747_v8 = vld [vmem:[#allocation12 + $0x1ca8] sm:$0xff]  ;;  %v2552_v48 = vpop.f32.mrf.mxu3  ;;  %v2628_v32 = vld [vmem:[#allocation12 + $0x18f0] sm:$0xff] }
 0x405   : > { %2940 = vmatpush.msrb.mxu0 %v2635_v2  ;;  %3000 = vmatpush.msrb.mxu3 %v2827_v46  ;;  %v2743_v59 = vld [vmem:[#allocation12 + $0x1c88] sm:$0xff] }
 0x406   : > { %2956 = vmatpush.msrb.mxu1 %v2715_v23  ;;  %v4377_v5 = vpop.permute.xlu2 %2447  ;;  %2909 = vmatpush.msra.mxu2 %v2726_v34  ;;  %v2529_v57 = vpop.permute.xlu1 %2528  ;;  %v2739_v63 = vld [vmem:[#allocation12 + $0x1c68] sm:$0xff]  ;;  %v2720_v34 = vld [vmem:[#allocation12 + $0x1bd0] sm:$0xff] }
 0x407   : > { %v3492_v17 = vpop.eup %3491  ;;  %2941 = vmatpush.msrb.mxu0 %v2631_v21  ;;  %3001 = vmatpush.msrb.mxu3 %v2823_v41  ;;  %v2531_v10 = vmul.f32 0.0, %v2529_v57  ;;  %v2735_v1 = vld [vmem:[#allocation12 + $0x1c48] sm:$0xff]  ;;  %v2660_v21 = vld [vmem:[#allocation12 + $0x19f0] sm:$0xff] }
 0x408   : > { %2584 = vperm.xlu0 %3469, %v3492_v17   ;;  %v2571_v9 = vld [vmem:[#allocation5 + $0x8] sm:$0xff]  ;;  %2957 = vmatpush.msrb.mxu1 %v2711_v6  ;;  %v2852_v6 = vld [vmem:[#allocation12 + $0x1ff0] sm:$0xff] }
 0x409   : > { %3493 = vrcp.f32 %v2571_v9  ;;  %v2623_v17 = vld [vmem:[#allocation12 + $0x18c8] sm:$0xff]  ;;  %2942 = vmatpush.msrb.mxu0 %v2627_v4  ;;  %3002 = vmatpush.msrb.mxu3 %v2819_v11  ;;  %v2555_v0 = vadd.f32 %v2552_v48, %v2531_v10  ;;  %v2848_v4 = vld [vmem:[#allocation12 + $0x1fd0] sm:$0xff]  ;;  %v2661_v10 = vld [vmem:[#allocation12 + $0x19f8] sm:$0xff] }
 0x40a   : > { %2958 = vmatpush.msrb.mxu1 %v2707_v30  ;;  %v2619_v9 = vld [vmem:[#allocation12 + $0x18a8] sm:$0xff]  ;;  %2974 = vmatpush.msrb.mxu2 %v2787_v19  ;;  %v2652_v11 = vld [vmem:[#allocation12 + $0x19b0] sm:$0xff]  ;;  %v2849_v48 = vld [vmem:[#allocation12 + $0x1fd8] sm:$0xff] }
 0x40b   : > { %2943 = vmatpush.msrb.mxu0 %v2623_v17  ;;  %3003 = vmatpush.msrb.mxu3 %v2815_v18  ;;  %v2731_v41 = vld [vmem:[#allocation12 + $0x1c28] sm:$0xff]  ;;  %v2648_v17 = vld [vmem:[#allocation12 + $0x1990] sm:$0xff] }
 0x40c   : > { %2959 = vmatpush.msrb.mxu1 %v2703_v25  ;;  %2975 = vmatpush.msrb.mxu2 %v2783_v56  ;;  %v2727_v30 = vld [vmem:[#allocation12 + $0x1c08] sm:$0xff]  ;;  %v2840_v25 = vld [vmem:[#allocation12 + $0x1f90] sm:$0xff] }
 0x40d   : > { %2944 = vmatpush.msrb.mxu0 %v2619_v9  ;;  %3004 = vmatpush.msrb.mxu3 %v2811_v12  ;;  %v2644_v18 = vld [vmem:[#allocation12 + $0x1970] sm:$0xff] }
 0x40e   : > { %2960 = vmatpush.msrb.mxu1 %v2699_v27  ;;  %2976 = vmatpush.msrb.mxu2 %v2779_v36  ;;  %v2286_v24 = vpop.permute.xlu2 %2285  ;;  %v2836_v9 = vld [vmem:[#allocation12 + $0x1f70] sm:$0xff] }
 0x40f   : > { %v3494_v38 = vpop.eup %3493  ;;  %2945 = vmatpush.msrb.mxu0 %v2615_v44  ;;  %3005 = vmatpush.msrb.mxu3 %v2807_v16  ;;  %v2288_v60 = vmul.f32 0.0, %v2286_v24  ;;  %v2640_v44 = vld [vmem:[#allocation12 + $0x1950] sm:$0xff]  ;;  %v2450_v24 = vmul.f32 0.0, %v4377_v5 }
 0x410   : > { %2575 = vperm.xlu2 %3468, %v3494_v38   ;;  %v2791_v38 = vld [vmem:[#allocation12 + $0x1e08] sm:$0xff]  ;;  %2961 = vmatpush.msrb.mxu1 %v2695_v37  ;;  %v2832_v16 = vld [vmem:[#allocation12 + $0x1f50] sm:$0xff] }
 0x411   : > { %2946 = vmatpush.msrb.mxu0 %v2611_v62  ;;  %3006 = vmatpush.msrb.mxu3 %v2803_v26  ;;  %v2312_v22 = vadd.f32 %v2309_v47, %v2288_v60  ;;  %v2636_v62 = vld [vmem:[#allocation12 + $0x1930] sm:$0xff]  ;;  %v2853_v60 = vld [vmem:[#allocation12 + $0x1ff8] sm:$0xff] }
 0x412   : > { %2962 = vmatpush.msrb.mxu1 %v2691_v35  ;;  %2977 = vmatpush.msrb.mxu2 %v2775_v13  ;;  %v2828_v26 = vld [vmem:[#allocation12 + $0x1f30] sm:$0xff]  ;;  %v2657_v47 = vld [vmem:[#allocation12 + $0x19d8] sm:$0xff] }
 0x413   : > { %2947 = vmatpush.msrb.mxu0 %v2607_v33  ;;  %3007 = vmatpush.msrb.mxu3 %v2799_v52  ;;  %v2632_v52 = vld [vmem:[#allocation12 + $0x1910] sm:$0xff] }
 0x414   : > { %2963 = vmatpush.msrb.mxu1 %v2687_v55  ;;  %2978 = vmatpush.msrb.mxu2 %v2771_v43  ;;  %v2820_v37 = vld [vmem:[#allocation12 + $0x1ef0] sm:$0xff] }
 0x415   : > { %2948 = vmatpush.msrb.mxu0 %v2603_v54  ;;  %3008 = vmatpush.msrb.mxu3 %v2795_v3  ;;  %v2824_v54 = vld [vmem:[#allocation12 + $0x1f10] sm:$0xff] }
 0x416   : > { %2964 = vmatpush.msrb.mxu1 %v2683_v31  ;;  %2979 = vmatpush.msrb.mxu2 %v2767_v7  ;;  %v2367_v58 = vpop.permute.xlu2 %2366  ;;  %v2816_v35 = vld [vmem:[#allocation12 + $0x1ed0] sm:$0xff] }
 0x417   : > { %2949 = vmatpush.msrb.mxu0 %v2599_v14  ;;  %3009 = vmatpush.msrb.mxu3 %v2791_v38  ;;  %v2369_v12 = vmul.f32 0.0, %v2367_v58  ;;  %v2724_v14 = vld [vmem:[#allocation12 + $0x1bf0] sm:$0xff] }
 0x418   : > { %2965 = vmatpush.msrb.mxu1 %v2679_v39  ;;  %2980 = vmatpush.msrb.mxu2 %v2763_v28  ;;  %v2624_v38 = vld [vmem:[#allocation12 + $0x18d0] sm:$0xff] }
 0x419   : > { %v2393_v33 = vadd.f32 %v2390_v29, %v2369_v12  ;;  %v2620_v19 = vld [vmem:[#allocation12 + $0x18b0] sm:$0xff] }
 0x41a   : > { %2966 = vmatpush.msrb.mxu1 %v2675_v40  ;;  %2981 = vmatpush.msrb.mxu2 %v2759_v61  ;;  %v2716_v55 = vld [vmem:[#allocation12 + $0x1bb0] sm:$0xff]  ;;  %v2471_v61 = vpop.f32.mrf.mxu1 }
 0x41b   : > { %v2812_v56 = vld [vmem:[#allocation12 + $0x1eb0] sm:$0xff] }
 0x41c   : > { %2967 = vmatpush.msrb.mxu1 %v2671_v51  ;;  %2982 = vmatpush.msrb.mxu2 %v2755_v49  ;;  %v2616_v31 = vld [vmem:[#allocation12 + $0x1890] sm:$0xff] }
 0x41d   : > { %v2712_v36 = vld [vmem:[#allocation12 + $0x1b90] sm:$0xff] }
 0x41e   : > { %2968 = vmatpush.msrb.mxu1 %v2667_v53  ;;  %2983 = vmatpush.msrb.mxu2 %v2751_v50  ;;  %v2808_v39 = vld [vmem:[#allocation12 + $0x1e90] sm:$0xff]  ;;  %v2474_v50 = vadd.f32 %v2471_v61, %v2450_v24  ;;  %v2801_v61 = vld [vmem:[#allocation12 + $0x1e58] sm:$0xff] }
 0x41f   : > { %v2612_v13 = vld [vmem:[#allocation12 + $0x1870] sm:$0xff] }
 0x420   : > { %2969 = vmatpush.msrb.mxu1 %v2663_v45  ;;  %2984 = vmatpush.msrb.mxu2 %v2747_v8  ;;  %v2708_v40 = vld [vmem:[#allocation12 + $0x1b70] sm:$0xff] }
 0x421   : > { %v2804_v43 = vld [vmem:[#allocation12 + $0x1e70] sm:$0xff] }
 0x422   : > { %2985 = vmatpush.msrb.mxu2 %v2743_v59  ;;  %v2608_v51 = vld [vmem:[#allocation12 + $0x1850] sm:$0xff] }
 0x423   : > { %v2704_v7 = vld [vmem:[#allocation12 + $0x1b50] sm:$0xff] }
 0x424   : > { %2986 = vmatpush.msrb.mxu2 %v2739_v63  ;;  %v2800_v53 = vld [vmem:[#allocation12 + $0x1e50] sm:$0xff] }
 0x425   : > { %v2604_v28 = vld [vmem:[#allocation12 + $0x1830] sm:$0xff] }
 0x426   : > { %2987 = vmatpush.msrb.mxu2 %v2735_v1  ;;  %v2700_v45 = vld [vmem:[#allocation12 + $0x1b30] sm:$0xff]  ;;  %v2653_v1 = vld [vmem:[#allocation12 + $0x19b8] sm:$0xff] }
 0x427   : > { %v2796_v49 = vld [vmem:[#allocation12 + $0x1e30] sm:$0xff] }
 0x428   : > { %2988 = vmatpush.msrb.mxu2 %v2731_v41  ;;  %v2600_v29 = vld [vmem:[#allocation12 + $0x1810] sm:$0xff]  ;;  %v2841_v41 = vld [vmem:[#allocation12 + $0x1f98] sm:$0xff] }
 0x429   : > { %v2696_v57 = vld [vmem:[#allocation12 + $0x1b10] sm:$0xff] }
 0x42a   : > { %2989 = vmatpush.msrb.mxu2 %v2727_v30  ;;  %v2792_v58 = vld [vmem:[#allocation12 + $0x1e10] sm:$0xff]  ;;  %v2645_v30 = vld [vmem:[#allocation12 + $0x1978] sm:$0xff] }
 0x42b   : > { %v2692_v59 = vld [vmem:[#allocation12 + $0x1af0] sm:$0xff] }
 0x42c   : > { %v2788_v63 = vld [vmem:[#allocation12 + $0x1df0] sm:$0xff] }
 0x42d   : > { %v2768_v12 = vld [vmem:[#allocation12 + $0x1d50] sm:$0xff] }
 0x42e   : > { %v2744_v24 = vld [vmem:[#allocation12 + $0x1c90] sm:$0xff] }
 0x45a   : > { %v2567_v2 = vpop.permute.xlu1 %2566  ;;  %v2594_v23 = vpop.permute.xlu2 %2593 }
 0x45b   : > { %v4379_v46 = vmul.f32 %v2567_v2, %v2312_v22  ;;  %v4381_v20 = vmul.f32 %v2594_v23, %v2555_v0  ;;  %v2688_v22 = vld [vmem:[#allocation12 + $0x1ad0] sm:$0xff]  ;;  %v2845_v2 = vld [vmem:[#allocation12 + $0x1fb8] sm:$0xff] }
 0x45c   : > { %v2784_v0 = vld [vmem:[#allocation12 + $0x1dd0] sm:$0xff] }
 0x45d   : > { %2870 = vmatmul.f32.vlgmr.msra.gmra.mxu0 %v4379_v46  ;;  %2930 = vmatmul.f32.vlgmr.msra.gmra.mxu3 %v4381_v20  ;;  %v2684_v23 = vld [vmem:[#allocation12 + $0x1ab0] sm:$0xff] }
 0x45e   : > { %3014 = vmatpush.msra.mxu0 %v2660_v21  ;;  %3074 = vmatpush.msra.mxu3 %v2852_v6  ;;  %v2780_v21 = vld [vmem:[#allocation12 + $0x1db0] sm:$0xff]  ;;  %v2649_v6 = vld [vmem:[#allocation12 + $0x1998] sm:$0xff] }
 0x460   : > { %3015 = vmatpush.msra.mxu0 %v2656_v42  ;;  %3075 = vmatpush.msra.mxu3 %v2848_v4  ;;  %v2680_v42 = vld [vmem:[#allocation12 + $0x1a90] sm:$0xff] }
 0x461   : > { %v2776_v4 = vld [vmem:[#allocation12 + $0x1d90] sm:$0xff] }
 0x462   : > { %3016 = vmatpush.msra.mxu0 %v2652_v11  ;;  %3076 = vmatpush.msra.mxu3 %v2844_v15  ;;  %v2837_v11 = vld [vmem:[#allocation12 + $0x1f78] sm:$0xff]  ;;  %v2676_v15 = vld [vmem:[#allocation12 + $0x1a70] sm:$0xff] }
 0x464   : > { %3017 = vmatpush.msra.mxu0 %v2648_v17  ;;  %3077 = vmatpush.msra.mxu3 %v2840_v25  ;;  %v2772_v17 = vld [vmem:[#allocation12 + $0x1d70] sm:$0xff]  ;;  %v2641_v25 = vld [vmem:[#allocation12 + $0x1958] sm:$0xff] }
 0x465   : > { %2950 = vmatmul.f32.vlgmr.msrb.gmra.mxu0 %v4379_v46  ;;  %3010 = vmatmul.f32.vlgmr.msrb.gmra.mxu3 %v4381_v20 }
 0x466   : > { %3018 = vmatpush.msra.mxu0 %v2644_v18  ;;  %3078 = vmatpush.msra.mxu3 %v2836_v9  ;;  %v2833_v18 = vld [vmem:[#allocation12 + $0x1f58] sm:$0xff]  ;;  %v2672_v9 = vld [vmem:[#allocation12 + $0x1a50] sm:$0xff] }
 0x468   : > { %3019 = vmatpush.msra.mxu0 %v2640_v44  ;;  %3079 = vmatpush.msra.mxu3 %v2832_v16  ;;  %v2637_v44 = vld [vmem:[#allocation12 + $0x1938] sm:$0xff] }
 0x469   : > { %v2829_v16 = vld [vmem:[#allocation12 + $0x1f38] sm:$0xff] }
 0x46a   : > { %3020 = vmatpush.msra.mxu0 %v2636_v62  ;;  %3080 = vmatpush.msra.mxu3 %v2828_v26  ;;  %v2576_v27 = vpop.permute.xlu2 %2575  ;;  %v2668_v62 = vld [vmem:[#allocation12 + $0x1a30] sm:$0xff] }
 0x46b   : > { %v4387_v3 = vmul.f32 %v2576_v27, %v2393_v33  ;;  %v2764_v26 = vld [vmem:[#allocation12 + $0x1d30] sm:$0xff]  ;;  %v2633_v33 = vld [vmem:[#allocation12 + $0x1918] sm:$0xff] }
 0x46c   : > { %3021 = vmatpush.msra.mxu0 %v2632_v52  ;;  %3081 = vmatpush.msra.mxu3 %v2824_v54  ;;  %v2825_v52 = vld [vmem:[#allocation12 + $0x1f18] sm:$0xff]  ;;  %v2664_v54 = vld [vmem:[#allocation12 + $0x1a10] sm:$0xff] }
 0x46d   : > { %2890 = vmatmul.f32.vlgmr.msra.gmra.mxu1 %v4387_v3  ;;  %v2760_v27 = vld [vmem:[#allocation12 + $0x1d10] sm:$0xff] }
 0x46e   : > { %3022 = vmatpush.msra.mxu0 %v2628_v32  ;;  %3034 = vmatpush.msra.mxu1 %v2724_v14  ;;  %v2629_v32 = vld [vmem:[#allocation12 + $0x18f8] sm:$0xff] }
 0x46f   : > { %3082 = vmatpush.msra.mxu3 %v2820_v37  ;;  %v2821_v14 = vld [vmem:[#allocation12 + $0x1ef8] sm:$0xff] }
 0x470   : > { %3023 = vmatpush.msra.mxu0 %v2624_v38  ;;  %3035 = vmatpush.msra.mxu1 %v2720_v34  ;;  %v2725_v37 = vld [vmem:[#allocation12 + $0x1bf8] sm:$0xff]  ;;  %v2756_v38 = vld [vmem:[#allocation12 + $0x1cf0] sm:$0xff] }
 0x471   : > { %3083 = vmatpush.msra.mxu3 %v2816_v35  ;;  %v2625_v34 = vld [vmem:[#allocation12 + $0x18d8] sm:$0xff] }
 0x472   : > { %3024 = vmatpush.msra.mxu0 %v2620_v19  ;;  %3036 = vmatpush.msra.mxu1 %v2716_v55  ;;  %v2817_v35 = vld [vmem:[#allocation12 + $0x1ed8] sm:$0xff]  ;;  %v2752_v55 = vld [vmem:[#allocation12 + $0x1cd0] sm:$0xff] }
 0x473   : > { %3084 = vmatpush.msra.mxu3 %v2812_v56  ;;  %v2721_v19 = vld [vmem:[#allocation12 + $0x1bd8] sm:$0xff] }
 0x474   : > { %3025 = vmatpush.msra.mxu0 %v2616_v31  ;;  %3037 = vmatpush.msra.mxu1 %v2712_v36  ;;  %v2621_v56 = vld [vmem:[#allocation12 + $0x18b8] sm:$0xff] }
 0x475   : > { %3085 = vmatpush.msra.mxu3 %v2808_v39  ;;  %2970 = vmatmul.f32.vlgmr.msrb.gmra.mxu1 %v4387_v3  ;;  %v2813_v31 = vld [vmem:[#allocation12 + $0x1eb8] sm:$0xff]  ;;  %v2748_v39 = vld [vmem:[#allocation12 + $0x1cb0] sm:$0xff] }
 0x476   : > { %3026 = vmatpush.msra.mxu0 %v2612_v13  ;;  %3038 = vmatpush.msra.mxu1 %v2708_v40  ;;  %v2717_v36 = vld [vmem:[#allocation12 + $0x1bb8] sm:$0xff] }
 0x477   : > { %3086 = vmatpush.msra.mxu3 %v2804_v43  ;;  %v2617_v13 = vld [vmem:[#allocation12 + $0x1898] sm:$0xff] }
 0x478   : > { %3027 = vmatpush.msra.mxu0 %v2608_v51  ;;  %3039 = vmatpush.msra.mxu1 %v2704_v7  ;;  %v2809_v40 = vld [vmem:[#allocation12 + $0x1e98] sm:$0xff] }
 0x479   : > { %3087 = vmatpush.msra.mxu3 %v2800_v53  ;;  %v2713_v43 = vld [vmem:[#allocation12 + $0x1b98] sm:$0xff] }
 0x47a   : > { %3028 = vmatpush.msra.mxu0 %v2604_v28  ;;  %3040 = vmatpush.msra.mxu1 %v2700_v45  ;;  %v2585_v5 = vpop.permute.xlu0 %2584  ;;  %v2613_v51 = vld [vmem:[#allocation12 + $0x1878] sm:$0xff]  ;;  %v2740_v28 = vld [vmem:[#allocation12 + $0x1c70] sm:$0xff] }
 0x47b   : > { %3088 = vmatpush.msra.mxu3 %v2796_v49  ;;  %v4392_v8 = vmul.f32 %v2585_v5, %v2474_v50  ;;  %v2805_v7 = vld [vmem:[#allocation12 + $0x1e78] sm:$0xff] }
 0x47c   : > { %3029 = vmatpush.msra.mxu0 %v2600_v29  ;;  %3041 = vmatpush.msra.mxu1 %v2696_v57  ;;  %v2709_v53 = vld [vmem:[#allocation12 + $0x1b78] sm:$0xff]  ;;  %v2736_v29 = vld [vmem:[#allocation12 + $0x1c50] sm:$0xff] }
 0x47d   : > { %3030 = vmatmul.f32.vlgmr.msra.gmra.mxu0 %v4379_v46  ;;  %3089 = vmatpush.msra.mxu3 %v2792_v58  ;;  %v2609_v45 = vld [vmem:[#allocation12 + $0x1858] sm:$0xff]  ;;  %v2732_v58 = vld [vmem:[#allocation12 + $0x1c30] sm:$0xff] }
 0x47e   : > { %3094 = vmatpush.msrb.mxu0 %v2661_v10  ;;  %3090 = vmatmul.f32.vlgmr.msra.gmra.mxu3 %v4381_v20  ;;  %v2705_v49 = vld [vmem:[#allocation12 + $0x1b58] sm:$0xff] }
 0x47f   : > { %3154 = vmatpush.msrb.mxu3 %v2853_v60  ;;  %2910 = vmatmul.f32.vlgmr.msra.gmra.mxu2 %v4392_v8  ;;  %v2605_v50 = vld [vmem:[#allocation12 + $0x1838] sm:$0xff] }
 0x480   : > { %3042 = vmatpush.msra.mxu1 %v2692_v59  ;;  %3054 = vmatpush.msra.mxu2 %v2788_v63  ;;  %v2797_v57 = vld [vmem:[#allocation12 + $0x1e38] sm:$0xff]  ;;  %v2728_v63 = vld [vmem:[#allocation12 + $0x1c10] sm:$0xff] }
 0x481   : > { %3095 = vmatpush.msrb.mxu0 %v2657_v47  ;;  %3155 = vmatpush.msrb.mxu3 %v2849_v48  ;;  %v2701_v5 = vld [vmem:[#allocation12 + $0x1b38] sm:$0xff] }
 0x482   : > { %3043 = vmatpush.msra.mxu1 %v2688_v22  ;;  %3055 = vmatpush.msra.mxu2 %v2784_v0  ;;  %v2601_v10 = vld [vmem:[#allocation12 + $0x1818] sm:$0xff] }
 0x483   : > { %3096 = vmatpush.msrb.mxu0 %v2653_v1  ;;  %3156 = vmatpush.msrb.mxu3 %v2845_v2  ;;  %v2793_v60 = vld [vmem:[#allocation12 + $0x1e18] sm:$0xff] }
 0x484   : > { %3044 = vmatpush.msra.mxu1 %v2684_v23  ;;  %3056 = vmatpush.msra.mxu2 %v2780_v21  ;;  %v2697_v59 = vld [vmem:[#allocation12 + $0x1b18] sm:$0xff] }
 0x485   : > { %3097 = vmatpush.msrb.mxu0 %v2649_v6  ;;  %3157 = vmatpush.msrb.mxu3 %v2841_v41  ;;  %v2693_v47 = vld [vmem:[#allocation12 + $0x1af8] sm:$0xff] }
 0x486   : > { %3045 = vmatpush.msra.mxu1 %v2680_v42  ;;  %3057 = vmatpush.msra.mxu2 %v2776_v4  ;;  %v2789_v48 = vld [vmem:[#allocation12 + $0x1df8] sm:$0xff] }
 0x487   : > { %3098 = vmatpush.msrb.mxu0 %v2645_v30  ;;  %3158 = vmatpush.msrb.mxu3 %v2837_v11  ;;  %v2689_v22 = vld [vmem:[#allocation12 + $0x1ad8] sm:$0xff] }
 0x488   : > { %2990 = vmatmul.f32.vlgmr.msrb.gmra.mxu2 %v4392_v8  ;;  %3046 = vmatpush.msra.mxu1 %v2676_v15  ;;  %v2785_v0 = vld [vmem:[#allocation12 + $0x1dd8] sm:$0xff] }
 0x489   : > { %3058 = vmatpush.msra.mxu2 %v2772_v17  ;;  %3099 = vmatpush.msrb.mxu0 %v2641_v25  ;;  %v2685_v1 = vld [vmem:[#allocation12 + $0x1ab8] sm:$0xff] }
 0x48a   : > { %3159 = vmatpush.msrb.mxu3 %v2833_v18  ;;  %3047 = vmatpush.msra.mxu1 %v2672_v9  ;;  %v2781_v2 = vld [vmem:[#allocation12 + $0x1db8] sm:$0xff] }
 0x48b   : > { %3059 = vmatpush.msra.mxu2 %v2768_v12  ;;  %3100 = vmatpush.msrb.mxu0 %v2637_v44  ;;  %v2681_v23 = vld [vmem:[#allocation12 + $0x1a98] sm:$0xff] }
 0x48c   : > { %3160 = vmatpush.msrb.mxu3 %v2829_v16  ;;  %3048 = vmatpush.msra.mxu1 %v2668_v62  ;;  %v2777_v21 = vld [vmem:[#allocation12 + $0x1d98] sm:$0xff] }
 0x48d   : > { %3060 = vmatpush.msra.mxu2 %v2764_v26  ;;  %3101 = vmatpush.msrb.mxu0 %v2633_v33  ;;  %v2773_v6 = vld [vmem:[#allocation12 + $0x1d78] sm:$0xff] }
 0x48e   : > { %3161 = vmatpush.msrb.mxu3 %v2825_v52  ;;  %3049 = vmatpush.msra.mxu1 %v2664_v54  ;;  %v2673_v41 = vld [vmem:[#allocation12 + $0x1a58] sm:$0xff] }
 0x48f   : > { %3061 = vmatpush.msra.mxu2 %v2760_v27  ;;  %3102 = vmatpush.msrb.mxu0 %v2629_v32  ;;  %v2669_v42 = vld [vmem:[#allocation12 + $0x1a38] sm:$0xff] }
 0x490   : > { %3050 = vmatmul.f32.vlgmr.msra.gmra.mxu1 %v4387_v3  ;;  %3162 = vmatpush.msrb.mxu3 %v2821_v14  ;;  %v2765_v4 = vld [vmem:[#allocation12 + $0x1d38] sm:$0xff] }
 0x491   : > { %3114 = vmatpush.msrb.mxu1 %v2725_v37  ;;  %3062 = vmatpush.msra.mxu2 %v2756_v38  ;;  %v2665_v30 = vld [vmem:[#allocation12 + $0x1a18] sm:$0xff] }
 0x492   : > { %3103 = vmatpush.msrb.mxu0 %v2625_v34  ;;  %3163 = vmatpush.msrb.mxu3 %v2817_v35  ;;  %v2761_v11 = vld [vmem:[#allocation12 + $0x1d18] sm:$0xff] }
 0x493   : > { %3115 = vmatpush.msrb.mxu1 %v2721_v19  ;;  %3063 = vmatpush.msra.mxu2 %v2752_v55  ;;  %v2757_v15 = vld [vmem:[#allocation12 + $0x1cf8] sm:$0xff] }
 0x494   : > { %3104 = vmatpush.msrb.mxu0 %v2621_v56  ;;  %3164 = vmatpush.msrb.mxu3 %v2813_v31  ;;  %v2753_v17 = vld [vmem:[#allocation12 + $0x1cd8] sm:$0xff] }
 0x495   : > { %3116 = vmatpush.msrb.mxu1 %v2717_v36  ;;  %3064 = vmatpush.msra.mxu2 %v2748_v39  ;;  %v2749_v25 = vld [vmem:[#allocation12 + $0x1cb8] sm:$0xff] }
 0x496   : > { %3105 = vmatpush.msrb.mxu0 %v2617_v13  ;;  %3165 = vmatpush.msrb.mxu3 %v2809_v40  ;;  %v2745_v18 = vld [vmem:[#allocation12 + $0x1c98] sm:$0xff] }
 0x497   : > { %3117 = vmatpush.msrb.mxu1 %v2713_v43  ;;  %3065 = vmatpush.msra.mxu2 %v2744_v24  ;;  %v2741_v9 = vld [vmem:[#allocation12 + $0x1c78] sm:$0xff] }
 0x498   : > { %3106 = vmatpush.msrb.mxu0 %v2613_v51  ;;  %3166 = vmatpush.msrb.mxu3 %v2805_v7  ;;  %v2737_v12 = vld [vmem:[#allocation12 + $0x1c58] sm:$0xff] }
 0x499   : > { %3118 = vmatpush.msrb.mxu1 %v2709_v53  ;;  %3066 = vmatpush.msra.mxu2 %v2740_v28  ;;  %v2733_v44 = vld [vmem:[#allocation12 + $0x1c38] sm:$0xff] }
 0x49a   : > { %3107 = vmatpush.msrb.mxu0 %v2609_v45  ;;  %3167 = vmatpush.msrb.mxu3 %v2801_v61  ;;  %v2729_v16 = vld [vmem:[#allocation12 + $0x1c18] sm:$0xff] }
 0x49b   : > { %3119 = vmatpush.msrb.mxu1 %v2705_v49  ;;  %3067 = vmatpush.msra.mxu2 %v2736_v29 }
 0x49c   : > { %3108 = vmatpush.msrb.mxu0 %v2605_v50  ;;  %3168 = vmatpush.msrb.mxu3 %v2797_v57 }
 0x49d   : > { %3120 = vmatpush.msrb.mxu1 %v2701_v5  ;;  %3068 = vmatpush.msra.mxu2 %v2732_v58 }
 0x49e   : > { %3109 = vmatpush.msrb.mxu0 %v2601_v10  ;;  %3169 = vmatpush.msrb.mxu3 %v2793_v60 }
 0x49f   : > { %3110 = vmatmul.f32.vlgmr.msrb.gmra.mxu0 %v4379_v46  ;;  %3121 = vmatpush.msrb.mxu1 %v2697_v59  ;;  %v2677_v46 = vld [vmem:[#allocation12 + $0x1a78] sm:$0xff] }
 0x4a0   : > { %3069 = vmatpush.msra.mxu2 %v2728_v63  ;;  %3170 = vmatmul.f32.vlgmr.msrb.gmra.mxu3 %v4381_v20  ;;  %v2769_v20 = vld [vmem:[#allocation12 + $0x1d58] sm:$0xff] }
 0x4a1   : > { %3070 = vmatmul.f32.vlgmr.msra.gmra.mxu2 %v4392_v8  ;;  %3122 = vmatpush.msrb.mxu1 %v2693_v47 }
 0x4a2   : > { %3134 = vmatpush.msrb.mxu2 %v2789_v48 }
 0x4a3   : > { %3123 = vmatpush.msrb.mxu1 %v2689_v22 }
 0x4a4   : > { %3135 = vmatpush.msrb.mxu2 %v2785_v0 }
 0x4a5   : > { %3124 = vmatpush.msrb.mxu1 %v2685_v1 }
 0x4a6   : > { %3136 = vmatpush.msrb.mxu2 %v2781_v2 }
 0x4a7   : > { %3125 = vmatpush.msrb.mxu1 %v2681_v23 }
 0x4a8   : > { %3137 = vmatpush.msrb.mxu2 %v2777_v21 }
 0x4a9   : > { %3126 = vmatpush.msrb.mxu1 %v2677_v46 }
 0x4aa   : > { %3138 = vmatpush.msrb.mxu2 %v2773_v6 }
 0x4ab   : > { %3127 = vmatpush.msrb.mxu1 %v2673_v41 }
 0x4ac   : > { %3139 = vmatpush.msrb.mxu2 %v2769_v20 }
 0x4ad   : > { %3128 = vmatpush.msrb.mxu1 %v2669_v42 }
 0x4ae   : > { %3140 = vmatpush.msrb.mxu2 %v2765_v4 }
 0x4af   : > { %3129 = vmatpush.msrb.mxu1 %v2665_v30 }
 0x4b0   : > { %3141 = vmatpush.msrb.mxu2 %v2761_v11  ;;  %3130 = vmatmul.f32.vlgmr.msrb.gmra.mxu1 %v4387_v3 }
 0x4b2   : > { %3142 = vmatpush.msrb.mxu2 %v2757_v15 }
 0x4b4   : > { %3143 = vmatpush.msrb.mxu2 %v2753_v17 }
 0x4b6   : > { %3144 = vmatpush.msrb.mxu2 %v2749_v25 }
 0x4b8   : > { %3145 = vmatpush.msrb.mxu2 %v2745_v18 }
 0x4ba   : > { %3146 = vmatpush.msrb.mxu2 %v2741_v9 }
 0x4bc   : > { %3147 = vmatpush.msrb.mxu2 %v2737_v12 }
 0x4be   : > { %3148 = vmatpush.msrb.mxu2 %v2733_v44 }
 0x4c0   : > { %3149 = vmatpush.msrb.mxu2 %v2729_v16 }
 0x4c1   : > { %3150 = vmatmul.f32.vlgmr.msrb.gmra.mxu2 %v4392_v8 }
 0x4da   : > { %v2871_v3 = vpop.f32.mrf.mxu0 }
 0x4e0   : > { %v2931_v52 = vpop.f32.mrf.mxu3 }
 0x4e2   : > { %v2951_v14 = vpop.f32.mrf.mxu0 }
 0x4e8   : > { %v3011_v8 = vpop.f32.mrf.mxu3 }
 0x4ea   : > { %v2891_v62 = vpop.f32.mrf.mxu1 }
 0x4eb   : > { %v2892_v26 = vadd.f32 %v2891_v62, %v2871_v3 }
 0x4f2   : > { %v2971_v32 = vpop.f32.mrf.mxu1 }
 0x4f3   : > { %v2972_v37 = vadd.f32 %v2971_v32, %v2951_v14 }
 0x4fa   : > { %v3031_v55 = vpop.f32.mrf.mxu0 }
 0x501   : > { %v3091_v39 = vpop.f32.mrf.mxu3 }
 0x502   : > { %v2911_v33 = vpop.f32.mrf.mxu2 }
 0x503   : > { %v2912_v54 = vadd.f32 %v2911_v33, %v2892_v26 }
 0x505   : > { %v2932_v27 = vadd.f32 %v2931_v52, %v2912_v54 }
 0x507   : > { %3174 = vst [vmem:[%s4405_s21] sm:$0xff] %v2932_v27 }
 0x50b   : > { %v2991_v38 = vpop.f32.mrf.mxu2 }
 0x50c   : > { %v2992_v34 = vadd.f32 %v2991_v38, %v2972_v37 }
 0x50d   : > { %v3051_v19 = vpop.f32.mrf.mxu1 }
 0x50e   : > { %v3012_v35 = vadd.f32 %v3011_v8, %v2992_v34  ;;  %v3052_v56 = vadd.f32 %v3051_v19, %v3031_v55 }
 0x510   : > { %3175 = vst [vmem:[%s4405_s21 + $0x8] sm:$0xff] %v3012_v35 }
 0x51c   : > { %v3111_v43 = vpop.f32.mrf.mxu0 }
 0x523   : > { %v3171_v53 = vpop.f32.mrf.mxu3 }
 0x524   : > { %v3071_v31 = vpop.f32.mrf.mxu2 }
 0x525   : > { %v3072_v36 = vadd.f32 %v3071_v31, %v3052_v56 }
 0x527   : > { %v3092_v13 = vadd.f32 %v3091_v39, %v3072_v36 }
 0x529   : > { %3176 = vst [vmem:[%s4405_s21 + $0x10] sm:$0xff] %v3092_v13 }
 0x52d   : > { %v3131_v40 = vpop.f32.mrf.mxu1 }
 0x52e   : > { %v3132_v24 = vadd.f32 %v3131_v40, %v3111_v43 }
 0x544   : > { %v3151_v51 = vpop.f32.mrf.mxu2 }
 0x545   : > { %v3152_v7 = vadd.f32 %v3151_v51, %v3132_v24 }
 0x547   : > { %v3172_v28 = vadd.f32 %v3171_v53, %v3152_v7 }
 0x549   : > { %3177 = vst [vmem:[%s4405_s21 + $0x18] sm:$0xff] %v3172_v28 }
 0x54a   : > { %3642 = shalt.err (!%p3639_p1)
}
 0x54b   : > { %3390 = dma.vmem_to_hbm [thread:$0]  (%p3788_p8), %s3195_s9, 512, %s3197_s8, %s3179_s11  }
 0x54c PF: > { %s4531_s1 = sld [smem:[#allocation20_spill]]  ;;  %s3208_s3 = sand.u32 1, %s3685_s15  }
 0x54d   : > { %p3407_p2 = pnand %p3347_p10, %p3795_p9  ;;  %s3209_s19 = scalar_lea.sflag [#allocation8], %s3208_s3 }
 0x54f   : > { %p3408_p4 = pneg %p3407_p2 }
 0x551   : > { %3680 = dma.done.wait (%p3408_p4), %s3209_s19, 512  }
 0x552   : > { %3682 = vsyncadd (%p3408_p4), %s3209_s19, 4294966784  ;;  %s24_s20 = sadd.s32 1, %s4531_s1   ;;  %s4532_s23 = sld [smem:[#allocation22_spill]] }
 0x553   : > { %p21_p5 = scmp.ge.s32.totalorder %s24_s20, 4   ;;  %s4533_s18 = sld [smem:[#allocation19_spill]] }
 0x554   : > { %s4534_s19 = sld [smem:[#allocation21_spill]]  ;;  %s4535_s15 = smov %s3689_s16 }
 0x555   : > { %s4536_s16 = smov %s3693_s17  ;;  %23 = sbr.rel (!%p21_p5) target bundleno = 12 (0xc), region = 129 }
 0x558   : > { %s4537_s17 = smov %s4532_s23 }
 0x55a   :  { %3215 = vsyncpa [#allocation7], 1 }
 0x55b   :  { %3217 = vsyncpa [#allocation7 + $0x1], 1 }
 0x55c   :  { %3218 = vsyncpa [#allocation10], 1 }
 0x55d   :  { %3220 = vsyncpa [#allocation10 + $0x1], 1 }
 0x55e   :  { %3221 = vsyncpa [#allocation13], 1 }
 0x55f   :  { %3222 = vsyncpa [#allocation8], 1 }
 0x560   :  { %3224 = vsyncpa [#allocation8 + $0x1], 1 }

</bundles_post_ra>
